<compile_context>
chip_gen: v6e
topology: v6e:2x2x1
jax: 0.10.0
libtpu: 0.0.40
codegen_flags: <defaults>
</compile_context>

<pallas_src>
from functools import partial
from math import sqrt

import jax
import jax.numpy as jnp
from jax import lax
from jax.experimental import pallas as pl
from jax.experimental.pallas import tpu as pltpu

# ---- model hyper-parameters (small, consistent with the module) -------------
BATCH = 2
SEQ_LEN = 8
D_MODEL = 32
N_HEADS = 4
D_FF = 64
N_LAYERS = 2
EPS = 1e-5
D_HEAD = D_MODEL // N_HEADS

_V_ROWS_PER_LAYER = 7  # bo, g1, be1, bf1, bf2, g2, be2


# =============================================================================
# Fused Pallas kernel: both EncoderLayers + final LayerNorm, one invocation
# =============================================================================
def _layernorm(x, gamma, beta):
    mu = jnp.mean(x, axis=-1, keepdims=True)
    xc = x - mu
    var = jnp.mean(xc * xc, axis=-1, keepdims=True)
    return xc * lax.rsqrt(var + EPS) * gamma + beta


def fused_encoder_kernel(x_ref, attn_w_ref, attn_b_ref, ffn_w_ref, vecs_ref,
                         out_ref, *rest):
    """x_ref: [B*L, D] f32.  Everything stays VMEM/vreg resident across layers.

    attn_w_ref: [N_LAYERS*4, B*H, dk, D]  bf16   (WqT, WkT, WvT, Wo per head)
    attn_b_ref: [N_LAYERS*3, B*H, 1, dk]  f32    (bq, bk, bv per head)
    ffn_w_ref : [N_LAYERS*2, D, D_FF]     bf16   (W1, W2^T)
    vecs_ref  : [N_LAYERS*7+2, 64]        f32    (bo,g1,be1,bf1,bf2,g2,be2, final g,b)
    rest[0] (optional): attn_ref [B*H, N_LAYERS*L*L] f32 (lane-dense prob slab)
    """
    attn_ref = rest[0] if rest else None
    B, L, D, H, dk = BATCH, SEQ_LEN, D_MODEL, N_HEADS, D_HEAD
    BH = B * H
    scale = 1.0 / sqrt(dk)          # FullAttention default: 1/sqrt(E)

    x = x_ref[...]                  # [B*L, D] f32, resident across layers
    attn_pieces = []

    for l in range(N_LAYERS):       # static unroll over stacked weights
        base = l * _V_ROWS_PER_LAYER
        bo = vecs_ref[base + 0:base + 1, 0:D]
        g1 = vecs_ref[base + 1:base + 2, 0:D]
        be1 = vecs_ref[base + 2:base + 3, 0:D]
        bf1 = vecs_ref[base + 3:base + 4, 0:D_FF]
        bf2 = vecs_ref[base + 4:base + 5, 0:D]
        g2 = vecs_ref[base + 5:base + 6, 0:D]
        be2 = vecs_ref[base + 6:base + 7, 0:D]

        # ---- head-batched view of x: [B*H, L, D] (leading-dim broadcast only,
        #      no sublane/lane relayout), bf16 operands for the MXU ------------
        xb = jnp.broadcast_to(x.reshape(B, 1, L, D), (B, H, L, D))
        xb = xb.reshape(BH, L, D).astype(jnp.bfloat16)

        wq_t = attn_w_ref[l * 4 + 0]        # [BH, dk, D]
        wk_t = attn_w_ref[l * 4 + 1]
        wv_t = attn_w_ref[l * 4 + 2]
        wo_h = attn_w_ref[l * 4 + 3]        # [BH, dk, D] (row block of Wo per head)

        # ---- Q/K/V projections, batched over all (batch, head) pairs --------
        q = jnp.einsum("nld,nkd->nlk", xb, wq_t,
                       preferred_element_type=jnp.float32) + attn_b_ref[l * 3 + 0]
        k = jnp.einsum("nld,nkd->nlk", xb, wk_t,
                       preferred_element_type=jnp.float32) + attn_b_ref[l * 3 + 1]
        v = jnp.einsum("nld,nkd->nlk", xb, wv_t,
                       preferred_element_type=jnp.float32) + attn_b_ref[l * 3 + 2]

        # ---- full attention: one batched contraction + one softmax ----------
        s = jnp.einsum("nqd,nkd->nqk", q.astype(jnp.bfloat16), k.astype(jnp.bfloat16),
                       preferred_element_type=jnp.float32) * scale     # [BH, L, L]
        m = jnp.max(s, axis=-1, keepdims=True)
        e = jnp.exp(s - m)
        denom = jnp.sum(e, axis=-1, keepdims=True)
        probs = e * pl.reciprocal(denom, approx=True)   # softmax(dim=-1), f32

        if attn_ref is not None:
            attn_pieces.append(probs.reshape(BH, L * L))   # lane-dense packing

        ctx = jnp.einsum("nqk,nkd->nqd", probs.astype(jnp.bfloat16),
                         v.astype(jnp.bfloat16),
                         preferred_element_type=jnp.float32)            # [BH, L, dk]

        # ---- output projection: per-head partials, summed over heads --------
        oh = jnp.einsum("nlk,nkd->nld", ctx.astype(jnp.bfloat16), wo_h,
                        preferred_element_type=jnp.float32)             # [BH, L, D]
        new_x = oh.reshape(B, H, L, D).sum(axis=1).reshape(B * L, D) + bo

        # ---- residual + norm1 ------------------------------------------------
        x1 = _layernorm(x + new_x, g1, be1)

        # ---- FFN (Conv1d k=1 == Linear), ReLU --------------------------------
        w1 = ffn_w_ref[l * 2 + 0]            # [D, D_FF]   bf16
        w2_t = ffn_w_ref[l * 2 + 1]          # [D, D_FF]   bf16 (= W2^T)
        y = jnp.dot(x1.astype(jnp.bfloat16), w1,
                    preferred_element_type=jnp.float32) + bf1
        y = jnp.maximum(y, 0.0)
        y = lax.dot_general(y.astype(jnp.bfloat16), w2_t,
                            (((1,), (1,)), ((), ())),        # y @ W2 via NT matmul
                            preferred_element_type=jnp.float32) + bf2

        # ---- residual + norm2 ------------------------------------------------
        x = _layernorm(x1 + y, g2, be2)

    # ---- final Encoder norm_layer -------------------------------------------
    fbase = N_LAYERS * _V_ROWS_PER_LAYER
    fg = vecs_ref[fbase + 0:fbase + 1, 0:D]
    fb = vecs_ref[fbase + 1:fbase + 2, 0:D]
    out_ref[...] = _layernorm(x, fg, fb).astype(out_ref.dtype)

    if attn_ref is not None:
        # single full-width (128-lane) store of all attention maps
        attn_ref[...] = jnp.concatenate(attn_pieces, axis=1).astype(attn_ref.dtype)


# =============================================================================
# Wrapper: parameter packing (once) + a single pallas_call
# =============================================================================
def pack_params(layer_params, norm_params):
    """Pack per-layer params into 4 slabs (head-major attention weights, bf16)."""
    H, dk = N_HEADS, D_HEAD

    def pad64(v):                       # [1, n] -> [1, 64]
        return jnp.pad(v, ((0, 0), (0, 64 - v.shape[1])))

    attn_w, attn_b, ffn_w, vec_rows = [], [], [], []
    for p in layer_params:
        # per-head transposed projection weights: [H, dk, D] = W[:, h-block].T
        for name in ("wq", "wk", "wv"):
            w_h = p[name].reshape(D_MODEL, H, dk).transpose(1, 2, 0)
            attn_w.append(jnp.tile(w_h, (BATCH, 1, 1)))          # [B*H, dk, D]
        wo_h = p["wo"].reshape(H, dk, D_MODEL)                   # row block per head
        attn_w.append(jnp.tile(wo_h, (BATCH, 1, 1)))

        for name in ("bq", "bk", "bv"):
            b_h = p[name].reshape(H, 1, dk)
            attn_b.append(jnp.tile(b_h, (BATCH, 1, 1)))          # [B*H, 1, dk]

        ffn_w.append(p["w1"])                                    # [D, D_FF]
        ffn_w.append(p["w2"].T)                                  # [D, D_FF]

        vec_rows += [pad64(p["bo"]), pad64(p["g1"]), pad64(p["be1"]),
                     pad64(p["bf1"]), pad64(p["bf2"]), pad64(p["g2"]), pad64(p["be2"])]

    vec_rows += [pad64(norm_params["gamma"]), pad64(norm_params["beta"])]

    return dict(
        attn_w=jnp.stack(attn_w, axis=0).astype(jnp.bfloat16),   # [N_LAYERS*4, B*H, dk, D]
        attn_b=jnp.stack(attn_b, axis=0),                        # [N_LAYERS*3, B*H, 1, dk] f32
        ffn_w=jnp.stack(ffn_w, axis=0).astype(jnp.bfloat16),     # [N_LAYERS*2, D, D_FF]
        vecs=jnp.concatenate(vec_rows, axis=0),                  # [N_LAYERS*7+2, 64]       f32
    )


@partial(jax.jit, static_argnames=("return_attns",))
def encoder_forward(x, packed, return_attns=True):
    """Mirrors Encoder.forward with conv_layers=None, attn_mask=None, eval mode."""
    B, L, D = x.shape
    x_flat = x.reshape(B * L, D)

    out_shapes = [jax.ShapeDtypeStruct((B * L, D), x.dtype)]
    if return_attns:
        # lane-dense [B*H, N_LAYERS*L*L] slab; reshuffled to [N_LAYERS,B,H,L,L] below
        out_shapes.append(
            jax.ShapeDtypeStruct((B * N_HEADS, N_LAYERS * L * L), jnp.float32))

    results = pl.pallas_call(
        fused_encoder_kernel,
        out_shape=tuple(out_shapes),
        compiler_params=pltpu.CompilerParams(vmem_limit_bytes=32 * 1024 * 1024),
    )(x_flat, packed["attn_w"], packed["attn_b"], packed["ffn_w"], packed["vecs"])

    out = results[0].reshape(B, L, D)
    if not return_attns:
        return out, None
    attn = results[1].reshape(B, N_HEADS, N_LAYERS, L, L).transpose(2, 0, 1, 3, 4)
    return out, attn                      # attn: [N_LAYERS, B, H, L, L]


# =============================================================================
# Deterministic parameter init + pure-JAX reference for a sanity check
# =============================================================================
def init_params(key):
    layer_params = []
    for _ in range(N_LAYERS):
        keys = jax.random.split(key, 12)
        key = keys[0]
        p = {
            "wq": jax.random.normal(keys[1], (D_MODEL, D_MODEL), jnp.float32) * 0.05,
            "wk": jax.random.normal(keys[2], (D_MODEL, D_MODEL), jnp.float32) * 0.05,
            "wv": jax.random.normal(keys[3], (D_MODEL, D_MODEL), jnp.float32) * 0.05,
            "wo": jax.random.normal(keys[4], (D_MODEL, D_MODEL), jnp.float32) * 0.05,
            "bq": jax.random.normal(keys[8], (1, D_MODEL), jnp.float32) * 0.02,
            "bk": jax.random.normal(keys[9], (1, D_MODEL), jnp.float32) * 0.02,
            "bv": jax.random.normal(keys[10], (1, D_MODEL), jnp.float32) * 0.02,
            "bo": jax.random.normal(keys[11], (1, D_MODEL), jnp.float32) * 0.02,
            "g1": jnp.ones((1, D_MODEL), jnp.float32),
            "be1": jnp.zeros((1, D_MODEL), jnp.float32),
            "w1": jax.random.normal(keys[5], (D_MODEL, D_FF), jnp.float32) * 0.05,
            "bf1": jax.random.normal(keys[6], (1, D_FF), jnp.float32) * 0.05,
            "w2": jax.random.normal(keys[7], (D_FF, D_MODEL), jnp.float32) * 0.05,
            "bf2": jnp.zeros((1, D_MODEL), jnp.float32),
            "g2": jnp.ones((1, D_MODEL), jnp.float32),
            "be2": jnp.zeros((1, D_MODEL), jnp.float32),
        }
        layer_params.append(p)
    norm_params = {
        "gamma": jnp.ones((1, D_MODEL), jnp.float32),
        "beta": jnp.zeros((1, D_MODEL), jnp.float32),
    }
    return layer_params, norm_params


def ref_layernorm(x, g, b):
    mu = jnp.mean(x, axis=-1, keepdims=True)
    var = jnp.mean((x - mu) ** 2, axis=-1, keepdims=True)
    return (x - mu) / jnp.sqrt(var + EPS) * g + b


def ref_encoder_layer(x, p):
    B, L, D = x.shape
    H, dk = N_HEADS, D_MODEL // N_HEADS
    q = (x @ p["wq"] + p["bq"]).reshape(B, L, H, dk)
    k = (x @ p["wk"] + p["bk"]).reshape(B, L, H, dk)
    v = (x @ p["wv"] + p["bv"]).reshape(B, L, H, dk)
    scores = jnp.einsum("blhe,bshe->bhls", q, k) / sqrt(dk)
    probs = jax.nn.softmax(scores, axis=-1)
    ctx = jnp.einsum("bhls,bshe->blhe", probs, v).reshape(B, L, D)
    new_x = ctx @ p["wo"] + p["bo"]
    x1 = ref_layernorm(x + new_x, p["g1"], p["be1"])
    y = jnp.maximum(x1 @ p["w1"] + p["bf1"], 0.0) @ p["w2"] + p["bf2"]
    return ref_layernorm(x1 + y, p["g2"], p["be2"]), probs


def ref_encoder(x, layer_params, norm_params):
    attns = []
    for p in layer_params:
        x, a = ref_encoder_layer(x, p)
        attns.append(a)
    return ref_layernorm(x, norm_params["gamma"], norm_params["beta"]), attns


# =============================================================================
if __name__ == "__main__":
    key = jax.random.PRNGKey(0)
    k_x, k_p = jax.random.split(key)
    x = jax.random.normal(k_x, (BATCH, SEQ_LEN, D_MODEL), jnp.float32)
    layer_params, norm_params = init_params(k_p)
    packed = pack_params(layer_params, norm_params)

    out, attn = encoder_forward(x, packed)
    out = jax.block_until_ready(out)
    attn = jax.block_until_ready(attn)
    attns = [attn[l] for l in range(N_LAYERS)]

    # sanity check against a pure-JAX f32 reference.  Tolerance accounts for
    # bf16 matmul operands (f32 accumulation) and the approx EUP reciprocal in
    # the softmax (~2^-12 rel err).
    ref_out, ref_attns = ref_encoder(x, layer_params, norm_params)
    assert out.shape == (BATCH, SEQ_LEN, D_MODEL)
    assert len(attns) == N_LAYERS and attns[0].shape == (BATCH, N_HEADS, SEQ_LEN, SEQ_LEN)
    assert jnp.allclose(out, ref_out, rtol=2e-2, atol=2e-2)
    assert all(jnp.allclose(a, r, rtol=2e-2, atol=2e-2) for a, r in zip(attns, ref_attns))

    print("KERNEL_OK")
</pallas_src>

<mosaic_0001>
module attributes {stable_mosaic.version = 11 : i64} {
  func.func @fused_encoder_kernel(%arg0: memref<16x32xf32, #tpu.memory_space<vmem>>, %arg1: memref<8x8x8x32xbf16, #tpu.memory_space<vmem>>, %arg2: memref<6x8x1x8xf32, #tpu.memory_space<vmem>>, %arg3: memref<4x32x64xbf16, #tpu.memory_space<vmem>>, %arg4: memref<16x64xf32, #tpu.memory_space<vmem>>, %arg5: memref<16x32xf32, #tpu.memory_space<vmem>>, %arg6: memref<8x128xf32, #tpu.memory_space<vmem>>) attributes {dimension_semantics = [], scalar_prefetch = 0 : i64, scratch_operands = 0 : i64, tpu.core_type = #tpu.core_type<tc>} {
    %c0 = arith.constant 0 : index
    %c0_0 = arith.constant 0 : index
    %0 = vector.load %arg0[%c0, %c0_0] : memref<16x32xf32, #tpu.memory_space<vmem>>, vector<16x32xf32>
    %c0_1 = arith.constant 0 : index
    %c0_2 = arith.constant 0 : index
    %1 = vector.load %arg4[%c0_1, %c0_2] : memref<16x64xf32, #tpu.memory_space<vmem>>, vector<1x32xf32>
    %c1 = arith.constant 1 : index
    %c0_3 = arith.constant 0 : index
    %2 = vector.load %arg4[%c1, %c0_3] : memref<16x64xf32, #tpu.memory_space<vmem>>, vector<1x32xf32>
    %c2 = arith.constant 2 : index
    %c0_4 = arith.constant 0 : index
    %3 = vector.load %arg4[%c2, %c0_4] : memref<16x64xf32, #tpu.memory_space<vmem>>, vector<1x32xf32>
    %c3 = arith.constant 3 : index
    %c0_5 = arith.constant 0 : index
    %4 = vector.load %arg4[%c3, %c0_5] : memref<16x64xf32, #tpu.memory_space<vmem>>, vector<1x64xf32>
    %c4 = arith.constant 4 : index
    %c0_6 = arith.constant 0 : index
    %5 = vector.load %arg4[%c4, %c0_6] : memref<16x64xf32, #tpu.memory_space<vmem>>, vector<1x32xf32>
    %c5 = arith.constant 5 : index
    %c0_7 = arith.constant 0 : index
    %6 = vector.load %arg4[%c5, %c0_7] : memref<16x64xf32, #tpu.memory_space<vmem>>, vector<1x32xf32>
    %c6 = arith.constant 6 : index
    %c0_8 = arith.constant 0 : index
    %7 = vector.load %arg4[%c6, %c0_8] : memref<16x64xf32, #tpu.memory_space<vmem>>, vector<1x32xf32>
    %8 = vector.shape_cast %0 : vector<16x32xf32> to vector<2x1x8x32xf32>
    %9 = vector.shape_cast %8 : vector<2x1x8x32xf32> to vector<2x1x8x32xf32>
    %10 = vector.broadcast %9 : vector<2x1x8x32xf32> to vector<2x4x8x32xf32>
    %11 = vector.shape_cast %10 : vector<2x4x8x32xf32> to vector<8x8x32xf32>
    %12 = arith.truncf %11 : vector<8x8x32xf32> to vector<8x8x32xbf16>
    %c0_9 = arith.constant 0 : index
    %c0_10 = arith.constant 0 : index
    %c0_11 = arith.constant 0 : index
    %c0_12 = arith.constant 0 : index
    %13 = vector.load %arg1[%c0_9, %c0_10, %c0_11, %c0_12] : memref<8x8x8x32xbf16, #tpu.memory_space<vmem>>, vector<1x8x8x32xbf16>
    %14 = vector.shape_cast %13 : vector<1x8x8x32xbf16> to vector<8x8x32xbf16>
    %c1_13 = arith.constant 1 : index
    %c0_14 = arith.constant 0 : index
    %c0_15 = arith.constant 0 : index
    %c0_16 = arith.constant 0 : index
    %15 = vector.load %arg1[%c1_13, %c0_14, %c0_15, %c0_16] : memref<8x8x8x32xbf16, #tpu.memory_space<vmem>>, vector<1x8x8x32xbf16>
    %16 = vector.shape_cast %15 : vector<1x8x8x32xbf16> to vector<8x8x32xbf16>
    %c2_17 = arith.constant 2 : index
    %c0_18 = arith.constant 0 : index
    %c0_19 = arith.constant 0 : index
    %c0_20 = arith.constant 0 : index
    %17 = vector.load %arg1[%c2_17, %c0_18, %c0_19, %c0_20] : memref<8x8x8x32xbf16, #tpu.memory_space<vmem>>, vector<1x8x8x32xbf16>
    %18 = vector.shape_cast %17 : vector<1x8x8x32xbf16> to vector<8x8x32xbf16>
    %c3_21 = arith.constant 3 : index
    %c0_22 = arith.constant 0 : index
    %c0_23 = arith.constant 0 : index
    %c0_24 = arith.constant 0 : index
    %19 = vector.load %arg1[%c3_21, %c0_22, %c0_23, %c0_24] : memref<8x8x8x32xbf16, #tpu.memory_space<vmem>>, vector<1x8x8x32xbf16>
    %20 = vector.shape_cast %19 : vector<1x8x8x32xbf16> to vector<8x8x32xbf16>
    "tpu.trace_start"() <{level = 10 : i32, message = "nld,nkd->nlk"}> : () -> ()
    %cst = arith.constant dense<0.000000e+00> : vector<8x8x8xf32>
    %21 = tpu.matmul %12, %14, %cst {dimension_numbers = #tpu.dot_dimension_numbers<[2], [2], [1], [1], [0, 0, 0, 1, 1, 1], [0], [0]>} : vector<8x8x32xbf16>, vector<8x8x32xbf16>, vector<8x8x8xf32> -> vector<8x8x8xf32>
    "tpu.trace_stop"() : () -> ()
    %c0_25 = arith.constant 0 : index
    %c0_26 = arith.constant 0 : index
    %c0_27 = arith.constant 0 : index
    %c0_28 = arith.constant 0 : index
    %22 = vector.load %arg2[%c0_25, %c0_26, %c0_27, %c0_28] : memref<6x8x1x8xf32, #tpu.memory_space<vmem>>, vector<1x8x1x8xf32>
    %23 = vector.shape_cast %22 : vector<1x8x1x8xf32> to vector<8x1x8xf32>
    %24 = vector.broadcast %23 : vector<8x1x8xf32> to vector<8x8x8xf32>
    %25 = arith.addf %21, %24 : vector<8x8x8xf32>
    "tpu.trace_start"() <{level = 10 : i32, message = "nld,nkd->nlk"}> : () -> ()
    %cst_29 = arith.constant dense<0.000000e+00> : vector<8x8x8xf32>
    %26 = tpu.matmul %12, %16, %cst_29 {dimension_numbers = #tpu.dot_dimension_numbers<[2], [2], [1], [1], [0, 0, 0, 1, 1, 1], [0], [0]>} : vector<8x8x32xbf16>, vector<8x8x32xbf16>, vector<8x8x8xf32> -> vector<8x8x8xf32>
    "tpu.trace_stop"() : () -> ()
    %c1_30 = arith.constant 1 : index
    %c0_31 = arith.constant 0 : index
    %c0_32 = arith.constant 0 : index
    %c0_33 = arith.constant 0 : index
    %27 = vector.load %arg2[%c1_30, %c0_31, %c0_32, %c0_33] : memref<6x8x1x8xf32, #tpu.memory_space<vmem>>, vector<1x8x1x8xf32>
    %28 = vector.shape_cast %27 : vector<1x8x1x8xf32> to vector<8x1x8xf32>
    %29 = vector.broadcast %28 : vector<8x1x8xf32> to vector<8x8x8xf32>
    %30 = arith.addf %26, %29 : vector<8x8x8xf32>
    "tpu.trace_start"() <{level = 10 : i32, message = "nld,nkd->nlk"}> : () -> ()
    %cst_34 = arith.constant dense<0.000000e+00> : vector<8x8x8xf32>
    %31 = tpu.matmul %12, %18, %cst_34 {dimension_numbers = #tpu.dot_dimension_numbers<[2], [2], [1], [1], [0, 0, 0, 1, 1, 1], [0], [0]>} : vector<8x8x32xbf16>, vector<8x8x32xbf16>, vector<8x8x8xf32> -> vector<8x8x8xf32>
    "tpu.trace_stop"() : () -> ()
    %c2_35 = arith.constant 2 : index
    %c0_36 = arith.constant 0 : index
    %c0_37 = arith.constant 0 : index
    %c0_38 = arith.constant 0 : index
    %32 = vector.load %arg2[%c2_35, %c0_36, %c0_37, %c0_38] : memref<6x8x1x8xf32, #tpu.memory_space<vmem>>, vector<1x8x1x8xf32>
    %33 = vector.shape_cast %32 : vector<1x8x1x8xf32> to vector<8x1x8xf32>
    %34 = vector.broadcast %33 : vector<8x1x8xf32> to vector<8x8x8xf32>
    %35 = arith.addf %31, %34 : vector<8x8x8xf32>
    %36 = arith.truncf %25 : vector<8x8x8xf32> to vector<8x8x8xbf16>
    %37 = arith.truncf %30 : vector<8x8x8xf32> to vector<8x8x8xbf16>
    "tpu.trace_start"() <{level = 10 : i32, message = "nqd,nkd->nqk"}> : () -> ()
    %cst_39 = arith.constant dense<0.000000e+00> : vector<8x8x8xf32>
    %38 = tpu.matmul %36, %37, %cst_39 {dimension_numbers = #tpu.dot_dimension_numbers<[2], [2], [1], [1], [0, 0, 0, 1, 1, 1], [0], [0]>} : vector<8x8x8xbf16>, vector<8x8x8xbf16>, vector<8x8x8xf32> -> vector<8x8x8xf32>
    "tpu.trace_stop"() : () -> ()
    %cst_40 = arith.constant 0.353553385 : f32
    %39 = vector.broadcast %cst_40 : f32 to vector<8x8x8xf32>
    %40 = arith.mulf %38, %39 : vector<8x8x8xf32>
    %cst_41 = arith.constant dense<0xFF800000> : vector<8x8xf32>
    %41 = vector.multi_reduction <maximumf>, %40, %cst_41 [2] : vector<8x8x8xf32> to vector<8x8xf32>
    %42 = vector.shape_cast %41 : vector<8x8xf32> to vector<8x8x1xf32>
    %43 = vector.broadcast %42 : vector<8x8x1xf32> to vector<8x8x8xf32>
    %44 = arith.subf %40, %43 : vector<8x8x8xf32>
    %45 = math.exp %44 : vector<8x8x8xf32>
    %cst_42 = arith.constant dense<0.000000e+00> : vector<8x8xf32>
    %46 = vector.multi_reduction <add>, %45, %cst_42 [2] : vector<8x8x8xf32> to vector<8x8xf32>
    %47 = vector.shape_cast %46 : vector<8x8xf32> to vector<8x8x1xf32>
    %48 = tpu.reciprocal %47 {approx = true} : vector<8x8x1xf32> -> vector<8x8x1xf32>
    %49 = vector.broadcast %48 : vector<8x8x1xf32> to vector<8x8x8xf32>
    %50 = arith.mulf %45, %49 : vector<8x8x8xf32>
    %51 = vector.shape_cast %50 : vector<8x8x8xf32> to vector<8x64xf32>
    %52 = arith.truncf %50 : vector<8x8x8xf32> to vector<8x8x8xbf16>
    %53 = arith.truncf %35 : vector<8x8x8xf32> to vector<8x8x8xbf16>
    "tpu.trace_start"() <{level = 10 : i32, message = "nqk,nkd->nqd"}> : () -> ()
    %cst_43 = arith.constant dense<0.000000e+00> : vector<8x8x8xf32>
    %54 = tpu.matmul %52, %53, %cst_43 {dimension_numbers = #tpu.dot_dimension_numbers<[2], [1], [1], [2], [0, 0, 0, 1, 1, 2], [0], [0]>} : vector<8x8x8xbf16>, vector<8x8x8xbf16>, vector<8x8x8xf32> -> vector<8x8x8xf32>
    "tpu.trace_stop"() : () -> ()
    %55 = arith.truncf %54 : vector<8x8x8xf32> to vector<8x8x8xbf16>
    "tpu.trace_start"() <{level = 10 : i32, message = "nlk,nkd->nld"}> : () -> ()
    %cst_44 = arith.constant dense<0.000000e+00> : vector<8x8x32xf32>
    %56 = tpu.matmul %55, %20, %cst_44 {dimension_numbers = #tpu.dot_dimension_numbers<[2], [1], [1], [2], [0, 0, 0, 1, 1, 2], [0], [0]>} : vector<8x8x8xbf16>, vector<8x8x32xbf16>, vector<8x8x32xf32> -> vector<8x8x32xf32>
    "tpu.trace_stop"() : () -> ()
    %57 = vector.shape_cast %56 : vector<8x8x32xf32> to vector<2x4x8x32xf32>
    %cst_45 = arith.constant dense<0.000000e+00> : vector<2x8x32xf32>
    %58 = vector.multi_reduction <add>, %57, %cst_45 [1] : vector<2x4x8x32xf32> to vector<2x8x32xf32>
    %59 = vector.shape_cast %58 : vector<2x8x32xf32> to vector<16x32xf32>
    %60 = vector.broadcast %1 : vector<1x32xf32> to vector<16x32xf32>
    %61 = arith.addf %59, %60 : vector<16x32xf32>
    %62 = arith.addf %0, %61 : vector<16x32xf32>
    %cst_46 = arith.constant dense<0.000000e+00> : vector<16xf32>
    %63 = vector.multi_reduction <add>, %62, %cst_46 [1] : vector<16x32xf32> to vector<16xf32>
    %64 = vector.shape_cast %63 : vector<16xf32> to vector<16x1xf32>
    %cst_47 = arith.constant 3.200000e+01 : f32
    %65 = vector.broadcast %cst_47 : f32 to vector<16x1xf32>
    %66 = arith.divf %64, %65 : vector<16x1xf32>
    %67 = vector.broadcast %66 : vector<16x1xf32> to vector<16x32xf32>
    %68 = arith.subf %62, %67 : vector<16x32xf32>
    %69 = arith.mulf %68, %68 : vector<16x32xf32>
    %cst_48 = arith.constant dense<0.000000e+00> : vector<16xf32>
    %70 = vector.multi_reduction <add>, %69, %cst_48 [1] : vector<16x32xf32> to vector<16xf32>
    %71 = vector.shape_cast %70 : vector<16xf32> to vector<16x1xf32>
    %cst_49 = arith.constant 3.200000e+01 : f32
    %72 = vector.broadcast %cst_49 : f32 to vector<16x1xf32>
    %73 = arith.divf %71, %72 : vector<16x1xf32>
    %cst_50 = arith.constant 9.99999974E-6 : f32
    %74 = vector.broadcast %cst_50 : f32 to vector<16x1xf32>
    %75 = arith.addf %73, %74 : vector<16x1xf32>
    %76 = math.rsqrt %75 : vector<16x1xf32>
    %77 = vector.broadcast %76 : vector<16x1xf32> to vector<16x32xf32>
    %78 = arith.mulf %68, %77 : vector<16x32xf32>
    %79 = vector.broadcast %2 : vector<1x32xf32> to vector<16x32xf32>
    %80 = arith.mulf %78, %79 : vector<16x32xf32>
    %81 = vector.broadcast %3 : vector<1x32xf32> to vector<16x32xf32>
    %82 = arith.addf %80, %81 : vector<16x32xf32>
    %c0_51 = arith.constant 0 : index
    %c0_52 = arith.constant 0 : index
    %c0_53 = arith.constant 0 : index
    %83 = vector.load %arg3[%c0_51, %c0_52, %c0_53] : memref<4x32x64xbf16, #tpu.memory_space<vmem>>, vector<1x32x64xbf16>
    %84 = vector.shape_cast %83 : vector<1x32x64xbf16> to vector<32x64xbf16>
    %c1_54 = arith.constant 1 : index
    %c0_55 = arith.constant 0 : index
    %c0_56 = arith.constant 0 : index
    %85 = vector.load %arg3[%c1_54, %c0_55, %c0_56] : memref<4x32x64xbf16, #tpu.memory_space<vmem>>, vector<1x32x64xbf16>
    %86 = vector.shape_cast %85 : vector<1x32x64xbf16> to vector<32x64xbf16>
    %87 = arith.truncf %82 : vector<16x32xf32> to vector<16x32xbf16>
    %cst_57 = arith.constant dense<0.000000e+00> : vector<16x64xf32>
    %88 = tpu.matmul %87, %84, %cst_57 {dimension_numbers = #tpu.dot_dimension_numbers<[1], [0], [0], [1], [0, 0, 1, 1], [], []>} : vector<16x32xbf16>, vector<32x64xbf16>, vector<16x64xf32> -> vector<16x64xf32>
    %89 = vector.broadcast %4 : vector<1x64xf32> to vector<16x64xf32>
    %90 = arith.addf %88, %89 : vector<16x64xf32>
    %cst_58 = arith.constant 0.000000e+00 : f32
    %91 = vector.broadcast %cst_58 : f32 to vector<16x64xf32>
    %92 = arith.maximumf %90, %91 : vector<16x64xf32>
    %93 = arith.truncf %92 : vector<16x64xf32> to vector<16x64xbf16>
    %cst_59 = arith.constant dense<0.000000e+00> : vector<16x32xf32>
    %94 = tpu.matmul %93, %86, %cst_59 {dimension_numbers = #tpu.dot_dimension_numbers<[1], [1], [0], [0], [0, 0, 1, 0], [], []>} : vector<16x64xbf16>, vector<32x64xbf16>, vector<16x32xf32> -> vector<16x32xf32>
    %95 = vector.broadcast %5 : vector<1x32xf32> to vector<16x32xf32>
    %96 = arith.addf %94, %95 : vector<16x32xf32>
    %97 = arith.addf %82, %96 : vector<16x32xf32>
    %cst_60 = arith.constant dense<0.000000e+00> : vector<16xf32>
    %98 = vector.multi_reduction <add>, %97, %cst_60 [1] : vector<16x32xf32> to vector<16xf32>
    %99 = vector.shape_cast %98 : vector<16xf32> to vector<16x1xf32>
    %cst_61 = arith.constant 3.200000e+01 : f32
    %100 = vector.broadcast %cst_61 : f32 to vector<16x1xf32>
    %101 = arith.divf %99, %100 : vector<16x1xf32>
    %102 = vector.broadcast %101 : vector<16x1xf32> to vector<16x32xf32>
    %103 = arith.subf %97, %102 : vector<16x32xf32>
    %104 = arith.mulf %103, %103 : vector<16x32xf32>
    %cst_62 = arith.constant dense<0.000000e+00> : vector<16xf32>
    %105 = vector.multi_reduction <add>, %104, %cst_62 [1] : vector<16x32xf32> to vector<16xf32>
    %106 = vector.shape_cast %105 : vector<16xf32> to vector<16x1xf32>
    %cst_63 = arith.constant 3.200000e+01 : f32
    %107 = vector.broadcast %cst_63 : f32 to vector<16x1xf32>
    %108 = arith.divf %106, %107 : vector<16x1xf32>
    %cst_64 = arith.constant 9.99999974E-6 : f32
    %109 = vector.broadcast %cst_64 : f32 to vector<16x1xf32>
    %110 = arith.addf %108, %109 : vector<16x1xf32>
    %111 = math.rsqrt %110 : vector<16x1xf32>
    %112 = vector.broadcast %111 : vector<16x1xf32> to vector<16x32xf32>
    %113 = arith.mulf %103, %112 : vector<16x32xf32>
    %114 = vector.broadcast %6 : vector<1x32xf32> to vector<16x32xf32>
    %115 = arith.mulf %113, %114 : vector<16x32xf32>
    %116 = vector.broadcast %7 : vector<1x32xf32> to vector<16x32xf32>
    %117 = arith.addf %115, %116 : vector<16x32xf32>
    %c7 = arith.constant 7 : index
    %c0_65 = arith.constant 0 : index
    %118 = vector.load %arg4[%c7, %c0_65] : memref<16x64xf32, #tpu.memory_space<vmem>>, vector<1x32xf32>
    %c8 = arith.constant 8 : index
    %c0_66 = arith.constant 0 : index
    %119 = vector.load %arg4[%c8, %c0_66] : memref<16x64xf32, #tpu.memory_space<vmem>>, vector<1x32xf32>
    %c9 = arith.constant 9 : index
    %c0_67 = arith.constant 0 : index
    %120 = vector.load %arg4[%c9, %c0_67] : memref<16x64xf32, #tpu.memory_space<vmem>>, vector<1x32xf32>
    %c10 = arith.constant 10 : index
    %c0_68 = arith.constant 0 : index
    %121 = vector.load %arg4[%c10, %c0_68] : memref<16x64xf32, #tpu.memory_space<vmem>>, vector<1x64xf32>
    %c11 = arith.constant 11 : index
    %c0_69 = arith.constant 0 : index
    %122 = vector.load %arg4[%c11, %c0_69] : memref<16x64xf32, #tpu.memory_space<vmem>>, vector<1x32xf32>
    %c12 = arith.constant 12 : index
    %c0_70 = arith.constant 0 : index
    %123 = vector.load %arg4[%c12, %c0_70] : memref<16x64xf32, #tpu.memory_space<vmem>>, vector<1x32xf32>
    %c13 = arith.constant 13 : index
    %c0_71 = arith.constant 0 : index
    %124 = vector.load %arg4[%c13, %c0_71] : memref<16x64xf32, #tpu.memory_space<vmem>>, vector<1x32xf32>
    %125 = vector.shape_cast %117 : vector<16x32xf32> to vector<2x1x8x32xf32>
    %126 = vector.shape_cast %125 : vector<2x1x8x32xf32> to vector<2x1x8x32xf32>
    %127 = vector.broadcast %126 : vector<2x1x8x32xf32> to vector<2x4x8x32xf32>
    %128 = vector.shape_cast %127 : vector<2x4x8x32xf32> to vector<8x8x32xf32>
    %129 = arith.truncf %128 : vector<8x8x32xf32> to vector<8x8x32xbf16>
    %c4_72 = arith.constant 4 : index
    %c0_73 = arith.constant 0 : index
    %c0_74 = arith.constant 0 : index
    %c0_75 = arith.constant 0 : index
    %130 = vector.load %arg1[%c4_72, %c0_73, %c0_74, %c0_75] : memref<8x8x8x32xbf16, #tpu.memory_space<vmem>>, vector<1x8x8x32xbf16>
    %131 = vector.shape_cast %130 : vector<1x8x8x32xbf16> to vector<8x8x32xbf16>
    %c5_76 = arith.constant 5 : index
    %c0_77 = arith.constant 0 : index
    %c0_78 = arith.constant 0 : index
    %c0_79 = arith.constant 0 : index
    %132 = vector.load %arg1[%c5_76, %c0_77, %c0_78, %c0_79] : memref<8x8x8x32xbf16, #tpu.memory_space<vmem>>, vector<1x8x8x32xbf16>
    %133 = vector.shape_cast %132 : vector<1x8x8x32xbf16> to vector<8x8x32xbf16>
    %c6_80 = arith.constant 6 : index
    %c0_81 = arith.constant 0 : index
    %c0_82 = arith.constant 0 : index
    %c0_83 = arith.constant 0 : index
    %134 = vector.load %arg1[%c6_80, %c0_81, %c0_82, %c0_83] : memref<8x8x8x32xbf16, #tpu.memory_space<vmem>>, vector<1x8x8x32xbf16>
    %135 = vector.shape_cast %134 : vector<1x8x8x32xbf16> to vector<8x8x32xbf16>
    %c7_84 = arith.constant 7 : index
    %c0_85 = arith.constant 0 : index
    %c0_86 = arith.constant 0 : index
    %c0_87 = arith.constant 0 : index
    %136 = vector.load %arg1[%c7_84, %c0_85, %c0_86, %c0_87] : memref<8x8x8x32xbf16, #tpu.memory_space<vmem>>, vector<1x8x8x32xbf16>
    %137 = vector.shape_cast %136 : vector<1x8x8x32xbf16> to vector<8x8x32xbf16>
    "tpu.trace_start"() <{level = 10 : i32, message = "nld,nkd->nlk"}> : () -> ()
    %cst_88 = arith.constant dense<0.000000e+00> : vector<8x8x8xf32>
    %138 = tpu.matmul %129, %131, %cst_88 {dimension_numbers = #tpu.dot_dimension_numbers<[2], [2], [1], [1], [0, 0, 0, 1, 1, 1], [0], [0]>} : vector<8x8x32xbf16>, vector<8x8x32xbf16>, vector<8x8x8xf32> -> vector<8x8x8xf32>
    "tpu.trace_stop"() : () -> ()
    %c3_89 = arith.constant 3 : index
    %c0_90 = arith.constant 0 : index
    %c0_91 = arith.constant 0 : index
    %c0_92 = arith.constant 0 : index
    %139 = vector.load %arg2[%c3_89, %c0_90, %c0_91, %c0_92] : memref<6x8x1x8xf32, #tpu.memory_space<vmem>>, vector<1x8x1x8xf32>
    %140 = vector.shape_cast %139 : vector<1x8x1x8xf32> to vector<8x1x8xf32>
    %141 = vector.broadcast %140 : vector<8x1x8xf32> to vector<8x8x8xf32>
    %142 = arith.addf %138, %141 : vector<8x8x8xf32>
    "tpu.trace_start"() <{level = 10 : i32, message = "nld,nkd->nlk"}> : () -> ()
    %cst_93 = arith.constant dense<0.000000e+00> : vector<8x8x8xf32>
    %143 = tpu.matmul %129, %133, %cst_93 {dimension_numbers = #tpu.dot_dimension_numbers<[2], [2], [1], [1], [0, 0, 0, 1, 1, 1], [0], [0]>} : vector<8x8x32xbf16>, vector<8x8x32xbf16>, vector<8x8x8xf32> -> vector<8x8x8xf32>
    "tpu.trace_stop"() : () -> ()
    %c4_94 = arith.constant 4 : index
    %c0_95 = arith.constant 0 : index
    %c0_96 = arith.constant 0 : index
    %c0_97 = arith.constant 0 : index
    %144 = vector.load %arg2[%c4_94, %c0_95, %c0_96, %c0_97] : memref<6x8x1x8xf32, #tpu.memory_space<vmem>>, vector<1x8x1x8xf32>
    %145 = vector.shape_cast %144 : vector<1x8x1x8xf32> to vector<8x1x8xf32>
    %146 = vector.broadcast %145 : vector<8x1x8xf32> to vector<8x8x8xf32>
    %147 = arith.addf %143, %146 : vector<8x8x8xf32>
    "tpu.trace_start"() <{level = 10 : i32, message = "nld,nkd->nlk"}> : () -> ()
    %cst_98 = arith.constant dense<0.000000e+00> : vector<8x8x8xf32>
    %148 = tpu.matmul %129, %135, %cst_98 {dimension_numbers = #tpu.dot_dimension_numbers<[2], [2], [1], [1], [0, 0, 0, 1, 1, 1], [0], [0]>} : vector<8x8x32xbf16>, vector<8x8x32xbf16>, vector<8x8x8xf32> -> vector<8x8x8xf32>
    "tpu.trace_stop"() : () -> ()
    %c5_99 = arith.constant 5 : index
    %c0_100 = arith.constant 0 : index
    %c0_101 = arith.constant 0 : index
    %c0_102 = arith.constant 0 : index
    %149 = vector.load %arg2[%c5_99, %c0_100, %c0_101, %c0_102] : memref<6x8x1x8xf32, #tpu.memory_space<vmem>>, vector<1x8x1x8xf32>
    %150 = vector.shape_cast %149 : vector<1x8x1x8xf32> to vector<8x1x8xf32>
    %151 = vector.broadcast %150 : vector<8x1x8xf32> to vector<8x8x8xf32>
    %152 = arith.addf %148, %151 : vector<8x8x8xf32>
    %153 = arith.truncf %142 : vector<8x8x8xf32> to vector<8x8x8xbf16>
    %154 = arith.truncf %147 : vector<8x8x8xf32> to vector<8x8x8xbf16>
    "tpu.trace_start"() <{level = 10 : i32, message = "nqd,nkd->nqk"}> : () -> ()
    %cst_103 = arith.constant dense<0.000000e+00> : vector<8x8x8xf32>
    %155 = tpu.matmul %153, %154, %cst_103 {dimension_numbers = #tpu.dot_dimension_numbers<[2], [2], [1], [1], [0, 0, 0, 1, 1, 1], [0], [0]>} : vector<8x8x8xbf16>, vector<8x8x8xbf16>, vector<8x8x8xf32> -> vector<8x8x8xf32>
    "tpu.trace_stop"() : () -> ()
    %cst_104 = arith.constant 0.353553385 : f32
    %156 = vector.broadcast %cst_104 : f32 to vector<8x8x8xf32>
    %157 = arith.mulf %155, %156 : vector<8x8x8xf32>
    %cst_105 = arith.constant dense<0xFF800000> : vector<8x8xf32>
    %158 = vector.multi_reduction <maximumf>, %157, %cst_105 [2] : vector<8x8x8xf32> to vector<8x8xf32>
    %159 = vector.shape_cast %158 : vector<8x8xf32> to vector<8x8x1xf32>
    %160 = vector.broadcast %159 : vector<8x8x1xf32> to vector<8x8x8xf32>
    %161 = arith.subf %157, %160 : vector<8x8x8xf32>
    %162 = math.exp %161 : vector<8x8x8xf32>
    %cst_106 = arith.constant dense<0.000000e+00> : vector<8x8xf32>
    %163 = vector.multi_reduction <add>, %162, %cst_106 [2] : vector<8x8x8xf32> to vector<8x8xf32>
    %164 = vector.shape_cast %163 : vector<8x8xf32> to vector<8x8x1xf32>
    %165 = tpu.reciprocal %164 {approx = true} : vector<8x8x1xf32> -> vector<8x8x1xf32>
    %166 = vector.broadcast %165 : vector<8x8x1xf32> to vector<8x8x8xf32>
    %167 = arith.mulf %162, %166 : vector<8x8x8xf32>
    %168 = vector.shape_cast %167 : vector<8x8x8xf32> to vector<8x64xf32>
    %169 = arith.truncf %167 : vector<8x8x8xf32> to vector<8x8x8xbf16>
    %170 = arith.truncf %152 : vector<8x8x8xf32> to vector<8x8x8xbf16>
    "tpu.trace_start"() <{level = 10 : i32, message = "nqk,nkd->nqd"}> : () -> ()
    %cst_107 = arith.constant dense<0.000000e+00> : vector<8x8x8xf32>
    %171 = tpu.matmul %169, %170, %cst_107 {dimension_numbers = #tpu.dot_dimension_numbers<[2], [1], [1], [2], [0, 0, 0, 1, 1, 2], [0], [0]>} : vector<8x8x8xbf16>, vector<8x8x8xbf16>, vector<8x8x8xf32> -> vector<8x8x8xf32>
    "tpu.trace_stop"() : () -> ()
    %172 = arith.truncf %171 : vector<8x8x8xf32> to vector<8x8x8xbf16>
    "tpu.trace_start"() <{level = 10 : i32, message = "nlk,nkd->nld"}> : () -> ()
    %cst_108 = arith.constant dense<0.000000e+00> : vector<8x8x32xf32>
    %173 = tpu.matmul %172, %137, %cst_108 {dimension_numbers = #tpu.dot_dimension_numbers<[2], [1], [1], [2], [0, 0, 0, 1, 1, 2], [0], [0]>} : vector<8x8x8xbf16>, vector<8x8x32xbf16>, vector<8x8x32xf32> -> vector<8x8x32xf32>
    "tpu.trace_stop"() : () -> ()
    %174 = vector.shape_cast %173 : vector<8x8x32xf32> to vector<2x4x8x32xf32>
    %cst_109 = arith.constant dense<0.000000e+00> : vector<2x8x32xf32>
    %175 = vector.multi_reduction <add>, %174, %cst_109 [1] : vector<2x4x8x32xf32> to vector<2x8x32xf32>
    %176 = vector.shape_cast %175 : vector<2x8x32xf32> to vector<16x32xf32>
    %177 = vector.broadcast %118 : vector<1x32xf32> to vector<16x32xf32>
    %178 = arith.addf %176, %177 : vector<16x32xf32>
    %179 = arith.addf %117, %178 : vector<16x32xf32>
    %cst_110 = arith.constant dense<0.000000e+00> : vector<16xf32>
    %180 = vector.multi_reduction <add>, %179, %cst_110 [1] : vector<16x32xf32> to vector<16xf32>
    %181 = vector.shape_cast %180 : vector<16xf32> to vector<16x1xf32>
    %cst_111 = arith.constant 3.200000e+01 : f32
    %182 = vector.broadcast %cst_111 : f32 to vector<16x1xf32>
    %183 = arith.divf %181, %182 : vector<16x1xf32>
    %184 = vector.broadcast %183 : vector<16x1xf32> to vector<16x32xf32>
    %185 = arith.subf %179, %184 : vector<16x32xf32>
    %186 = arith.mulf %185, %185 : vector<16x32xf32>
    %cst_112 = arith.constant dense<0.000000e+00> : vector<16xf32>
    %187 = vector.multi_reduction <add>, %186, %cst_112 [1] : vector<16x32xf32> to vector<16xf32>
    %188 = vector.shape_cast %187 : vector<16xf32> to vector<16x1xf32>
    %cst_113 = arith.constant 3.200000e+01 : f32
    %189 = vector.broadcast %cst_113 : f32 to vector<16x1xf32>
    %190 = arith.divf %188, %189 : vector<16x1xf32>
    %cst_114 = arith.constant 9.99999974E-6 : f32
    %191 = vector.broadcast %cst_114 : f32 to vector<16x1xf32>
    %192 = arith.addf %190, %191 : vector<16x1xf32>
    %193 = math.rsqrt %192 : vector<16x1xf32>
    %194 = vector.broadcast %193 : vector<16x1xf32> to vector<16x32xf32>
    %195 = arith.mulf %185, %194 : vector<16x32xf32>
    %196 = vector.broadcast %119 : vector<1x32xf32> to vector<16x32xf32>
    %197 = arith.mulf %195, %196 : vector<16x32xf32>
    %198 = vector.broadcast %120 : vector<1x32xf32> to vector<16x32xf32>
    %199 = arith.addf %197, %198 : vector<16x32xf32>
    %c2_115 = arith.constant 2 : index
    %c0_116 = arith.constant 0 : index
    %c0_117 = arith.constant 0 : index
    %200 = vector.load %arg3[%c2_115, %c0_116, %c0_117] : memref<4x32x64xbf16, #tpu.memory_space<vmem>>, vector<1x32x64xbf16>
    %201 = vector.shape_cast %200 : vector<1x32x64xbf16> to vector<32x64xbf16>
    %c3_118 = arith.constant 3 : index
    %c0_119 = arith.constant 0 : index
    %c0_120 = arith.constant 0 : index
    %202 = vector.load %arg3[%c3_118, %c0_119, %c0_120] : memref<4x32x64xbf16, #tpu.memory_space<vmem>>, vector<1x32x64xbf16>
    %203 = vector.shape_cast %202 : vector<1x32x64xbf16> to vector<32x64xbf16>
    %204 = arith.truncf %199 : vector<16x32xf32> to vector<16x32xbf16>
    %cst_121 = arith.constant dense<0.000000e+00> : vector<16x64xf32>
    %205 = tpu.matmul %204, %201, %cst_121 {dimension_numbers = #tpu.dot_dimension_numbers<[1], [0], [0], [1], [0, 0, 1, 1], [], []>} : vector<16x32xbf16>, vector<32x64xbf16>, vector<16x64xf32> -> vector<16x64xf32>
    %206 = vector.broadcast %121 : vector<1x64xf32> to vector<16x64xf32>
    %207 = arith.addf %205, %206 : vector<16x64xf32>
    %cst_122 = arith.constant 0.000000e+00 : f32
    %208 = vector.broadcast %cst_122 : f32 to vector<16x64xf32>
    %209 = arith.maximumf %207, %208 : vector<16x64xf32>
    %210 = arith.truncf %209 : vector<16x64xf32> to vector<16x64xbf16>
    %cst_123 = arith.constant dense<0.000000e+00> : vector<16x32xf32>
    %211 = tpu.matmul %210, %203, %cst_123 {dimension_numbers = #tpu.dot_dimension_numbers<[1], [1], [0], [0], [0, 0, 1, 0], [], []>} : vector<16x64xbf16>, vector<32x64xbf16>, vector<16x32xf32> -> vector<16x32xf32>
    %212 = vector.broadcast %122 : vector<1x32xf32> to vector<16x32xf32>
    %213 = arith.addf %211, %212 : vector<16x32xf32>
    %214 = arith.addf %199, %213 : vector<16x32xf32>
    %cst_124 = arith.constant dense<0.000000e+00> : vector<16xf32>
    %215 = vector.multi_reduction <add>, %214, %cst_124 [1] : vector<16x32xf32> to vector<16xf32>
    %216 = vector.shape_cast %215 : vector<16xf32> to vector<16x1xf32>
    %cst_125 = arith.constant 3.200000e+01 : f32
    %217 = vector.broadcast %cst_125 : f32 to vector<16x1xf32>
    %218 = arith.divf %216, %217 : vector<16x1xf32>
    %219 = vector.broadcast %218 : vector<16x1xf32> to vector<16x32xf32>
    %220 = arith.subf %214, %219 : vector<16x32xf32>
    %221 = arith.mulf %220, %220 : vector<16x32xf32>
    %cst_126 = arith.constant dense<0.000000e+00> : vector<16xf32>
    %222 = vector.multi_reduction <add>, %221, %cst_126 [1] : vector<16x32xf32> to vector<16xf32>
    %223 = vector.shape_cast %222 : vector<16xf32> to vector<16x1xf32>
    %cst_127 = arith.constant 3.200000e+01 : f32
    %224 = vector.broadcast %cst_127 : f32 to vector<16x1xf32>
    %225 = arith.divf %223, %224 : vector<16x1xf32>
    %cst_128 = arith.constant 9.99999974E-6 : f32
    %226 = vector.broadcast %cst_128 : f32 to vector<16x1xf32>
    %227 = arith.addf %225, %226 : vector<16x1xf32>
    %228 = math.rsqrt %227 : vector<16x1xf32>
    %229 = vector.broadcast %228 : vector<16x1xf32> to vector<16x32xf32>
    %230 = arith.mulf %220, %229 : vector<16x32xf32>
    %231 = vector.broadcast %123 : vector<1x32xf32> to vector<16x32xf32>
    %232 = arith.mulf %230, %231 : vector<16x32xf32>
    %233 = vector.broadcast %124 : vector<1x32xf32> to vector<16x32xf32>
    %234 = arith.addf %232, %233 : vector<16x32xf32>
    %c14 = arith.constant 14 : index
    %c0_129 = arith.constant 0 : index
    %235 = vector.load %arg4[%c14, %c0_129] : memref<16x64xf32, #tpu.memory_space<vmem>>, vector<1x32xf32>
    %c15 = arith.constant 15 : index
    %c0_130 = arith.constant 0 : index
    %236 = vector.load %arg4[%c15, %c0_130] : memref<16x64xf32, #tpu.memory_space<vmem>>, vector<1x32xf32>
    %cst_131 = arith.constant dense<0.000000e+00> : vector<16xf32>
    %237 = vector.multi_reduction <add>, %234, %cst_131 [1] : vector<16x32xf32> to vector<16xf32>
    %238 = vector.shape_cast %237 : vector<16xf32> to vector<16x1xf32>
    %cst_132 = arith.constant 3.200000e+01 : f32
    %239 = vector.broadcast %cst_132 : f32 to vector<16x1xf32>
    %240 = arith.divf %238, %239 : vector<16x1xf32>
    %241 = vector.broadcast %240 : vector<16x1xf32> to vector<16x32xf32>
    %242 = arith.subf %234, %241 : vector<16x32xf32>
    %243 = arith.mulf %242, %242 : vector<16x32xf32>
    %cst_133 = arith.constant dense<0.000000e+00> : vector<16xf32>
    %244 = vector.multi_reduction <add>, %243, %cst_133 [1] : vector<16x32xf32> to vector<16xf32>
    %245 = vector.shape_cast %244 : vector<16xf32> to vector<16x1xf32>
    %cst_134 = arith.constant 3.200000e+01 : f32
    %246 = vector.broadcast %cst_134 : f32 to vector<16x1xf32>
    %247 = arith.divf %245, %246 : vector<16x1xf32>
    %cst_135 = arith.constant 9.99999974E-6 : f32
    %248 = vector.broadcast %cst_135 : f32 to vector<16x1xf32>
    %249 = arith.addf %247, %248 : vector<16x1xf32>
    %250 = math.rsqrt %249 : vector<16x1xf32>
    %251 = vector.broadcast %250 : vector<16x1xf32> to vector<16x32xf32>
    %252 = arith.mulf %242, %251 : vector<16x32xf32>
    %253 = vector.broadcast %235 : vector<1x32xf32> to vector<16x32xf32>
    %254 = arith.mulf %252, %253 : vector<16x32xf32>
    %255 = vector.broadcast %236 : vector<1x32xf32> to vector<16x32xf32>
    %256 = arith.addf %254, %255 : vector<16x32xf32>
    %c0_136 = arith.constant 0 : index
    %c0_137 = arith.constant 0 : index
    %257 = vector.load %arg5[%c0_136, %c0_137] : memref<16x32xf32, #tpu.memory_space<vmem>>, vector<16x32xf32>
    tpu.vector_store %arg5[%c0_136, %c0_137], %256 {strides = array<i32>} : memref<16x32xf32, #tpu.memory_space<vmem>>, vector<16x32xf32>,
    %258 = tpu.concatenate %51, %168 in 1 : vector<8x64xf32>, vector<8x64xf32> -> vector<8x128xf32>
    %c0_138 = arith.constant 0 : index
    %c0_139 = arith.constant 0 : index
    %259 = vector.load %arg6[%c0_138, %c0_139] : memref<8x128xf32, #tpu.memory_space<vmem>>, vector<8x128xf32>
    tpu.vector_store %arg6[%c0_138, %c0_139], %258 {strides = array<i32>} : memref<8x128xf32, #tpu.memory_space<vmem>>, vector<8x128xf32>,
    return
  }
}

</mosaic_0001>

<bundles_post_ra>
// kernel: encoder_forward.1
= control target key start
LH: loop header
LB: loop body
LE: loop exit
PB: predicated region body
PF: predicated region fallthrough
CT: control target
= control target key end

     0   :  { %12 = vsyncpa [#allocation3], 0  ;;  %s8259_s0 = inlined_call_operand.hbm [shape: f32[16,32], index: 0, kind: input, shape index: {}]   ;;  %s8260_s1 = inlined_call_operand.hbm [shape: bf16[8,8,8,32], index: 1, kind: input, shape index: {}]   ;;  %s8261_s2 = inlined_call_operand.hbm [shape: f32[6,8,1,8], index: 2, kind: input, shape index: {}]   ;;  %s8262_s3 = inlined_call_operand.hbm [shape: bf16[4,32,64], index: 3, kind: input, shape index: {}]   ;;  %s8263_s4 = inlined_call_operand.hbm [shape: f32[16,64], index: 4, kind: input, shape index: {}]   ;;  %s8264_s5 = inlined_call_operand.hbm [shape: f32[16,32], index: 5, kind: output, shape index: {0}]   ;;  %s8265_s6 = inlined_call_operand.vmem [shape: f32[8,128], index: 6, kind: output, shape index: {1}]  }
   0x1   :  { %13 = vsyncpa [#allocation6], 0 }
   0x2   :  { %14 = vsyncpa [#allocation9], 0 }
   0x3   :  { %15 = vsyncpa [#allocation4], 0  ;;  %s7205_s21 = smov [#allocation5]  }
   0x4   :  { %s33_s22 = sshll.u32 %s7205_s21, 4  ;;  %s34_s22 = int_to_ptr.vmem [resolvable:$true] %s33_s22 }
   0x5   :  { %s7085_s23 = scalar_lea.vmem %s34_s22, 4096  ;;  %p7090_p1 = scmp.lt.s32.totalorder %s34_s22, %s34_s22 }
   0x6   :  { %p7086_p0 = scmp.ne.s32.totalorder %s34_s22, %s7085_s23  ;;  %p7091_p2 = scmp.lt.s32.totalorder %s7085_s23, %s7085_s23 }
   0x8   :  { %p7092_p3 = por %p7091_p2, %p7090_p1 }
   0xa   :  { %p7093_p4 = pnand %p7092_p3, %p7086_p0 }
   0xc   :  { %7096 = shalt.err (!%p7093_p4)
}
   0xd   :  { %s7206_s24 = smov 64   ;;  %s7207_s25 = smov 4  }
   0xe   :  { %39 = dma.hbm_to_vmem [thread:$0]  %s8260_s1, 4096, %s34_s22, [#allocation6], %s7206_s24, %s7206_s24, %s7207_s25  }
   0xf   :  { %s7208_s28 = smov [#allocation8]   ;;  %s7209_s30 = smov [#allocation2]  }
  0x10   :  { %s57_s29 = sshll.u32 %s7208_s28, 4  ;;  %s21_s7 = sshll.u32 %s7209_s30, 4  ;;  %s58_s29 = int_to_ptr.vmem [resolvable:$true] %s57_s29  ;;  %s22_s7 = int_to_ptr.vmem [resolvable:$true] %s21_s7 }
  0x11   :  { %s7105_s8 = scalar_lea.vmem %s58_s29, 1024  ;;  %p7110_p6 = scmp.lt.s32.totalorder %s58_s29, %s58_s29 }
  0x12   :  { %p7106_p5 = scmp.ne.s32.totalorder %s58_s29, %s7105_s8  ;;  %p7111_p7 = scmp.lt.s32.totalorder %s7105_s8, %s7105_s8 }
  0x14   :  { %p7112_p8 = por %p7111_p7, %p7110_p6 }
  0x16   :  { %p7113_p9 = pnand %p7112_p8, %p7106_p5 }
  0x18   :  { %7116 = shalt.err (!%p7113_p9)
}
  0x19   :  { %63 = dma.hbm_to_vmem [thread:$0]  %s8262_s3, 1024, %s58_s29, [#allocation9], %s7206_s24, %s7206_s24, %s7207_s25  }
  0x1a   :  { %s7125_s1 = scalar_lea.vmem %s22_s7, 256  ;;  %p7130_p11 = scmp.lt.s32.totalorder %s22_s7, %s22_s7 }
  0x1b   :  { %p7126_p10 = scmp.ne.s32.totalorder %s22_s7, %s7125_s1  ;;  %p7131_p12 = scmp.lt.s32.totalorder %s7125_s1, %s7125_s1 }
  0x1d   :  { %p7132_p13 = por %p7131_p12, %p7130_p11 }
  0x1f   :  { %p7133_p0 = pnand %p7132_p13, %p7126_p10 }
  0x21   :  { %7136 = shalt.err (!%p7133_p0)
}
  0x22   :  { %s7210_s11 = smov 128   ;;  %s7211_s12 = smov 8  }
  0x23   :  { %27 = dma.hbm_to_vmem [thread:$0]  %s8259_s0, 256, %s22_s7, [#allocation3], %s7210_s11, %s7210_s11, %s7211_s12  }
  0x24   :  { %s7212_s15 = smov [#allocation7]  }
  0x25   :  { %s45_s16 = sshll.u32 %s7212_s15, 4  ;;  %s46_s16 = int_to_ptr.vmem [resolvable:$true] %s45_s16 }
  0x26   :  { %s7145_s3 = scalar_lea.vmem %s46_s16, 768  ;;  %p7150_p2 = scmp.lt.s32.totalorder %s46_s16, %s46_s16 }
  0x27   :  { %p7146_p1 = scmp.ne.s32.totalorder %s46_s16, %s7145_s3  ;;  %p7151_p3 = scmp.lt.s32.totalorder %s7145_s3, %s7145_s3 }
  0x29   :  { %p7152_p4 = por %p7151_p3, %p7150_p2 }
  0x2b   :  { %p7153_p5 = pnand %p7152_p4, %p7146_p1 }
  0x2d   :  { %7156 = shalt.err (!%p7153_p5)
}
  0x2e   :  { %s7213_s17 = smov 16   ;;  %s7214_s18 = smov 1  }
  0x2f   :  { %51 = dma.hbm_to_vmem [thread:$0]  %s8261_s2, 768, %s46_s16, [#allocation6], %s7213_s17, %s7213_s17, %s7214_s18  }
  0x30   :  { %s7215_s21 = smov [#allocation10]  }
  0x31   :  { %s69_s0 = sshll.u32 %s7215_s21, 4  ;;  %s70_s0 = int_to_ptr.vmem [resolvable:$true] %s69_s0 }
  0x32   :  { %s7165_s22 = scalar_lea.vmem %s70_s0, 256  ;;  %p7170_p7 = scmp.lt.s32.totalorder %s70_s0, %s70_s0 }
  0x33   :  { %p7166_p6 = scmp.ne.s32.totalorder %s70_s0, %s7165_s22  ;;  %p7171_p8 = scmp.lt.s32.totalorder %s7165_s22, %s7165_s22 }
  0x35   :  { %p7172_p9 = por %p7171_p8, %p7170_p7 }
  0x37   :  { %p7173_p10 = pnand %p7172_p9, %p7166_p6 }
  0x39   :  { %7176 = shalt.err (!%p7173_p10)
}
  0x3a   :  { %75 = dma.hbm_to_vmem [thread:$0]  %s8263_s4, 256, %s70_s0, [#allocation9], %s7210_s11, %s7210_s11, %s7211_s12  }
  0x3b   :  { %7197 = dma.done.wait [#allocation3], 256  }
  0x3c   :  { %7198 = vsyncadd [#allocation3], 4294967040 }
  0x3d   :  { %7199 = dma.done.wait [#allocation6], 4864  }
  0x3e   :  { %7200 = vsyncadd [#allocation6], 4294962432 }
  0x3f   :  { %7201 = dma.done.wait [#allocation9], 1280  }
  0x40   :  { %7202 = vsyncadd [#allocation9], 4294966016  ;;  %v7216_v0 = vmov 0.0   ;;  %vm7217_vm0 = vmmov 0   ;;  %vm194_vm1 = vcmask 261120   ;;  %v92_v5 = vld [vmem:[#allocation2] sm:$0xff] }
  0x41   :  { %6354 = vmatprep.subr.bf16.mxu1 %v7216_v0  ;;  %6366 = vmatprep.subr.bf16.mxu0 %v7216_v0  ;;  %v103_v1 = vld [vmem:[#allocation5] sm:$0xf]  ;;  %v105_v2 = vld [vmem:[#allocation5 + $0x8] sm:$0xf]  ;;  %v104_v6 = vld [vmem:[#allocation5 + $0x4] sm:$0xf]  ;;  %v7298_v8 = vpack.c.bf16 %v92_v5, %v92_v5 }
  0x42   :  { %6356 = vmatprep.mubr.msk.bf16.mxu1 %vm7217_vm0, %v7216_v0  ;;  %6368 = vmatprep.mubr.msk.bf16.mxu0 %vm7217_vm0, %v7216_v0  ;;  %v199_v3 = vsel %vm194_vm1, %v103_v1, 0  ;;  %v285_v4 = vsel %vm194_vm1, %v105_v2, 0  ;;  %v107_v7 = vld [vmem:[#allocation5 + $0x10] sm:$0xf]  ;;  %v242_v9 = vsel %vm194_vm1, %v104_v6, 0  ;;  %v93_v11 = vld [vmem:[#allocation2 + $0x8] sm:$0xff] }
  0x43   :  { %6355 = vmatpush3.bf16.xpose.msra.mxu1 %v199_v3  ;;  %6367 = vmatpush3.bf16.xpose.msra.mxu0 %v285_v4  ;;  %v374_v10 = vsel %vm194_vm1, %v107_v7, 0  ;;  %v106_v12 = vld [vmem:[#allocation5 + $0xc] sm:$0xf]  ;;  %v109_v13 = vld [vmem:[#allocation5 + $0x18] sm:$0xf]  ;;  %v7312_v14 = vpack.c.bf16 %v93_v11, %v93_v11  ;;  %vm1363_vm2 = vcmask 64512  }
  0x44   :  { %6360 = vmatprep.subr.bf16.mxu1 %v7216_v0  ;;  %6378 = vmatprep.subr.bf16.mxu0 %v7216_v0  ;;  %v328_v15 = vsel %vm194_vm1, %v106_v12, 0  ;;  %v460_v16 = vsel %vm194_vm1, %v109_v13, 0  ;;  %v108_v17 = vld [vmem:[#allocation5 + $0x14] sm:$0xf]  ;;  %v112_v18 = vld [vmem:[#allocation5 + $0x20] sm:$0xf] }
  0x45   :  { %v417_v19 = vsel %vm194_vm1, %v108_v17, 0  ;;  %v603_v20 = vsel %vm194_vm1, %v112_v18, 0  ;;  %v110_v21 = vld [vmem:[#allocation5 + $0x1c] sm:$0xf]  ;;  %v114_v22 = vld [vmem:[#allocation5 + $0x28] sm:$0xf] }
  0x46   :  { %v503_v23 = vsel %vm194_vm1, %v110_v21, 0  ;;  %v689_v24 = vsel %vm194_vm1, %v114_v22, 0  ;;  %v113_v25 = vld [vmem:[#allocation5 + $0x24] sm:$0xf]  ;;  %v116_v26 = vld [vmem:[#allocation5 + $0x30] sm:$0xf] }
  0x47   :  { %v646_v27 = vsel %vm194_vm1, %v113_v25, 0  ;;  %v775_v28 = vsel %vm194_vm1, %v116_v26, 0  ;;  %v115_v29 = vld [vmem:[#allocation5 + $0x2c] sm:$0xf]  ;;  %v118_v30 = vld [vmem:[#allocation5 + $0x38] sm:$0xf] }
  0x48   :  { %v732_v31 = vsel %vm194_vm1, %v115_v29, 0  ;;  %v861_v32 = vsel %vm194_vm1, %v118_v30, 0  ;;  %v117_v33 = vld [vmem:[#allocation5 + $0x34] sm:$0xf]  ;;  %v121_v34 = vld [vmem:[#allocation5 + $0x40] sm:$0xf] }
  0x49   :  { %v818_v35 = vsel %vm194_vm1, %v117_v33, 0  ;;  %v1004_v36 = vsel %vm194_vm1, %v121_v34, 0  ;;  %v119_v37 = vld [vmem:[#allocation5 + $0x3c] sm:$0xf]  ;;  %v123_v39 = vld [vmem:[#allocation5 + $0x48] sm:$0xf] }
  0x4a   :  { %6357 = vmatmul.mubr.msk.bf16.vlgmr.msra.gmra.mxu1 %vm194_vm1, %v7298_v8  ;;  %6369 = vmatmul.mubr.msk.bf16.vlgmr.msra.gmra.mxu0 %vm194_vm1, %v7298_v8  ;;  %v904_v38 = vsel %vm194_vm1, %v119_v37, 0  ;;  %v1090_v40 = vsel %vm194_vm1, %v123_v39, 0  ;;  %v122_v41 = vld [vmem:[#allocation5 + $0x44] sm:$0xf]  ;;  %v125_v43 = vld [vmem:[#allocation5 + $0x50] sm:$0xf] }
  0x4b   :  { %6361 = vmatpush3.bf16.xpose.msra.mxu1 %v242_v9  ;;  %6379 = vmatpush3.bf16.xpose.msra.mxu0 %v374_v10  ;;  %v1047_v42 = vsel %vm194_vm1, %v122_v41, 0  ;;  %v1176_v44 = vsel %vm194_vm1, %v125_v43, 0  ;;  %v124_v45 = vld [vmem:[#allocation5 + $0x4c] sm:$0xf]  ;;  %v127_v47 = vld [vmem:[#allocation5 + $0x58] sm:$0xf] }
  0x4c   :  { %6362 = vmatprep.mubr.msk.bf16.mxu1 %vm7217_vm0, %v7216_v0  ;;  %6380 = vmatprep.mubr.msk.bf16.mxu0 %vm7217_vm0, %v7216_v0  ;;  %v1133_v46 = vsel %vm194_vm1, %v124_v45, 0  ;;  %v1262_v48 = vsel %vm194_vm1, %v127_v47, 0  ;;  %v126_v49 = vld [vmem:[#allocation5 + $0x54] sm:$0xf]  ;;  %v128_v51 = vld [vmem:[#allocation5 + $0x5c] sm:$0xf] }
  0x4d   :  { %6372 = vmatprep.subr.bf16.mxu1 %v7216_v0  ;;  %6390 = vmatprep.subr.bf16.mxu0 %v7216_v0  ;;  %v1219_v50 = vsel %vm194_vm1, %v126_v49, 0  ;;  %v1305_v52 = vsel %vm194_vm1, %v128_v51, 0  ;;  %v5978_v21 = vld [vmem:[#allocation7] ss:$0 sm:$0xff]  ;;  %v5998_v43 = vld [vmem:[#allocation7 + $0xc] ss:$0 sm:$0xff] }
  0x4e   :  { %vm2023_vm3 = vcmask 1043456   ;;  %vm2913_vm4 = vcmask 523264   ;;  %s7220_s2 = smov 24   ;;  %s7221_s4 = smov 40   ;;  %vm1993_vm5 = vcmask 130048   ;;  %vm1995_vm6 = vcmask 195584  }
  0x4f   :  { %s7222_s26 = smov 32   ;;  %s7223_s27 = smov 56   ;;  %vm1998_vm7 = vcmask 326656   ;;  %vm2000_vm8 = vcmask 392192   ;;  %vm2002_vm9 = vcmask 457728  }
  0x50   :  { %s7224_s28 = smov 48   ;;  %s7225_s30 = smov [#allocation11]  }
  0x51   :  { %s5960_s7 = sshll.u32 %s7225_s30, 4  ;;  %s5961_s7 = int_to_ptr.vmem [resolvable:$true] %s5960_s7 }
  0x52   :  { %6363 = vmatmul.mubr.msk.bf16.vlgmr.msra.gmra.mxu1 %vm194_vm1, %v7298_v8  ;;  %6381 = vmatmul.mubr.msk.bf16.vlgmr.msra.gmra.mxu0 %vm194_vm1, %v7312_v14  ;;  %s7177_s8 = scalar_lea.vmem %s5961_s7, 256  ;;  %p7182_p12 = scmp.lt.s32.totalorder %s5961_s7, %s5961_s7 }
  0x53   :  { %6373 = vmatpush3.bf16.xpose.msra.mxu1 %v328_v15  ;;  %6391 = vmatpush3.bf16.xpose.msra.mxu0 %v460_v16  ;;  %p7178_p11 = scmp.ne.s32.totalorder %s5961_s7, %s7177_s8  ;;  %p7183_p13 = scmp.lt.s32.totalorder %s7177_s8, %s7177_s8 }
  0x54   :  { %6374 = vmatprep.mubr.msk.bf16.mxu1 %vm7217_vm0, %v7216_v0  ;;  %6392 = vmatprep.mubr.msk.bf16.mxu0 %vm7217_vm0, %v7216_v0 }
  0x55   :  { %6384 = vmatprep.subr.bf16.mxu1 %v7216_v0  ;;  %6402 = vmatprep.subr.bf16.mxu0 %v7216_v0  ;;  %p7184_p0 = por %p7183_p13, %p7182_p12 }
  0x57   :  { %p7185_p1 = pnand %p7184_p0, %p7178_p11 }
  0x5a   :  { %6375 = vmatmul.mubr.msk.bf16.vlgmr.msra.gmra.mxu1 %vm194_vm1, %v7298_v8  ;;  %6393 = vmatmul.mubr.msk.bf16.vlgmr.msra.gmra.mxu0 %vm194_vm1, %v7312_v14 }
  0x5b   :  { %6385 = vmatpush3.bf16.xpose.msra.mxu1 %v417_v19  ;;  %6403 = vmatpush3.bf16.xpose.msra.mxu0 %v603_v20 }
  0x5c   :  { %6386 = vmatprep.mubr.msk.bf16.mxu1 %vm7217_vm0, %v7216_v0  ;;  %6404 = vmatprep.mubr.msk.bf16.mxu0 %vm7217_vm0, %v7216_v0 }
  0x5d   :  { %6396 = vmatprep.subr.bf16.mxu1 %v7216_v0  ;;  %6414 = vmatprep.subr.bf16.mxu0 %v7216_v0 }
  0x62   :  { %6387 = vmatmul.mubr.msk.bf16.vlgmr.msra.gmra.mxu1 %vm194_vm1, %v7312_v14  ;;  %6405 = vmatmul.mubr.msk.bf16.vlgmr.msra.gmra.mxu0 %vm194_vm1, %v7298_v8 }
  0x63   :  { %6397 = vmatpush3.bf16.xpose.msra.mxu1 %v503_v23  ;;  %6415 = vmatpush3.bf16.xpose.msra.mxu0 %v689_v24 }
  0x64   :  { %6398 = vmatprep.mubr.msk.bf16.mxu1 %vm7217_vm0, %v7216_v0  ;;  %6416 = vmatprep.mubr.msk.bf16.mxu0 %vm7217_vm0, %v7216_v0 }
  0x65   :  { %6408 = vmatprep.subr.bf16.mxu1 %v7216_v0  ;;  %6426 = vmatprep.subr.bf16.mxu0 %v7216_v0 }
  0x6a   :  { %6399 = vmatmul.mubr.msk.bf16.vlgmr.msra.gmra.mxu1 %vm194_vm1, %v7312_v14  ;;  %6417 = vmatmul.mubr.msk.bf16.vlgmr.msra.gmra.mxu0 %vm194_vm1, %v7298_v8 }
  0x6b   :  { %6409 = vmatpush3.bf16.xpose.msra.mxu1 %v646_v27  ;;  %6427 = vmatpush3.bf16.xpose.msra.mxu0 %v775_v28  ;;  %v5996_v27 = vld [vmem:[#allocation7 + $0xa] ss:$0 sm:$0xff] }
  0x6c   :  { %6410 = vmatprep.mubr.msk.bf16.mxu1 %vm7217_vm0, %v7216_v0  ;;  %6428 = vmatprep.mubr.msk.bf16.mxu0 %vm7217_vm0, %v7216_v0 }
  0x6d   :  { %6420 = vmatprep.subr.bf16.mxu1 %v7216_v0  ;;  %6438 = vmatprep.subr.bf16.mxu0 %v7216_v0 }
  0x72   :  { %6411 = vmatmul.mubr.msk.bf16.vlgmr.msra.gmra.mxu1 %vm194_vm1, %v7298_v8  ;;  %6429 = vmatmul.mubr.msk.bf16.vlgmr.msra.gmra.mxu0 %vm194_vm1, %v7312_v14 }
  0x73   :  { %6421 = vmatpush3.bf16.xpose.msra.mxu1 %v732_v31  ;;  %6439 = vmatpush3.bf16.xpose.msra.mxu0 %v861_v32 }
  0x74   :  { %6422 = vmatprep.mubr.msk.bf16.mxu1 %vm7217_vm0, %v7216_v0  ;;  %6440 = vmatprep.mubr.msk.bf16.mxu0 %vm7217_vm0, %v7216_v0 }
  0x75   :  { %6432 = vmatprep.subr.bf16.mxu1 %v7216_v0  ;;  %6450 = vmatprep.subr.bf16.mxu0 %v7216_v0 }
  0x7a   :  { %6423 = vmatmul.mubr.msk.bf16.vlgmr.msra.gmra.mxu1 %vm194_vm1, %v7298_v8  ;;  %6441 = vmatmul.mubr.msk.bf16.vlgmr.msra.gmra.mxu0 %vm194_vm1, %v7312_v14 }
  0x7b   :  { %6433 = vmatpush3.bf16.xpose.msra.mxu1 %v818_v35  ;;  %6434 = vmatprep.mubr.msk.bf16.mxu1 %vm7217_vm0, %v7216_v0 }
  0x7c   :  { %6444 = vmatprep.subr.bf16.mxu1 %v7216_v0  ;;  %6451 = vmatpush3.bf16.xpose.msra.mxu0 %v1004_v36  ;;  %v5980_v36 = vld [vmem:[#allocation7 + $0x2] ss:$0 sm:$0xff] }
  0x7d   :  { %6452 = vmatprep.mubr.msk.bf16.mxu0 %vm7217_vm0, %v7216_v0  ;;  %6462 = vmatprep.subr.bf16.mxu0 %v7216_v0 }
  0x82   :  { %6435 = vmatmul.mubr.msk.bf16.vlgmr.msra.gmra.mxu1 %vm194_vm1, %v7312_v14 }
  0x83   :  { %6445 = vmatpush3.bf16.xpose.msra.mxu1 %v904_v38  ;;  %6446 = vmatprep.mubr.msk.bf16.mxu1 %vm7217_vm0, %v7216_v0 }
  0x84   :  { %6453 = vmatmul.mubr.msk.bf16.vlgmr.msra.gmra.mxu0 %vm194_vm1, %v7298_v8  ;;  %6456 = vmatprep.subr.bf16.mxu1 %v7216_v0 }
  0x85   :  { %6464 = vmatprep.mubr.msk.bf16.mxu0 %vm7217_vm0, %v7216_v0  ;;  %6463 = vmatpush3.bf16.xpose.msra.mxu0 %v1090_v40 }
  0x86   :  { %6474 = vmatprep.subr.bf16.mxu0 %v7216_v0 }
  0x8a   :  { %6447 = vmatmul.mubr.msk.bf16.vlgmr.msra.gmra.mxu1 %vm194_vm1, %v7312_v14 }
  0x8b   :  { %6458 = vmatprep.mubr.msk.bf16.mxu1 %vm7217_vm0, %v7216_v0  ;;  %6457 = vmatpush3.bf16.xpose.msra.mxu1 %v1047_v42  ;;  %v5995_v42 = vld [vmem:[#allocation7 + $0x9] ss:$0 sm:$0xff] }
  0x8c   :  { %6468 = vmatprep.subr.bf16.mxu1 %v7216_v0  ;;  %6465 = vmatmul.mubr.msk.bf16.vlgmr.msra.gmra.mxu0 %vm194_vm1, %v7298_v8 }
  0x8d   :  { %6475 = vmatpush3.bf16.xpose.msra.mxu0 %v1176_v44  ;;  %6476 = vmatprep.mubr.msk.bf16.mxu0 %vm7217_vm0, %v7216_v0 }
  0x8e   :  { %6486 = vmatprep.subr.bf16.mxu0 %v7216_v0 }
  0x92   :  { %6459 = vmatmul.mubr.msk.bf16.vlgmr.msra.gmra.mxu1 %vm194_vm1, %v7298_v8 }
  0x93   :  { %6469 = vmatpush3.bf16.xpose.msra.mxu1 %v1133_v46  ;;  %6470 = vmatprep.mubr.msk.bf16.mxu1 %vm7217_vm0, %v7216_v0 }
  0x94   :  { %6480 = vmatprep.subr.bf16.mxu1 %v7216_v0  ;;  %6477 = vmatmul.mubr.msk.bf16.vlgmr.msra.gmra.mxu0 %vm194_vm1, %v7312_v14 }
  0x95   :  { %6487 = vmatpush3.bf16.xpose.msra.mxu0 %v1262_v48  ;;  %6488 = vmatprep.mubr.msk.bf16.mxu0 %vm7217_vm0, %v7216_v0 }
  0x96   :  { %6498 = vmatprep.subr.bf16.mxu0 %v7216_v0 }
  0x9a   :  { %6471 = vmatmul.mubr.msk.bf16.vlgmr.msra.gmra.mxu1 %vm194_vm1, %v7298_v8 }
  0x9b   :  { %6481 = vmatpush3.bf16.xpose.msra.mxu1 %v1219_v50  ;;  %6482 = vmatprep.mubr.msk.bf16.mxu1 %vm7217_vm0, %v7216_v0 }
  0x9c   :  { %6492 = vmatprep.subr.bf16.mxu1 %v7216_v0  ;;  %6489 = vmatmul.mubr.msk.bf16.vlgmr.msra.gmra.mxu0 %vm194_vm1, %v7312_v14 }
  0x9d   :  { %6500 = vmatprep.mubr.msk.bf16.mxu0 %vm7217_vm0, %v7216_v0 }
  0xa2   :  { %6483 = vmatmul.mubr.msk.bf16.vlgmr.msra.gmra.mxu1 %vm194_vm1, %v7312_v14 }
  0xa3   :  { %6493 = vmatpush3.bf16.xpose.msra.mxu1 %v1305_v52  ;;  %6494 = vmatprep.mubr.msk.bf16.mxu1 %vm7217_vm0, %v7216_v0 }
  0xa4   :  { %6504 = vmatprep.subr.bf16.mxu1 %v7216_v0 }
  0xaa   :  { %6495 = vmatmul.mubr.msk.bf16.vlgmr.msra.gmra.mxu1 %vm194_vm1, %v7312_v14  ;;  %v5994_v14 = vld [vmem:[#allocation7 + $0x8] ss:$0 sm:$0xff] }
  0xab   :  { %6506 = vmatprep.mubr.msk.bf16.mxu1 %vm7217_vm0, %v7216_v0 }
 0x10a   :  { %v235_v53 = vpop.f32.mrf.mxu1  ;;  %v321_v54 = vpop.f32.mrf.mxu0 }
 0x10b   :  { %v236_v28 = vadd.f32 %v5978_v21, %v235_v53  ;;  %v322_v44 = vadd.f32 %v5980_v36, %v321_v54 }
 0x10c   :  { %v6358_v55 = vpop.f32.mrf.mxu1  ;;  %v6370_v56 = vpop.f32.mrf.mxu0 }
 0x10d   :  { %v1347_v34 = vpack.c.bf16 %v236_v28, %v236_v28  ;;  %v1349_v51 = vpack.c.bf16 %v322_v44, %v322_v44  ;;  %v5979_v55 = vld [vmem:[#allocation7 + $0x1] ss:$0 sm:$0xff]  ;;  %v5982_v56 = vld [vmem:[#allocation7 + $0x4] ss:$0 sm:$0xff]  ;;  %v6010_v28 = vld [vmem:[#allocation7 + $0x10] ss:$0 sm:$0xff] }
 0x10e   :  { %v238_v57 = vpop.f32.mrf.mxu1  ;;  %v324_v58 = vpop.f32.mrf.mxu0 }
 0x110   :  { %v6359_v59 = vpop.f32.mrf.mxu1  ;;  %v6371_v60 = vpop.f32.mrf.mxu0 }
 0x112   :  { %v7442_v61 = vpop.f32.mrf.mxu1  ;;  %v7444_v62 = vpop.f32.mrf.mxu0 }
 0x114   :  { %v6364_v63 = vpop.f32.mrf.mxu1  ;;  %v6382_v1 = vpop.f32.mrf.mxu0 }
 0x115   :  { %v5997_v1 = vld [vmem:[#allocation7 + $0xb] ss:$0 sm:$0xff] }
 0x116   :  { %v281_v2 = vpop.f32.mrf.mxu1  ;;  %v413_v3 = vpop.f32.mrf.mxu0 }
 0x117   :  { %v6000_v2 = vld [vmem:[#allocation7 + $0xe] ss:$0 sm:$0xff]  ;;  %v279_v3 = vadd.f32 %v5979_v55, %v7442_v61  ;;  %v5981_v61 = vld [vmem:[#allocation7 + $0x3] ss:$0 sm:$0xff] }
 0x118   :  { %v6365_v4 = vpop.f32.mrf.mxu1  ;;  %v6383_v5 = vpop.f32.mrf.mxu0 }
 0x119   :  { %v411_v4 = vadd.f32 %v5982_v56, %v7444_v62 }
 0x11a   :  { %v7446_v6 = vpop.f32.mrf.mxu1  ;;  %v7448_v7 = vpop.f32.mrf.mxu0 }
 0x11c   :  { %v6376_v8 = vpop.f32.mrf.mxu1  ;;  %v6394_v9 = vpop.f32.mrf.mxu0 }
 0x11e   :  { %v367_v10 = vpop.f32.mrf.mxu1  ;;  %v499_v11 = vpop.f32.mrf.mxu0 }
 0x120   :  { %v6377_v12 = vpop.f32.mrf.mxu1  ;;  %v6395_v13 = vpop.f32.mrf.mxu0 }
 0x121   :  { %v1348_v13 = vpack.c.bf16 %v279_v3, %v279_v3 }
 0x122   :  { %v7450_v15 = vpop.f32.mrf.mxu1  ;;  %v639_v16 = vpop.f32.mrf.mxu0 }
 0x123   :  { %v640_v17 = vadd.f32 %v5994_v14, %v639_v16  ;;  %v1351_v14 = vpack.c.bf16 %v411_v4, %v411_v4 }
 0x124   :  { %v6388_v18 = vpop.f32.mrf.mxu1  ;;  %v6406_v19 = vpop.f32.mrf.mxu0 }
 0x125   :  { %v1355_v20 = vpack.c.bf16 %v640_v17, %v640_v17  ;;  %v5984_v18 = vld [vmem:[#allocation7 + $0x6] ss:$0 sm:$0xff] }
 0x126   :  { %v456_v22 = vpop.f32.mrf.mxu1  ;;  %v642_v23 = vpop.f32.mrf.mxu0 }
 0x127   :  { %v1368_v24 = vsel %vm1363_vm2, %v1355_v20, 0  ;;  %v5999_v23 = vld [vmem:[#allocation7 + $0xd] ss:$0 sm:$0xff] }
 0x128   :  { %v6389_v25 = vpop.f32.mrf.mxu1  ;;  %v6407_v26 = vpop.f32.mrf.mxu0  ;;  %6499 = vmatpush3.bf16.xpose.msra.mxu0 %v1368_v24 }
 0x129   :  { %6510 = vmatprep.subr.bf16.mxu0 %v7216_v0  ;;  %v365_v25 = vadd.f32 %v5981_v61, %v7446_v6  ;;  %v497_v26 = vadd.f32 %v5984_v18, %v7448_v7  ;;  %v5983_v7 = vld [vmem:[#allocation7 + $0x5] ss:$0 sm:$0xff] }
 0x12a   :  { %v7454_v29 = vpop.f32.mrf.mxu1  ;;  %v725_v30 = vpop.f32.mrf.mxu0 }
 0x12b   :  { %v726_v31 = vadd.f32 %v5996_v27, %v725_v30 }
 0x12c   :  { %v6400_v32 = vpop.f32.mrf.mxu1  ;;  %v6418_v33 = vpop.f32.mrf.mxu0 }
 0x12d   :  { %v1357_v35 = vpack.c.bf16 %v726_v31, %v726_v31  ;;  %v1350_v33 = vpack.c.bf16 %v365_v25, %v365_v25 }
 0x12e   :  { %v542_v37 = vpop.f32.mrf.mxu1  ;;  %v728_v38 = vpop.f32.mrf.mxu0 }
 0x12f   :  { %v1460_v39 = vsel %vm1363_vm2, %v1357_v35, 0  ;;  %6501 = vmatmul.mubr.msk.bf16.vlgmr.msra.gmra.mxu0 %vm1363_vm2, %v1347_v34  ;;  %v1353_v34 = vpack.c.bf16 %v497_v26, %v497_v26 }
 0x130   :  { %v6401_v40 = vpop.f32.mrf.mxu1  ;;  %v6419_v41 = vpop.f32.mrf.mxu0  ;;  %6511 = vmatpush3.bf16.xpose.msra.mxu0 %v1460_v39  ;;  %6512 = vmatprep.mubr.msk.bf16.mxu0 %vm7217_vm0, %v7216_v0 }
 0x131   :  { %6522 = vmatprep.subr.bf16.mxu0 %v7216_v0  ;;  %v6001_v41 = vld [vmem:[#allocation7 + $0xf] ss:$0 sm:$0xff] }
 0x132   :  { %v682_v45 = vpop.f32.mrf.mxu1  ;;  %v811_v46 = vpop.f32.mrf.mxu0 }
 0x133   :  { %v683_v47 = vadd.f32 %v5995_v42, %v682_v45  ;;  %v812_v48 = vadd.f32 %v5998_v43, %v811_v46  ;;  %v454_v43 = vadd.f32 %v5983_v7, %v7450_v15 }
 0x134   :  { %v6412_v49 = vpop.f32.mrf.mxu1  ;;  %v6430_v50 = vpop.f32.mrf.mxu0 }
 0x135   :  { %v1356_v52 = vpack.c.bf16 %v683_v47, %v683_v47  ;;  %v1359_v53 = vpack.c.bf16 %v812_v48, %v812_v48  ;;  %v1352_v49 = vpack.c.bf16 %v454_v43, %v454_v43 }
 0x136   :  { %v685_v57 = vpop.f32.mrf.mxu1  ;;  %v814_v58 = vpop.f32.mrf.mxu0 }
 0x137   :  { %v1414_v59 = vsel %vm1363_vm2, %v1356_v52, 0  ;;  %v1552_v60 = vsel %vm1363_vm2, %v1359_v53, 0  ;;  %6513 = vmatmul.mubr.msk.bf16.vlgmr.msra.gmra.mxu0 %vm1363_vm2, %v1349_v51  ;;  %v5985_v51 = vld [vmem:[#allocation7 + $0x7] ss:$0 sm:$0xff]  ;;  %v6011_v58 = vld [vmem:[#allocation7 + $0x11] ss:$0 sm:$0xff] }
 0x138   :  { %v6413_v54 = vpop.f32.mrf.mxu1  ;;  %v6431_v63 = vpop.f32.mrf.mxu0  ;;  %6505 = vmatpush3.bf16.xpose.msra.mxu1 %v1414_v59  ;;  %6523 = vmatpush3.bf16.xpose.msra.mxu0 %v1552_v60  ;;  %v540_v55 = vadd.f32 %v5985_v51, %v7454_v29 }
 0x139   :  { %6524 = vmatprep.mubr.msk.bf16.mxu0 %vm7217_vm0, %v7216_v0  ;;  %6516 = vmatprep.subr.bf16.mxu1 %v7216_v0 }
 0x13a   :  { %v768_v5 = vpop.f32.mrf.mxu1  ;;  %v897_v8 = vpop.f32.mrf.mxu0  ;;  %6534 = vmatprep.subr.bf16.mxu0 %v7216_v0  ;;  %v1354_v56 = vpack.c.bf16 %v540_v55, %v540_v55 }
 0x13b   :  { %v769_v9 = vadd.f32 %v5997_v1, %v768_v5  ;;  %v898_v10 = vadd.f32 %v6000_v2, %v897_v8 }
 0x13c   :  { %v6424_v11 = vpop.f32.mrf.mxu1  ;;  %v6442_v12 = vpop.f32.mrf.mxu0 }
 0x13d   :  { %v1358_v16 = vpack.c.bf16 %v769_v9, %v769_v9  ;;  %v1361_v17 = vpack.c.bf16 %v898_v10, %v898_v10 }
 0x13e   :  { %v771_v62 = vpop.f32.mrf.mxu1  ;;  %v900_v19 = vpop.f32.mrf.mxu0 }
 0x13f   :  { %v1506_v20 = vsel %vm1363_vm2, %v1358_v16, 0  ;;  %v1644_v21 = vsel %vm1363_vm2, %v1361_v17, 0  ;;  %6507 = vmatmul.mubr.msk.bf16.vlgmr.msra.gmra.mxu1 %vm1363_vm2, %v1348_v13  ;;  %6525 = vmatmul.mubr.msk.bf16.vlgmr.msra.gmra.mxu0 %vm1363_vm2, %v1351_v14 }
 0x140   :  { %v6425_v22 = vpop.f32.mrf.mxu1  ;;  %6517 = vmatpush3.bf16.xpose.msra.mxu1 %v1506_v20  ;;  %6535 = vmatpush3.bf16.xpose.msra.mxu0 %v1644_v21  ;;  %v6443_v24 = vpop.f32.mrf.mxu0 }
 0x141   :  { %6518 = vmatprep.mubr.msk.bf16.mxu1 %vm7217_vm0, %v7216_v0  ;;  %6536 = vmatprep.mubr.msk.bf16.mxu0 %vm7217_vm0, %v7216_v0 }
 0x142   :  { %v854_v27 = vpop.f32.mrf.mxu1  ;;  %6528 = vmatprep.subr.bf16.mxu1 %v7216_v0  ;;  %6546 = vmatprep.subr.bf16.mxu0 %v7216_v0 }
 0x143   :  { %v855_v30 = vadd.f32 %v5999_v23, %v854_v27 }
 0x144   :  { %v6436_v31 = vpop.f32.mrf.mxu1  ;;  %v1040_v32 = vpop.f32.mrf.mxu0 }
 0x145   :  { %v1360_v6 = vpack.c.bf16 %v855_v30, %v855_v30  ;;  %v1041_v35 = vadd.f32 %v6010_v28, %v1040_v32 }
 0x146   :  { %v857_v36 = vpop.f32.mrf.mxu1  ;;  %v6454_v37 = vpop.f32.mrf.mxu0 }
 0x147   :  { %v1598_v38 = vsel %vm1363_vm2, %v1360_v6, 0  ;;  %6519 = vmatmul.mubr.msk.bf16.vlgmr.msra.gmra.mxu1 %vm1363_vm2, %v1350_v33  ;;  %6537 = vmatmul.mubr.msk.bf16.vlgmr.msra.gmra.mxu0 %vm1363_vm2, %v1353_v34  ;;  %v2012_v39 = vpack.c.bf16 %v1041_v35, %v1041_v35 }
 0x148   :  { %v6437_v40 = vpop.f32.mrf.mxu1  ;;  %6529 = vmatpush3.bf16.xpose.msra.mxu1 %v1598_v38  ;;  %6530 = vmatprep.mubr.msk.bf16.mxu1 %vm7217_vm0, %v7216_v0  ;;  %v1043_v42 = vpop.f32.mrf.mxu0 }
 0x149   :  { %6540 = vmatprep.subr.bf16.mxu1 %v7216_v0  ;;  %v2025_v44 = vsel %vm2023_vm3, %v2012_v39, 0  ;;  %6548 = vmatprep.mubr.msk.bf16.mxu0 %vm7217_vm0, %v7216_v0 }
 0x14a   :  { %v940_v45 = vpop.f32.mrf.mxu1  ;;  %v6455_v46 = vpop.f32.mrf.mxu0  ;;  %6547 = vmatpush3.bf16.msra.mxu0 %v2025_v44 }
 0x14b   :  { %v941_v47 = vadd.f32 %v6001_v41, %v940_v45  ;;  %6558 = vmatprep.subr.bf16.mxu0 %v7216_v0 }
 0x14c   :  { %v6448_v48 = vpop.f32.mrf.mxu1  ;;  %v7500_v57 = vpop.f32.mrf.mxu0 }
 0x14d   :  { %v1362_v50 = vpack.c.bf16 %v941_v47, %v941_v47 }
 0x14e   :  { %v943_v52 = vpop.f32.mrf.mxu1  ;;  %v6466_v60 = vpop.f32.mrf.mxu0 }
 0x14f   :  { %v1690_v15 = vsel %vm1363_vm2, %v1362_v50, 0  ;;  %6531 = vmatmul.mubr.msk.bf16.vlgmr.msra.gmra.mxu1 %vm1363_vm2, %v1352_v49 }
 0x150   :  { %v6449_v53 = vpop.f32.mrf.mxu1  ;;  %6541 = vmatpush3.bf16.xpose.msra.mxu1 %v1690_v15  ;;  %6542 = vmatprep.mubr.msk.bf16.mxu1 %vm7217_vm0, %v7216_v0  ;;  %v1129_v1 = vpop.f32.mrf.mxu0 }
 0x151   :  { %6552 = vmatprep.subr.bf16.mxu1 %v7216_v0 }
 0x152   :  { %v1083_v59 = vpop.f32.mrf.mxu1  ;;  %v6467_v4 = vpop.f32.mrf.mxu0 }
 0x153   :  { %v1084_v54 = vadd.f32 %v6011_v58, %v1083_v59 }
 0x154   :  { %v6460_v63 = vpop.f32.mrf.mxu1  ;;  %v7505_v8 = vpop.f32.mrf.mxu0 }
 0x155   :  { %v2013_v2 = vpack.c.bf16 %v1084_v54, %v1084_v54 }
 0x156   :  { %v1086_v3 = vpop.f32.mrf.mxu1  ;;  %v6478_v10 = vpop.f32.mrf.mxu0 }
 0x157   :  { %6543 = vmatmul.mubr.msk.bf16.vlgmr.msra.gmra.mxu1 %vm1363_vm2, %v1354_v56  ;;  %v2071_v29 = vsel %vm2023_vm3, %v2013_v2, 0 }
 0x158   :  { %6554 = vmatprep.mubr.msk.bf16.mxu1 %vm7217_vm0, %v7216_v0  ;;  %v6461_v5 = vpop.f32.mrf.mxu1  ;;  %6553 = vmatpush3.bf16.msra.mxu1 %v2071_v29  ;;  %v1215_v12 = vpop.f32.mrf.mxu0 }
 0x159   :  { %6564 = vmatprep.subr.bf16.mxu1 %v7216_v0 }
 0x15a   :  { %v7508_v9 = vpop.f32.mrf.mxu1  ;;  %v6479_v14 = vpop.f32.mrf.mxu0 }
 0x15c   :  { %v6472_v11 = vpop.f32.mrf.mxu1  ;;  %v7510_v17 = vpop.f32.mrf.mxu0 }
 0x15e   :  { %v1172_v13 = vpop.f32.mrf.mxu1  ;;  %v6490_v18 = vpop.f32.mrf.mxu0 }
 0x160   :  { %v6473_v16 = vpop.f32.mrf.mxu1  ;;  %v1301_v19 = vpop.f32.mrf.mxu0 }
 0x162   :  { %v7512_v61 = vpop.f32.mrf.mxu1  ;;  %v6491_v21 = vpop.f32.mrf.mxu0 }
 0x164   :  { %v6484_v62 = vpop.f32.mrf.mxu1 }
 0x166   :  { %v1258_v20 = vpop.f32.mrf.mxu1 }
 0x168   :  { %v6485_v22 = vpop.f32.mrf.mxu1 }
 0x16a   :  { %v7514_v23 = vpop.f32.mrf.mxu1 }
 0x16c   :  { %v6496_v24 = vpop.f32.mrf.mxu1 }
 0x16e   :  { %v1344_v25 = vpop.f32.mrf.mxu1 }
 0x170   :  { %v6497_v26 = vpop.f32.mrf.mxu1 }
 0x1ef   :  { %v1404_v27 = vpop.f32.mrf.mxu0 }
 0x1f0   :  { %v1732_v28 = vmul.f32 0.35355338, %v1404_v27 }
 0x1f1   :  { %v6502_v30 = vpop.f32.mrf.mxu0 }
 0x1f2   :  { %v1740_v31 = vsel %vm1363_vm2, %v1732_v28, -inf }
 0x1f3   :  { %1741 = vmax.xlane.f32.xlu0 %v1740_v31  ;;  %v1407_v32 = vpop.f32.mrf.mxu0 }
 0x1f5   :  { %v6503_v33 = vpop.f32.mrf.mxu0 }
 0x1f7   :  { %v1496_v34 = vpop.f32.mrf.mxu0 }
 0x1f8   :  { %v1734_v6 = vmul.f32 0.35355338, %v1496_v34 }
 0x1f9   :  { %v6514_v35 = vpop.f32.mrf.mxu0 }
 0x1fa   :  { %v1746_v7 = vsel %vm1363_vm2, %v1734_v6, -inf }
 0x1fb   :  { %1747 = vmax.xlane.f32.xlu1 %v1746_v7  ;;  %v1499_v36 = vpop.f32.mrf.mxu0 }
 0x1fd   :  { %v6515_v37 = vpop.f32.mrf.mxu0 }
 0x1ff   :  { %v1450_v38 = vpop.f32.mrf.mxu1  ;;  %v1588_v39 = vpop.f32.mrf.mxu0 }
 0x200   :  { %v1733_v40 = vmul.f32 0.35355338, %v1450_v38  ;;  %v1736_v43 = vmul.f32 0.35355338, %v1588_v39 }
 0x201   :  { %v6508_v41 = vpop.f32.mrf.mxu1  ;;  %v6526_v42 = vpop.f32.mrf.mxu0 }
 0x202   :  { %v1743_v44 = vsel %vm1363_vm2, %v1733_v40, -inf  ;;  %v1752_v49 = vsel %vm1363_vm2, %v1736_v43, -inf }
 0x203   :  { %v1591_v45 = vpop.f32.mrf.mxu0  ;;  %1744 = vmax.xlane.f32.xlu0 %v1743_v44  ;;  %v1453_v46 = vpop.f32.mrf.mxu1 }
 0x205   :  { %v6509_v47 = vpop.f32.mrf.mxu1  ;;  %v6527_v48 = vpop.f32.mrf.mxu0 }
 0x207   :  { %v1680_v50 = vpop.f32.mrf.mxu0  ;;  %1753 = vmax.xlane.f32.xlu0 %v1752_v49  ;;  %v1542_v51 = vpop.f32.mrf.mxu1 }
 0x208   :  { %v1738_v52 = vmul.f32 0.35355338, %v1680_v50  ;;  %v1735_v15 = vmul.f32 0.35355338, %v1542_v51 }
 0x209   :  { %v6520_v53 = vpop.f32.mrf.mxu1  ;;  %v6538_v55 = vpop.f32.mrf.mxu0 }
 0x20a   :  { %v1758_v56 = vsel %vm1363_vm2, %v1738_v52, -inf  ;;  %v1749_v58 = vsel %vm1363_vm2, %v1735_v15, -inf }
 0x20b   :  { %v1683_v59 = vpop.f32.mrf.mxu0  ;;  %1759 = vmax.xlane.f32.xlu0 %v1758_v56  ;;  %1750 = vmax.xlane.f32.xlu1 %v1749_v58  ;;  %v1545_v60 = vpop.f32.mrf.mxu1 }
 0x20c   :  { %v6012_v59 = vld [vmem:[#allocation7 + $0x12] ss:$0 sm:$0xff] }
 0x20d   :  { %v6521_v54 = vpop.f32.mrf.mxu1  ;;  %v6539_v63 = vpop.f32.mrf.mxu0 }
 0x20e   :  { %v1127_v54 = vadd.f32 %v6012_v59, %v7500_v57 }
 0x20f   :  { %v1634_v1 = vpop.f32.mrf.mxu1 }
 0x210   :  { %v1737_v2 = vmul.f32 0.35355338, %v1634_v1  ;;  %v2014_v1 = vpack.c.bf16 %v1127_v54, %v1127_v54 }
 0x211   :  { %v6532_v3 = vpop.f32.mrf.mxu1 }
 0x212   :  { %v1755_v4 = vsel %vm1363_vm2, %v1737_v2, -inf  ;;  %v6014_v3 = vld [vmem:[#allocation7 + $0x14] ss:$0 sm:$0xff] }
 0x213   :  { %1756 = vmax.xlane.f32.xlu1 %v1755_v4  ;;  %v1637_v29 = vpop.f32.mrf.mxu1 }
 0x215   :  { %v6533_v5 = vpop.f32.mrf.mxu1 }
 0x216   :  { %v2117_v5 = vsel %vm2023_vm3, %v2014_v1, 0 }
 0x217   :  { %v1726_v10 = vpop.f32.mrf.mxu1 }
 0x218   :  { %v1739_v11 = vmul.f32 0.35355338, %v1726_v10  ;;  %v1213_v10 = vadd.f32 %v6014_v3, %v7505_v8 }
 0x219   :  { %v6544_v12 = vpop.f32.mrf.mxu1 }
 0x21a   :  { %v1761_v13 = vsel %vm1363_vm2, %v1739_v11, -inf  ;;  %v2016_v12 = vpack.c.bf16 %v1213_v10, %v1213_v10  ;;  %v7219_v10 = vmov 1934713408  }
 0x21b   :  { %1762 = vmax.xlane.f32.xlu1 %v1761_v13  ;;  %v1729_v14 = vpop.f32.mrf.mxu1 }
 0x21c   :  { %v6013_v14 = vld [vmem:[#allocation7 + $0x13] ss:$0 sm:$0xff] }
 0x21d   :  { %v6545_v16 = vpop.f32.mrf.mxu1 }
 0x27c   :  { %v1742_v18 = vpop.xlane.xlu0 %1741 }
 0x27d   :  { %v1764_v62 = vsub.f32 %v1732_v28, %v1742_v18 }
 0x27f   :  { %v1772_v19 = vmul.f32 1.442695, %v1764_v62 }
 0x281   :  { %6991 = vpow2.f32 %v1772_v19 }
 0x284   :  { %v1748_v20 = vpop.xlane.xlu1 %1747 }
 0x285   :  { %v1766_v21 = vsub.f32 %v1734_v6, %v1748_v20  ;;  %v2209_v20 = vsel %vm2023_vm3, %v2016_v12, 0 }
 0x287   :  { %v1776_v22 = vmul.f32 1.442695, %v1766_v21  ;;  %v1170_v21 = vadd.f32 %v6013_v14, %v7508_v9  ;;  %v1833_v9 = vlaneseq }
 0x289   :  { %6993 = vpow2.f32 %v1776_v22  ;;  %v6016_v22 = vld [vmem:[#allocation7 + $0x16] ss:$0 sm:$0xff] }
 0x28c   :  { %v1745_v24 = vpop.xlane.xlu0 %1744 }
 0x28d   :  { %v1765_v25 = vsub.f32 %v1733_v40, %v1745_v24 }
 0x28e   :  { %v6992_v26 = vpop.eup %6991 }
 0x28f   :  { %v1774_v27 = vmul.f32 1.442695, %v1765_v25  ;;  %v1788_v30 = vsel %vm1363_vm2, %v6992_v26, 0.0  ;;  %v2015_v25 = vpack.c.bf16 %v1170_v21, %v1170_v21 }
 0x290   :  { %1789 = vadd.xlane.f32.xlu0 %v1788_v30  ;;  %v1754_v31 = vpop.xlane.xlu0 %1753  ;;  %v6015_v30 = vld [vmem:[#allocation7 + $0x15] ss:$0 sm:$0xff] }
 0x291   :  { %6995 = vpow2.f32 %v1774_v27  ;;  %v1768_v32 = vsub.f32 %v1736_v43, %v1754_v31 }
 0x293   :  { %v1780_v33 = vmul.f32 1.442695, %v1768_v32  ;;  %v7218_v32 = vmov 1983009808  }
 0x294   :  { %v1760_v34 = vpop.xlane.xlu0 %1759  ;;  %v1751_v35 = vpop.xlane.xlu1 %1750 }
 0x295   :  { %6997 = vpow2.f32 %v1780_v33  ;;  %v1770_v28 = vsub.f32 %v1738_v52, %v1760_v34  ;;  %v1767_v7 = vsub.f32 %v1735_v15, %v1751_v35  ;;  %v1831_v33 = vunpack.c.l.s4 %v7218_v32 }
 0x296   :  { %v6994_v36 = vpop.eup %6993 }
 0x297   :  { %v1784_v6 = vmul.f32 1.442695, %v1770_v28  ;;  %v1778_v37 = vmul.f32 1.442695, %v1767_v7  ;;  %v1794_v38 = vsel %vm1363_vm2, %v6994_v36, 0.0  ;;  %v2163_v28 = vsel %vm2023_vm3, %v2015_v25, 0 }
 0x298   :  { %1795 = vadd.xlane.f32.xlu0 %v1794_v38 }
 0x299   :  { %6999 = vpow2.f32 %v1784_v6 }
 0x29a   :  { %7001 = vpow2.f32 %v1778_v37  ;;  %v1834_v37 = vshrl.u32 %v1833_v9, 7 }
 0x29c   :  { %v1757_v39 = vpop.xlane.xlu1 %1756 }
 0x29d   :  { %v1769_v40 = vsub.f32 %v1737_v2, %v1757_v39 }
 0x29e   :  { %v7526_v41 = vpop.eup %6995 }
 0x29f   :  { %v1782_v42 = vmul.f32 1.442695, %v1769_v40  ;;  %v1791_v43 = vsel %vm1363_vm2, %v7526_v41, 0.0 }
 0x2a0   :  { %1792 = vadd.xlane.f32.xlu1 %v1791_v43  ;;  %v6017_v43 = vld [vmem:[#allocation7 + $0x17] ss:$0 sm:$0xff] }
 0x2a1   :  { %7003 = vpow2.f32 %v1782_v42 }
 0x2a2   :  { %v7530_v44 = vpop.eup %6997 }
 0x2a3   :  { %v1800_v45 = vsel %vm1363_vm2, %v7530_v44, 0.0 }
 0x2a4   :  { %1801 = vadd.xlane.f32.xlu0 %v1800_v45  ;;  %v1763_v46 = vpop.xlane.xlu1 %1762 }
 0x2a5   :  { %v1771_v47 = vsub.f32 %v1739_v11, %v1763_v46 }
 0x2a6   :  { %v7534_v48 = vpop.eup %6999 }
 0x2a7   :  { %v7536_v49 = vpop.eup %7001  ;;  %v1786_v50 = vmul.f32 1.442695, %v1771_v47  ;;  %v1806_v51 = vsel %vm1363_vm2, %v7534_v48, 0.0 }
 0x2a8   :  { %1807 = vadd.xlane.f32.xlu0 %v1806_v51  ;;  %v1797_v52 = vsel %vm1363_vm2, %v7536_v49, 0.0 }
 0x2a9   :  { %7005 = vpow2.f32 %v1786_v50  ;;  %1798 = vadd.xlane.f32.xlu1 %v1797_v52 }
 0x2ae   :  { %v7542_v15 = vpop.eup %7003 }
 0x2af   :  { %v1803_v53 = vsel %vm1363_vm2, %v7542_v15, 0.0 }
 0x2b0   :  { %1804 = vadd.xlane.f32.xlu1 %v1803_v53 }
 0x2b6   :  { %v7546_v55 = vpop.eup %7005 }
 0x2b7   :  { %v1809_v56 = vsel %vm1363_vm2, %v7546_v55, 0.0 }
 0x2b8   :  { %1810 = vadd.xlane.f32.xlu1 %v1809_v56 }
 0x319   :  { %v1790_v58 = vpop.xlane.xlu0 %1789 }
 0x31a   :  { %7007 = vrcp.f32 %v1790_v58 }
 0x321   :  { %v1796_v60 = vpop.xlane.xlu0 %1795 }
 0x322   :  { %7009 = vrcp.f32 %v1796_v60 }
 0x327   :  { %v7008_v63 = vpop.eup %7007 }
 0x328   :  { %v7551_v2 = vmul.f32 %v7008_v63, %v6992_v26  ;;  %v1299_v26 = vadd.f32 %v6016_v22, %v7510_v17  ;;  %v1832_v17 = vunpack.c.0.s8 %v1831_v33 }
 0x329   :  { %v1793_v4 = vpop.xlane.xlu1 %1792 }
 0x32a   :  { %7011 = vrcp.f32 %v1793_v4  ;;  %v2004_v29 = vpack.c.bf16 %v7551_v2, %v7551_v2  ;;  %v2018_v7 = vpack.c.bf16 %v1299_v26, %v1299_v26  ;;  %v7594_v46 = vsub.s32 %v1832_v17, %v1834_v37 }
 0x32c   :  { %6549 = vmatmul.mubr.msk.bf16.vlgmr.msra.gmra.mxu0 %vm1363_vm2, %v2004_v29 }
 0x32d   :  { %6559 = vmatpush3.bf16.msra.mxu0 %v2117_v5  ;;  %v1802_v11 = vpop.xlane.xlu0 %1801  ;;  %6560 = vmatprep.mubr.msk.bf16.mxu0 %vm7217_vm0, %v7216_v0 }
 0x32e   :  { %7013 = vrcp.f32 %v1802_v11  ;;  %6570 = vmatprep.subr.bf16.mxu0 %v7216_v0  ;;  %v1895_v11 = vunpack.c.l.s4 %v7219_v10 }
 0x32f   :  { %v7010_v57 = vpop.eup %7009 }
 0x330   :  { %v7561_v13 = vmul.f32 %v7010_v57, %v6994_v36  ;;  %v1256_v36 = vadd.f32 %v6015_v30, %v7512_v61  ;;  %v2301_v61 = vsel %vm2023_vm3, %v2018_v7, 0 }
 0x331   :  { %v1808_v16 = vpop.xlane.xlu0 %1807 }
 0x332   :  { %7015 = vrcp.f32 %v1808_v16  ;;  %v1799_v18 = vpop.xlane.xlu1 %1798  ;;  %v2006_v8 = vpack.c.bf16 %v7561_v13, %v7561_v13  ;;  %v1828_v62 = vcombine.low %v7551_v2, %v7561_v13  ;;  %v1829_v19 = vcombine.high %v7551_v2, %v7561_v13 }
 0x333   :  { %7017 = vrcp.f32 %v1799_v18 }
 0x334   :  { %6561 = vmatmul.mubr.msk.bf16.vlgmr.msra.gmra.mxu0 %vm1363_vm2, %v2006_v8  ;;  %v1836_v56 = vrot.slane %v1828_v62, %v7594_v46  ;;  %v1843_v59 = vrot.slane %v1829_v19, %v7594_v46 }
 0x335   :  { %6571 = vmatpush3.bf16.msra.mxu0 %v2209_v20  ;;  %6572 = vmatprep.mubr.msk.bf16.mxu0 %vm7217_vm0, %v7216_v0 }
 0x336   :  { %6582 = vmatprep.subr.bf16.mxu0 %v7216_v0 }
 0x337   :  { %v7012_v24 = vpop.eup %7011 }
 0x338   :  { %v1821_v27 = vmul.f32 %v7012_v24, %v7526_v41  ;;  %v2017_v41 = vpack.c.bf16 %v1256_v36, %v1256_v36 }
 0x339   :  { %v1805_v31 = vpop.xlane.xlu1 %1804 }
 0x33a   :  { %7019 = vrcp.f32 %v1805_v31  ;;  %v2005_v34 = vpack.c.bf16 %v1821_v27, %v1821_v27  ;;  %v2255_v53 = vsel %vm2023_vm3, %v2017_v41, 0 }
 0x33b   :  { %v7014_v35 = vpop.eup %7013 }
 0x33c   :  { %v7580_v6 = vmul.f32 %v7014_v35, %v7530_v44  ;;  %6555 = vmatmul.mubr.msk.bf16.vlgmr.msra.gmra.mxu1 %vm1363_vm2, %v2005_v34 }
 0x33d   :  { %6565 = vmatpush3.bf16.msra.mxu1 %v2163_v28  ;;  %6566 = vmatprep.mubr.msk.bf16.mxu1 %vm7217_vm0, %v7216_v0 }
 0x33e   :  { %v2008_v38 = vpack.c.bf16 %v7580_v6, %v7580_v6  ;;  %6576 = vmatprep.subr.bf16.mxu1 %v7216_v0 }
 0x33f   :  { %v7016_v39 = vpop.eup %7015 }
 0x340   :  { %v7018_v40 = vpop.eup %7017  ;;  %v1826_v42 = vmul.f32 %v7016_v39, %v7534_v48  ;;  %6573 = vmatmul.mubr.msk.bf16.vlgmr.msra.gmra.mxu0 %vm1363_vm2, %v2008_v38  ;;  %v130_v39 = vld [vmem:[#allocation5 + $0x60] sm:$0xf] }
 0x341   :  { %v1823_v44 = vmul.f32 %v7018_v40, %v7536_v49  ;;  %6583 = vmatpush3.bf16.msra.mxu0 %v2301_v61  ;;  %v1811_v45 = vpop.xlane.xlu1 %1810  ;;  %6584 = vmatprep.mubr.msk.bf16.mxu0 %vm7217_vm0, %v7216_v0  ;;  %v1342_v49 = vadd.f32 %v6017_v43, %v7514_v23  ;;  %v2401_v40 = vsel %vm2023_vm3, %v130_v39, 0  ;;  %v131_v61 = vld [vmem:[#allocation5 + $0x64] sm:$0xf] }
 0x342   :  { %7021 = vrcp.f32 %v1811_v45  ;;  %6594 = vmatprep.subr.bf16.mxu0 %v7216_v0  ;;  %v1860_v47 = vcombine.low %v7580_v6, %v1826_v42  ;;  %v1861_v50 = vcombine.high %v7580_v6, %v1826_v42  ;;  %v2010_v54 = vpack.c.bf16 %v1826_v42, %v1826_v42  ;;  %v132_v42 = vld [vmem:[#allocation5 + $0x68] sm:$0xf] }
 0x343   :  { %v2007_v48 = vpack.c.bf16 %v1823_v44, %v1823_v44  ;;  %v1844_v51 = vcombine.low %v1821_v27, %v1823_v44  ;;  %v1845_v52 = vcombine.high %v1821_v27, %v1823_v44  ;;  %v2019_v29 = vpack.c.bf16 %v1342_v49, %v1342_v49 }
 0x344   :  { %v1868_v62 = vrot.slane %v1860_v47, %v7594_v46  ;;  %v1875_v20 = vrot.slane %v1861_v50, %v7594_v46  ;;  %v2447_v41 = vsel %vm2023_vm3, %v131_v61, 0  ;;  %v2493_v45 = vsel %vm2023_vm3, %v132_v42, 0 }
 0x345   :  { %6567 = vmatmul.mubr.msk.bf16.vlgmr.msra.gmra.mxu1 %vm1363_vm2, %v2007_v48  ;;  %v1852_v58 = vrot.slane %v1844_v51, %v7594_v46  ;;  %v1859_v60 = vrot.slane %v1845_v52, %v7594_v46  ;;  %v2347_v57 = vsel %vm2023_vm3, %v2019_v29, 0  ;;  %v134_v51 = vld [vmem:[#allocation5 + $0x70] sm:$0xf] }
 0x346   :  { %6577 = vmatpush3.bf16.msra.mxu1 %v2255_v53  ;;  %6578 = vmatprep.mubr.msk.bf16.mxu1 %vm7217_vm0, %v7216_v0  ;;  %v2585_v49 = vsel %vm2023_vm3, %v134_v51, 0 }
 0x347   :  { %v7020_v63 = vpop.eup %7019  ;;  %6588 = vmatprep.subr.bf16.mxu1 %v7216_v0  ;;  %v1892_v1 = vcombine.low %v1836_v56, %v1852_v58  ;;  %v1893_v23 = vcombine.high %v1836_v56, %v1852_v58  ;;  %v1908_v2 = vcombine.low %v1843_v59, %v1859_v60  ;;  %v1909_v3 = vcombine.high %v1843_v59, %v1859_v60  ;;  %v133_v60 = vld [vmem:[#allocation5 + $0x6c] sm:$0xf] }
 0x348   :  { %v1825_v4 = vmul.f32 %v7020_v63, %v7542_v15  ;;  %6585 = vmatmul.mubr.msk.bf16.vlgmr.msra.gmra.mxu0 %vm1363_vm2, %v2010_v54  ;;  %v1896_v15 = vunpack.c.0.s8 %v1895_v11 }
 0x349   :  { %6596 = vmatprep.mubr.msk.bf16.mxu0 %vm7217_vm0, %v7216_v0  ;;  %6595 = vmatpush3.bf16.msra.mxu0 %v2401_v40 }
 0x34a   :  { %v2009_v5 = vpack.c.bf16 %v1825_v4, %v1825_v4  ;;  %v7619_v8 = vsub.s32 %v1896_v15, %v1834_v37  ;;  %6606 = vmatprep.subr.bf16.mxu0 %v7216_v0 }
 0x34c   :  { %v7629_v26 = vrot.slane %v1892_v1, %v7619_v8  ;;  %v7632_v27 = vrot.slane %v1893_v23, %v7619_v8  ;;  %v7647_v9 = vrot.slane %v1908_v2, %v7619_v8  ;;  %v7650_v34 = vrot.slane %v1909_v3, %v7619_v8  ;;  %v136_v2 = vld [vmem:[#allocation5 + $0x78] sm:$0xf] }
 0x34d   :  { %6579 = vmatmul.mubr.msk.bf16.vlgmr.msra.gmra.mxu1 %vm1363_vm2, %v2009_v5  ;;  %v2539_v1 = vsel %vm2023_vm3, %v133_v60, 0  ;;  %v2677_v5 = vsel %vm2023_vm3, %v136_v2, 0 }
 0x34e   :  { %6589 = vmatpush3.bf16.msra.mxu1 %v2347_v57  ;;  %6590 = vmatprep.mubr.msk.bf16.mxu1 %vm7217_vm0, %v7216_v0  ;;  %v135_v57 = vld [vmem:[#allocation5 + $0x74] sm:$0xf] }
 0x34f   :  { %v7022_v12 = vpop.eup %7021  ;;  %6600 = vmatprep.subr.bf16.mxu1 %v7216_v0 }
 0x350   :  { %v1827_v13 = vmul.f32 %v7022_v12, %v7546_v55 }
 0x352   :  { %v2011_v14 = vpack.c.bf16 %v1827_v13, %v1827_v13  ;;  %v1876_v16 = vcombine.low %v1825_v4, %v1827_v13  ;;  %v1877_v18 = vcombine.high %v1825_v4, %v1827_v13 }
 0x354   :  { %v1884_v19 = vrot.slane %v1876_v16, %v7594_v46  ;;  %v1891_v21 = vrot.slane %v1877_v18, %v7594_v46  ;;  %v2631_v16 = vsel %vm2023_vm3, %v135_v57, 0 }
 0x355   :  { %6591 = vmatmul.mubr.msk.bf16.vlgmr.msra.gmra.mxu1 %vm1363_vm2, %v2011_v14 }
 0x356   :  { %6602 = vmatprep.mubr.msk.bf16.mxu1 %vm7217_vm0, %v7216_v0  ;;  %v1924_v22 = vcombine.low %v1868_v62, %v1884_v19  ;;  %v1925_v55 = vcombine.high %v1868_v62, %v1884_v19  ;;  %v1940_v24 = vcombine.low %v1875_v20, %v1891_v21  ;;  %v1941_v25 = vcombine.high %v1875_v20, %v1891_v21 }
 0x357   :  { %6601 = vmatpush3.bf16.msra.mxu1 %v2447_v41 }
 0x358   :  { %v7635_v30 = vrot.slane %v1924_v22, %v7619_v8  ;;  %v7638_v31 = vrot.slane %v1925_v55, %v7619_v8  ;;  %v7641_v32 = vrot.slane %v1940_v24, %v7619_v8  ;;  %v7644_v33 = vrot.slane %v1941_v25, %v7619_v8  ;;  %6612 = vmatprep.subr.bf16.mxu1 %v7216_v0  ;;  %v137_v55 = vld [vmem:[#allocation5 + $0x7c] sm:$0xf] }
 0x359   :  { %v2723_v61 = vsel %vm2023_vm3, %v137_v55, 0  ;;  %v7075_v55 = vld [vmem:[#allocation2] sm:$0xff] }
 0x35a   :  { %v1956_v35 = vcombine.low %v7629_v26, %v7635_v30  ;;  %v1957_v28 = vcombine.high %v7629_v26, %v7635_v30  ;;  %v1958_v7 = vcombine.low %v7632_v27, %v7638_v31  ;;  %v1959_v36 = vcombine.high %v7632_v27, %v7638_v31 }
 0x35b   :  { %v1961_v6 = vcombine.high %v7647_v9, %v7641_v32  ;;  %v1963_v17 = vcombine.high %v7650_v34, %v7644_v33  ;;  %v1960_v37 = vcombine.low %v7647_v9, %v7641_v32  ;;  %v1962_v38 = vcombine.low %v7650_v34, %v7644_v33 }
 0x3ec   :  { %v2061_v43 = vpop.f32.mrf.mxu0 }
 0x3ed   :  { %v2389_v44 = vpack.c.bf16 %v2061_v43, %v2061_v43 }
 0x3ee   :  { %v6550_v47 = vpop.f32.mrf.mxu0 }
 0x3ef   :  { %6597 = vmatmul.mubr.msk.bf16.vlgmr.msra.gmra.mxu0 %vm1363_vm2, %v2389_v44 }
 0x3f0   :  { %v2064_v50 = vpop.f32.mrf.mxu0  ;;  %6607 = vmatpush3.bf16.msra.mxu0 %v2493_v45  ;;  %6608 = vmatprep.mubr.msk.bf16.mxu0 %vm7217_vm0, %v7216_v0 }
 0x3f1   :  { %6618 = vmatprep.subr.bf16.mxu0 %v7216_v0 }
 0x3f2   :  { %v6551_v48 = vpop.f32.mrf.mxu0 }
 0x3f4   :  { %v2153_v52 = vpop.f32.mrf.mxu0 }
 0x3f5   :  { %v2391_v53 = vpack.c.bf16 %v2153_v52, %v2153_v52 }
 0x3f6   :  { %v6562_v56 = vpop.f32.mrf.mxu0 }
 0x3f7   :  { %6609 = vmatmul.mubr.msk.bf16.vlgmr.msra.gmra.mxu0 %vm1363_vm2, %v2391_v53 }
 0x3f8   :  { %v2156_v58 = vpop.f32.mrf.mxu0  ;;  %6619 = vmatpush3.bf16.msra.mxu0 %v2585_v49  ;;  %6620 = vmatprep.mubr.msk.bf16.mxu0 %vm7217_vm0, %v7216_v0 }
 0x3f9   :  { %6630 = vmatprep.subr.bf16.mxu0 %v7216_v0 }
 0x3fa   :  { %v6563_v59 = vpop.f32.mrf.mxu0 }
 0x3fc   :  { %v2107_v54 = vpop.f32.mrf.mxu1 }
 0x3fd   :  { %v2390_v63 = vpack.c.bf16 %v2107_v54, %v2107_v54 }
 0x3fe   :  { %v6556_v23 = vpop.f32.mrf.mxu1 }
 0x3ff   :  { %6603 = vmatmul.mubr.msk.bf16.vlgmr.msra.gmra.mxu1 %vm1363_vm2, %v2390_v63 }
 0x400   :  { %v2110_v3 = vpop.f32.mrf.mxu1  ;;  %v2245_v4 = vpop.f32.mrf.mxu0  ;;  %6613 = vmatpush3.bf16.msra.mxu1 %v2539_v1  ;;  %6614 = vmatprep.mubr.msk.bf16.mxu1 %vm7217_vm0, %v7216_v0 }
 0x401   :  { %v2393_v29 = vpack.c.bf16 %v2245_v4, %v2245_v4  ;;  %6624 = vmatprep.subr.bf16.mxu1 %v7216_v0 }
 0x402   :  { %v6557_v10 = vpop.f32.mrf.mxu1  ;;  %v6574_v11 = vpop.f32.mrf.mxu0 }
 0x403   :  { %6621 = vmatmul.mubr.msk.bf16.vlgmr.msra.gmra.mxu0 %vm1363_vm2, %v2393_v29 }
 0x404   :  { %v2248_v12 = vpop.f32.mrf.mxu0  ;;  %6631 = vmatpush3.bf16.msra.mxu0 %v2677_v5  ;;  %6632 = vmatprep.mubr.msk.bf16.mxu0 %vm7217_vm0, %v7216_v0 }
 0x405   :  { %v2199_v15 = vpop.f32.mrf.mxu1  ;;  %6642 = vmatprep.subr.bf16.mxu0 %v7216_v0 }
 0x406   :  { %v2392_v13 = vpack.c.bf16 %v2199_v15, %v2199_v15  ;;  %v6575_v14 = vpop.f32.mrf.mxu0  ;;  %v6050_v15 = vld [vmem:[#allocation10] ss:$0 sm:$0xff] }
 0x407   :  { %v6568_v18 = vpop.f32.mrf.mxu1 }
 0x408   :  { %6615 = vmatmul.mubr.msk.bf16.vlgmr.msra.gmra.mxu1 %vm1363_vm2, %v2392_v13  ;;  %v2337_v62 = vpop.f32.mrf.mxu0 }
 0x409   :  { %v2202_v19 = vpop.f32.mrf.mxu1  ;;  %v2395_v20 = vpack.c.bf16 %v2337_v62, %v2337_v62  ;;  %6625 = vmatpush3.bf16.msra.mxu1 %v2631_v16  ;;  %6626 = vmatprep.mubr.msk.bf16.mxu1 %vm7217_vm0, %v7216_v0 }
 0x40a   :  { %v6586_v21 = vpop.f32.mrf.mxu0  ;;  %6636 = vmatprep.subr.bf16.mxu1 %v7216_v0 }
 0x40b   :  { %v6569_v22 = vpop.f32.mrf.mxu1  ;;  %6633 = vmatmul.mubr.msk.bf16.vlgmr.msra.gmra.mxu0 %vm1363_vm2, %v2395_v20 }
 0x40c   :  { %v2340_v24 = vpop.f32.mrf.mxu0  ;;  %6646 = vmatprep.mubr.msk.bf16.mxu0 %vm7217_vm0, %v7216_v0 }
 0x40d   :  { %v2291_v25 = vpop.f32.mrf.mxu1 }
 0x40e   :  { %v2394_v39 = vpack.c.bf16 %v2291_v25, %v2291_v25  ;;  %v6587_v40 = vpop.f32.mrf.mxu0 }
 0x40f   :  { %v6580_v41 = vpop.f32.mrf.mxu1 }
 0x410   :  { %6627 = vmatmul.mubr.msk.bf16.vlgmr.msra.gmra.mxu1 %vm1363_vm2, %v2394_v39 }
 0x411   :  { %v2294_v42 = vpop.f32.mrf.mxu1  ;;  %6637 = vmatpush3.bf16.msra.mxu1 %v2723_v61  ;;  %6638 = vmatprep.mubr.msk.bf16.mxu1 %vm7217_vm0, %v7216_v0 }
 0x412   :  { %6650 = vmatprep.subr.bf16.mxu1 %v7216_v0 }
 0x413   :  { %v6581_v43 = vpop.f32.mrf.mxu1 }
 0x415   :  { %v2383_v44 = vpop.f32.mrf.mxu1 }
 0x416   :  { %v2396_v45 = vpack.c.bf16 %v2383_v44, %v2383_v44 }
 0x417   :  { %v6592_v47 = vpop.f32.mrf.mxu1 }
 0x418   :  { %6639 = vmatmul.mubr.msk.bf16.vlgmr.msra.gmra.mxu1 %vm1363_vm2, %v2396_v45 }
 0x419   :  { %v2386_v50 = vpop.f32.mrf.mxu1  ;;  %6654 = vmatprep.mubr.msk.bf16.mxu1 %vm7217_vm0, %v7216_v0 }
 0x41b   :  { %v6593_v48 = vpop.f32.mrf.mxu1 }
 0x4af   :  { %v2437_v51 = vpop.f32.mrf.mxu0 }
 0x4b0   :  { %v2765_v23 = vsel %vm194_vm1, %v2437_v51, 0.0 }
 0x4b1   :  { %v6598_v52 = vpop.f32.mrf.mxu0 }
 0x4b3   :  { %v2440_v53 = vpop.f32.mrf.mxu0 }
 0x4b5   :  { %v6599_v49 = vpop.f32.mrf.mxu0 }
 0x4b7   :  { %v2529_v56 = vpop.f32.mrf.mxu0 }
 0x4b8   :  { %v2768_v10 = vsel %vm194_vm1, %v2529_v56, 0.0 }
 0x4b9   :  { %v6610_v58 = vpop.f32.mrf.mxu0 }
 0x4bb   :  { %v2532_v59 = vpop.f32.mrf.mxu0 }
 0x4bd   :  { %v6611_v60 = vpop.f32.mrf.mxu0 }
 0x4be   :  { %v7076_v60 = vld [vmem:[#allocation2 + $0x8] sm:$0xff] }
 0x4bf   :  { %v2483_v54 = vpop.f32.mrf.mxu1 }
 0x4c0   :  { %v2766_v63 = vsel %vm194_vm1, %v2483_v54, 0.0 }
 0x4c1   :  { %v6604_v1 = vpop.f32.mrf.mxu1  ;;  %v2767_v4 = vadd.f32 %v2766_v63, %v2765_v23 }
 0x4c3   :  { %v2486_v2 = vpop.f32.mrf.mxu1  ;;  %v2621_v3 = vpop.f32.mrf.mxu0  ;;  %v2769_v12 = vadd.f32 %v2768_v10, %v2767_v4 }
 0x4c4   :  { %v2772_v43 = vsel %vm194_vm1, %v2621_v3, 0.0 }
 0x4c5   :  { %v6605_v29 = vpop.f32.mrf.mxu1  ;;  %v6622_v5 = vpop.f32.mrf.mxu0 }
 0x4c7   :  { %v2624_v11 = vpop.f32.mrf.mxu0 }
 0x4c8   :  { %v2575_v57 = vpop.f32.mrf.mxu1 }
 0x4c9   :  { %v2770_v13 = vsel %vm194_vm1, %v2575_v57, 0.0  ;;  %v6623_v14 = vpop.f32.mrf.mxu0 }
 0x4ca   :  { %v2771_v16 = vadd.f32 %v2770_v13, %v2769_v12  ;;  %v6616_v18 = vpop.f32.mrf.mxu1  ;;  %v6983_v12 = vld [vmem:[#allocation8 + $0x8] sm:$0xff]   ;;  %v6985_v13 = vld [vmem:[#allocation8 + $0x18] sm:$0xff]  }
 0x4cb   :  { %v2713_v62 = vpop.f32.mrf.mxu0  ;;  %6643 = vmatpush3.bf16.msra.mxu0 %v6983_v12  ;;  %v2921_v14 = vsel %vm2913_vm4, %v6985_v13, 0 }
 0x4cc   :  { %v2783_v19 = vadd.f32 %v6050_v15, %v2771_v16  ;;  %v2578_v20 = vpop.f32.mrf.mxu1  ;;  %v2775_v50 = vsel %vm194_vm1, %v2713_v62, 0.0  ;;  %6644 = vmatprep.subr.bf16.mxu0 %v7216_v0  ;;  %6651 = vmatpush3.bf16.xpose.msra.mxu1 %v2921_v14 }
 0x4cd   :  { %v6634_v21 = vpop.f32.mrf.mxu0  ;;  %6652 = vmatprep.subr.bf16.mxu1 %v7216_v0 }
 0x4ce   :  { %v6617_v22 = vpop.f32.mrf.mxu1  ;;  %v2785_v24 = vadd.f32 %v7075_v55, %v2783_v19 }
 0x4cf   :  { %v2716_v25 = vpop.f32.mrf.mxu0 }
 0x4d0   :  { %v2667_v39 = vpop.f32.mrf.mxu1  ;;  %v2787_v40 = vsel %vm194_vm1, %v2785_v24, 0.0 }
 0x4d1   :  { %v2773_v61 = vsel %vm194_vm1, %v2667_v39, 0.0  ;;  %2788 = vadd.xlane.f32.xlu0 %v2787_v40  ;;  %v6635_v41 = vpop.f32.mrf.mxu0 }
 0x4d2   :  { %v6628_v42 = vpop.f32.mrf.mxu1  ;;  %v2774_v44 = vadd.f32 %v2773_v61, %v2772_v43  ;;  %v6052_v61 = vld [vmem:[#allocation10 + $0x2] ss:$0 sm:$0xff] }
 0x4d4   :  { %v2670_v45 = vpop.f32.mrf.mxu1  ;;  %v2776_v51 = vadd.f32 %v2775_v50, %v2774_v44  ;;  %v6053_v50 = vld [vmem:[#allocation10 + $0x3] ss:$0 sm:$0xff] }
 0x4d5   :  { %v6986_v45 = vld [vmem:[#allocation8 + $0x10] sm:$0xff]  }
 0x4d6   :  { %v6629_v47 = vpop.f32.mrf.mxu1 }
 0x4d7   :  { %v2918_v47 = vsel %vm2913_vm4, %v6986_v45, 0 }
 0x4d8   :  { %v2759_v48 = vpop.f32.mrf.mxu1  ;;  %6653 = vmatpush3.bf16.xpose.msra.mxu1 %v2918_v47  ;;  %v6062_v47 = vld [vmem:[#allocation10 + $0x6] ss:$0 sm:$0xff] }
 0x4d9   :  { %v2777_v52 = vsel %vm194_vm1, %v2759_v48, 0.0  ;;  %6670 = vmatprep.subr.bf16.mxu1 %v7216_v0 }
 0x4da   :  { %v2778_v53 = vadd.f32 %v2777_v52, %v2776_v51  ;;  %v6640_v49 = vpop.f32.mrf.mxu1 }
 0x4dc   :  { %v2784_v56 = vadd.f32 %v6050_v15, %v2778_v53  ;;  %v2762_v58 = vpop.f32.mrf.mxu1  ;;  %v6984_v15 = vld [vmem:[#allocation8] sm:$0xff]  }
 0x4dd   :  { %6645 = vmatpush3.bf16.msra.mxu0 %v6984_v15 }
 0x4de   :  { %v6641_v59 = vpop.f32.mrf.mxu1  ;;  %v2786_v54 = vadd.f32 %v7076_v60, %v2784_v56  ;;  %6658 = vmatprep.subr.bf16.mxu0 %v7216_v0 }
 0x4e0   :  { %v2790_v63 = vsel %vm194_vm1, %v2786_v54, 0.0 }
 0x4e1   :  { %2791 = vadd.xlane.f32.xlu1 %v2790_v63 }
 0x55a   :  { %v2789_v1 = vpop.xlane.xlu0 %2788 }
 0x55b   :  { %v2794_v23 = vmul.f32 0.03125, %v2789_v1 }
 0x55d   :  { %v2796_v2 = vsub.f32 %v2785_v24, %v2794_v23  ;;  %v6051_v24 = vld [vmem:[#allocation10 + $0x1] ss:$0 sm:$0xff] }
 0x55f   :  { %v2798_v3 = vmul.f32 %v2796_v2, %v2796_v2 }
 0x561   :  { %v2800_v4 = vsel %vm194_vm1, %v2798_v3, 0.0 }
 0x562   :  { %2801 = vadd.xlane.f32.xlu0 %v2800_v4 }
 0x56a   :  { %v2792_v29 = vpop.xlane.xlu1 %2791 }
 0x56b   :  { %v2795_v5 = vmul.f32 0.03125, %v2792_v29 }
 0x56d   :  { %v2797_v10 = vsub.f32 %v2786_v54, %v2795_v5  ;;  %v6057_v54 = vld [vmem:[#allocation10 + $0x4] ss:$0 sm:$0xff] }
 0x56f   :  { %v2799_v11 = vmul.f32 %v2797_v10, %v2797_v10 }
 0x571   :  { %v2803_v57 = vsel %vm194_vm1, %v2799_v11, 0.0 }
 0x572   :  { %2804 = vadd.xlane.f32.xlu1 %v2803_v57 }
 0x5eb   :  { %v2802_v16 = vpop.xlane.xlu0 %2801 }
 0x5ec   :  { %v2806_v18 = vmul.f32 0.03125, %v2802_v16 }
 0x5ee   :  { %v2808_v62 = vadd.f32 1e-05, %v2806_v18 }
 0x5f0   :  { %7023 = vrsqrt.f32 %v2808_v62 }
 0x5fb   :  { %v2805_v19 = vpop.xlane.xlu1 %2804 }
 0x5fc   :  { %v2807_v20 = vmul.f32 0.03125, %v2805_v19 }
 0x5fd   :  { %v7024_v22 = vpop.eup %7023 }
 0x5fe   :  { %v2809_v21 = vadd.f32 1e-05, %v2807_v20  ;;  %v2812_v55 = vmul.f32 %v7024_v22, %v2796_v2  ;;  %v3016_v22 = vld [vmem:[#allocation5 + $0x88] sm:$0xf] }
 0x600   :  { %7025 = vrsqrt.f32 %v2809_v21  ;;  %v2818_v40 = vmul.f32 %v6051_v24, %v2812_v55  ;;  %v3014_v21 = vld [vmem:[#allocation5 + $0x80] sm:$0xf] }
 0x601   :  { %v3110_v55 = vsel %vm194_vm1, %v3014_v21, 0 }
 0x602   :  { %v2824_v42 = vadd.f32 %v6052_v61, %v2818_v40 }
 0x60d   :  { %v7026_v25 = vpop.eup %7025 }
 0x60e   :  { %v2813_v39 = vmul.f32 %v7026_v25, %v2797_v10 }
 0x610   :  { %v2819_v41 = vmul.f32 %v6051_v24, %v2813_v39  ;;  %v3196_v24 = vsel %vm194_vm1, %v3016_v22, 0  ;;  %v3028_v22 = vld [vmem:[#allocation5 + $0xb4] sm:$0xf] }
 0x612   :  { %v2825_v43 = vadd.f32 %v6052_v61, %v2819_v41 }
 0x614   :  { %v2835_v44 = vpack.c.bf16 %v2825_v43, %v2824_v42 }
 0x616   :  { %6647 = vmatmul.mubr.msk.bf16.vlgmr.msra.gmra.mxu0 %vm194_vm1, %v2835_v44  ;;  %v6061_v44 = vld [vmem:[#allocation10 + $0x5] ss:$0 sm:$0xff] }
 0x617   :  { %6660 = vmatprep.mubr.msk.bf16.mxu0 %vm7217_vm0, %v7216_v0  ;;  %6659 = vmatpush3.bf16.xpose.msra.mxu0 %v3110_v55  ;;  %v3032_v55 = vld [vmem:[#allocation5 + $0xc0] sm:$0xf] }
 0x618   :  { %6664 = vmatprep.subr.bf16.mxu0 %v7216_v0 }
 0x6d6   :  { %v2889_v48 = vpop.f32.mrf.mxu0 }
 0x6d7   :  { %v2890_v52 = vadd.f32 %v6053_v50, %v2889_v48 }
 0x6d8   :  { %v6648_v51 = vpop.f32.mrf.mxu0 }
 0x6d9   :  { %v2896_v58 = vmax.f32 %v2890_v52, 0.0  ;;  %v3015_v51 = vld [vmem:[#allocation5 + $0x84] sm:$0xf]  ;;  %v3018_v52 = vld [vmem:[#allocation5 + $0x90] sm:$0xf] }
 0x6da   :  { %v2892_v53 = vpop.f32.mrf.mxu0 }
 0x6db   :  { %v2893_v49 = vadd.f32 %v6053_v50, %v2892_v53 }
 0x6dc   :  { %v6649_v56 = vpop.f32.mrf.mxu0 }
 0x6dd   :  { %v2897_v59 = vmax.f32 %v2893_v49, 0.0 }
 0x6df   :  { %v2898_v60 = vpack.c.bf16 %v2897_v59, %v2896_v58  ;;  %v3153_v59 = vsel %vm194_vm1, %v3015_v51, 0 }
 0x6e1   :  { %6655 = vmatmul.mubr.msk.bf16.vlgmr.msra.gmra.mxu1 %vm2913_vm4, %v2898_v60  ;;  %v3285_v60 = vsel %vm194_vm1, %v3018_v52, 0  ;;  %v3037_v52 = vld [vmem:[#allocation5 + $0xd4] sm:$0xf] }
 0x6e2   :  { %6672 = vmatprep.mubr.msk.bf16.mxu1 %vm7217_vm0, %v7216_v0  ;;  %6671 = vmatpush3.bf16.xpose.msra.mxu1 %v3196_v24  ;;  %v3729_v24 = vsel %vm194_vm1, %v3028_v22, 0 }
 0x6e3   :  { %6682 = vmatprep.subr.bf16.mxu1 %v7216_v0 }
 0x7a1   :  { %v2957_v63 = vpop.f32.mrf.mxu1 }
 0x7a2   :  { %v2958_v1 = vadd.f32 %v6057_v54, %v2957_v63  ;;  %v3017_v63 = vld [vmem:[#allocation5 + $0x8c] sm:$0xf] }
 0x7a3   :  { %v6656_v23 = vpop.f32.mrf.mxu1 }
 0x7a4   :  { %v2964_v2 = vadd.f32 %v2958_v1, %v2824_v42  ;;  %v3020_v1 = vld [vmem:[#allocation5 + $0x98] sm:$0xf] }
 0x7a5   :  { %v2960_v3 = vpop.f32.mrf.mxu1 }
 0x7a6   :  { %v2961_v4 = vadd.f32 %v6057_v54, %v2960_v3  ;;  %v2966_v29 = vsel %vm194_vm1, %v2964_v2, 0.0  ;;  %v3371_v3 = vsel %vm194_vm1, %v3020_v1, 0 }
 0x7a7   :  { %2967 = vadd.xlane.f32.xlu0 %v2966_v29  ;;  %v6657_v5 = vpop.f32.mrf.mxu1  ;;  %v3023_v29 = vld [vmem:[#allocation5 + $0xa0] sm:$0xf] }
 0x7a8   :  { %v2965_v10 = vadd.f32 %v2961_v4, %v2825_v43  ;;  %v3019_v4 = vld [vmem:[#allocation5 + $0x94] sm:$0xf] }
 0x7a9   :  { %v3328_v5 = vsel %vm194_vm1, %v3019_v4, 0 }
 0x7aa   :  { %v2969_v11 = vsel %vm194_vm1, %v2965_v10, 0.0 }
 0x7ab   :  { %2970 = vadd.xlane.f32.xlu1 %v2969_v11  ;;  %v3021_v11 = vld [vmem:[#allocation5 + $0x9c] sm:$0xf] }
 0x830   :  { %v2968_v57 = vpop.xlane.xlu0 %2967 }
 0x831   :  { %v2972_v12 = vmul.f32 0.03125, %v2968_v57  ;;  %v3025_v57 = vld [vmem:[#allocation5 + $0xa8] sm:$0xf] }
 0x833   :  { %v2974_v15 = vsub.f32 %v2964_v2, %v2972_v12  ;;  %v3239_v2 = vsel %vm194_vm1, %v3017_v63, 0  ;;  %v3414_v12 = vsel %vm194_vm1, %v3021_v11, 0 }
 0x834   :  { %v2971_v13 = vpop.xlane.xlu1 %2970 }
 0x835   :  { %v2973_v14 = vmul.f32 0.03125, %v2971_v13  ;;  %v2976_v16 = vmul.f32 %v2974_v15, %v2974_v15  ;;  %v3024_v13 = vld [vmem:[#allocation5 + $0xa4] sm:$0xf] }
 0x837   :  { %v2975_v18 = vsub.f32 %v2965_v10, %v2973_v14  ;;  %v2978_v62 = vsel %vm194_vm1, %v2976_v16, 0.0  ;;  %v3514_v10 = vsel %vm194_vm1, %v3023_v29, 0  ;;  %v3027_v14 = vld [vmem:[#allocation5 + $0xb0] sm:$0xf]  ;;  %v3557_v16 = vsel %vm194_vm1, %v3024_v13, 0 }
 0x838   :  { %2979 = vadd.xlane.f32.xlu0 %v2978_v62  ;;  %v3026_v62 = vld [vmem:[#allocation5 + $0xac] sm:$0xf] }
 0x839   :  { %v2977_v19 = vmul.f32 %v2975_v18, %v2975_v18 }
 0x83b   :  { %v2981_v20 = vsel %vm194_vm1, %v2977_v19, 0.0  ;;  %v3029_v19 = vld [vmem:[#allocation5 + $0xb8] sm:$0xf] }
 0x83c   :  { %2982 = vadd.xlane.f32.xlu1 %v2981_v20  ;;  %v3643_v20 = vsel %vm194_vm1, %v3026_v62, 0  ;;  %v3772_v21 = vsel %vm194_vm1, %v3029_v19, 0 }
 0x8c1   :  { %v2980_v25 = vpop.xlane.xlu0 %2979 }
 0x8c2   :  { %v2984_v39 = vmul.f32 0.03125, %v2980_v25  ;;  %v3915_v25 = vsel %vm194_vm1, %v3032_v55, 0  ;;  %v6079_v55 = vld [vmem:[#allocation7 + $0x20] ss:$0 sm:$0xff] }
 0x8c4   :  { %v2986_v40 = vadd.f32 1e-05, %v2984_v39  ;;  %v3030_v39 = vld [vmem:[#allocation5 + $0xbc] sm:$0xf] }
 0x8c5   :  { %v2983_v61 = vpop.xlane.xlu1 %2982 }
 0x8c6   :  { %7027 = vrsqrt.f32 %v2986_v40  ;;  %v2985_v41 = vmul.f32 0.03125, %v2983_v61  ;;  %v3034_v40 = vld [vmem:[#allocation5 + $0xc8] sm:$0xf]  ;;  %v3815_v61 = vsel %vm194_vm1, %v3030_v39, 0 }
 0x8c8   :  { %v2987_v42 = vadd.f32 1e-05, %v2985_v41  ;;  %v4001_v41 = vsel %vm194_vm1, %v3034_v40, 0 }
 0x8ca   :  { %7029 = vrsqrt.f32 %v2987_v42  ;;  %v3033_v42 = vld [vmem:[#allocation5 + $0xc4] sm:$0xf] }
 0x8d3   :  { %v7028_v43 = vpop.eup %7027 }
 0x8d4   :  { %v2990_v45 = vmul.f32 %v7028_v43, %v2974_v15  ;;  %v3600_v15 = vsel %vm194_vm1, %v3025_v57, 0  ;;  %v3036_v43 = vld [vmem:[#allocation5 + $0xd0] sm:$0xf] }
 0x8d6   :  { %v2996_v50 = vmul.f32 %v6061_v44, %v2990_v45  ;;  %v4087_v45 = vsel %vm194_vm1, %v3036_v43, 0 }
 0x8d7   :  { %v7030_v48 = vpop.eup %7029 }
 0x8d8   :  { %v7740_v53 = vadd.f32 %v6062_v47, %v2996_v50  ;;  %v2991_v49 = vmul.f32 %v7030_v48, %v2975_v18  ;;  %v3686_v18 = vsel %vm194_vm1, %v3027_v14, 0  ;;  %v3038_v50 = vld [vmem:[#allocation5 + $0xd8] sm:$0xf] }
 0x8d9   :  { %v4173_v51 = vsel %vm194_vm1, %v3038_v50, 0 }
 0x8da   :  { %v7744_v56 = vpack.c.bf16 %v7740_v53, %v7740_v53  ;;  %v2997_v58 = vmul.f32 %v6061_v44, %v2991_v49  ;;  %v3958_v44 = vsel %vm194_vm1, %v3033_v42, 0  ;;  %v4130_v49 = vsel %vm194_vm1, %v3037_v52, 0  ;;  %v6063_v42 = vld [vmem:[#allocation7 + $0x18] ss:$0 sm:$0xff] }
 0x8dc   :  { %6661 = vmatmul.mubr.msk.bf16.vlgmr.msra.gmra.mxu0 %vm194_vm1, %v7744_v56  ;;  %6673 = vmatmul.mubr.msk.bf16.vlgmr.msra.gmra.mxu1 %vm194_vm1, %v7744_v56  ;;  %v7752_v54 = vadd.f32 %v6062_v47, %v2997_v58  ;;  %v3035_v47 = vld [vmem:[#allocation5 + $0xcc] sm:$0xf]  ;;  %v3039_v58 = vld [vmem:[#allocation5 + $0xdc] sm:$0xf] }
 0x8dd   :  { %6665 = vmatpush3.bf16.xpose.msra.mxu0 %v3153_v59  ;;  %6683 = vmatpush3.bf16.xpose.msra.mxu1 %v3285_v60  ;;  %v4044_v48 = vsel %vm194_vm1, %v3035_v47, 0  ;;  %v4216_v59 = vsel %vm194_vm1, %v3039_v58, 0 }
 0x8de   :  { %6666 = vmatprep.mubr.msk.bf16.mxu0 %vm7217_vm0, %v7216_v0  ;;  %6684 = vmatprep.mubr.msk.bf16.mxu1 %vm7217_vm0, %v7216_v0  ;;  %v7762_v23 = vpack.c.bf16 %v7752_v54, %v7752_v54 }
 0x8df   :  { %6676 = vmatprep.subr.bf16.mxu0 %v7216_v0  ;;  %6694 = vmatprep.subr.bf16.mxu1 %v7216_v0 }
 0x8e4   :  { %6667 = vmatmul.mubr.msk.bf16.vlgmr.msra.gmra.mxu0 %vm194_vm1, %v7744_v56  ;;  %6685 = vmatmul.mubr.msk.bf16.vlgmr.msra.gmra.mxu1 %vm194_vm1, %v7762_v23 }
 0x8e5   :  { %6677 = vmatpush3.bf16.xpose.msra.mxu0 %v3239_v2  ;;  %6695 = vmatpush3.bf16.xpose.msra.mxu1 %v3371_v3 }
 0x8e6   :  { %6678 = vmatprep.mubr.msk.bf16.mxu0 %vm7217_vm0, %v7216_v0  ;;  %6696 = vmatprep.mubr.msk.bf16.mxu1 %vm7217_vm0, %v7216_v0 }
 0x8e7   :  { %6688 = vmatprep.subr.bf16.mxu0 %v7216_v0  ;;  %6706 = vmatprep.subr.bf16.mxu1 %v7216_v0 }
 0x8ec   :  { %6679 = vmatmul.mubr.msk.bf16.vlgmr.msra.gmra.mxu0 %vm194_vm1, %v7744_v56  ;;  %6697 = vmatmul.mubr.msk.bf16.vlgmr.msra.gmra.mxu1 %vm194_vm1, %v7762_v23 }
 0x8ed   :  { %6689 = vmatpush3.bf16.xpose.msra.mxu0 %v3328_v5  ;;  %6707 = vmatpush3.bf16.xpose.msra.mxu1 %v3514_v10 }
 0x8ee   :  { %6690 = vmatprep.mubr.msk.bf16.mxu0 %vm7217_vm0, %v7216_v0  ;;  %6708 = vmatprep.mubr.msk.bf16.mxu1 %vm7217_vm0, %v7216_v0 }
 0x8ef   :  { %6700 = vmatprep.subr.bf16.mxu0 %v7216_v0  ;;  %6718 = vmatprep.subr.bf16.mxu1 %v7216_v0 }
 0x8f4   :  { %6691 = vmatmul.mubr.msk.bf16.vlgmr.msra.gmra.mxu0 %vm194_vm1, %v7762_v23  ;;  %6709 = vmatmul.mubr.msk.bf16.vlgmr.msra.gmra.mxu1 %vm194_vm1, %v7744_v56 }
 0x8f5   :  { %6701 = vmatpush3.bf16.xpose.msra.mxu0 %v3414_v12  ;;  %6719 = vmatpush3.bf16.xpose.msra.mxu1 %v3600_v15 }
 0x8f6   :  { %6702 = vmatprep.mubr.msk.bf16.mxu0 %vm7217_vm0, %v7216_v0  ;;  %6720 = vmatprep.mubr.msk.bf16.mxu1 %vm7217_vm0, %v7216_v0 }
 0x8f7   :  { %6712 = vmatprep.subr.bf16.mxu0 %v7216_v0  ;;  %6730 = vmatprep.subr.bf16.mxu1 %v7216_v0 }
 0x8fc   :  { %6703 = vmatmul.mubr.msk.bf16.vlgmr.msra.gmra.mxu0 %vm194_vm1, %v7762_v23  ;;  %6721 = vmatmul.mubr.msk.bf16.vlgmr.msra.gmra.mxu1 %vm194_vm1, %v7744_v56 }
 0x8fd   :  { %6713 = vmatpush3.bf16.xpose.msra.mxu0 %v3557_v16  ;;  %6731 = vmatpush3.bf16.xpose.msra.mxu1 %v3686_v18 }
 0x8fe   :  { %6714 = vmatprep.mubr.msk.bf16.mxu0 %vm7217_vm0, %v7216_v0  ;;  %6732 = vmatprep.mubr.msk.bf16.mxu1 %vm7217_vm0, %v7216_v0 }
 0x8ff   :  { %6724 = vmatprep.subr.bf16.mxu0 %v7216_v0  ;;  %6742 = vmatprep.subr.bf16.mxu1 %v7216_v0 }
 0x904   :  { %6715 = vmatmul.mubr.msk.bf16.vlgmr.msra.gmra.mxu0 %vm194_vm1, %v7744_v56  ;;  %6733 = vmatmul.mubr.msk.bf16.vlgmr.msra.gmra.mxu1 %vm194_vm1, %v7762_v23 }
 0x905   :  { %6725 = vmatpush3.bf16.xpose.msra.mxu0 %v3643_v20  ;;  %6743 = vmatpush3.bf16.xpose.msra.mxu1 %v3772_v21 }
 0x906   :  { %6726 = vmatprep.mubr.msk.bf16.mxu0 %vm7217_vm0, %v7216_v0  ;;  %6744 = vmatprep.mubr.msk.bf16.mxu1 %vm7217_vm0, %v7216_v0 }
 0x907   :  { %6736 = vmatprep.subr.bf16.mxu0 %v7216_v0  ;;  %6754 = vmatprep.subr.bf16.mxu1 %v7216_v0 }
 0x90c   :  { %6727 = vmatmul.mubr.msk.bf16.vlgmr.msra.gmra.mxu0 %vm194_vm1, %v7744_v56  ;;  %6745 = vmatmul.mubr.msk.bf16.vlgmr.msra.gmra.mxu1 %vm194_vm1, %v7762_v23 }
 0x90d   :  { %6737 = vmatpush3.bf16.xpose.msra.mxu0 %v3729_v24  ;;  %6755 = vmatpush3.bf16.xpose.msra.mxu1 %v3915_v25 }
 0x90e   :  { %6738 = vmatprep.mubr.msk.bf16.mxu0 %vm7217_vm0, %v7216_v0  ;;  %6756 = vmatprep.mubr.msk.bf16.mxu1 %vm7217_vm0, %v7216_v0 }
 0x90f   :  { %6748 = vmatprep.subr.bf16.mxu0 %v7216_v0  ;;  %6766 = vmatprep.subr.bf16.mxu1 %v7216_v0 }
 0x914   :  { %6739 = vmatmul.mubr.msk.bf16.vlgmr.msra.gmra.mxu0 %vm194_vm1, %v7762_v23  ;;  %6757 = vmatmul.mubr.msk.bf16.vlgmr.msra.gmra.mxu1 %vm194_vm1, %v7744_v56 }
 0x915   :  { %6749 = vmatpush3.bf16.xpose.msra.mxu0 %v3815_v61  ;;  %6767 = vmatpush3.bf16.xpose.msra.mxu1 %v4001_v41 }
 0x916   :  { %6750 = vmatprep.mubr.msk.bf16.mxu0 %vm7217_vm0, %v7216_v0  ;;  %6768 = vmatprep.mubr.msk.bf16.mxu1 %vm7217_vm0, %v7216_v0 }
 0x917   :  { %6760 = vmatprep.subr.bf16.mxu0 %v7216_v0  ;;  %6778 = vmatprep.subr.bf16.mxu1 %v7216_v0 }
 0x91c   :  { %6751 = vmatmul.mubr.msk.bf16.vlgmr.msra.gmra.mxu0 %vm194_vm1, %v7762_v23  ;;  %6769 = vmatmul.mubr.msk.bf16.vlgmr.msra.gmra.mxu1 %vm194_vm1, %v7744_v56 }
 0x91d   :  { %6761 = vmatpush3.bf16.xpose.msra.mxu0 %v3958_v44  ;;  %6779 = vmatpush3.bf16.xpose.msra.mxu1 %v4087_v45 }
 0x91e   :  { %6762 = vmatprep.mubr.msk.bf16.mxu0 %vm7217_vm0, %v7216_v0  ;;  %6780 = vmatprep.mubr.msk.bf16.mxu1 %vm7217_vm0, %v7216_v0 }
 0x91f   :  { %6772 = vmatprep.subr.bf16.mxu0 %v7216_v0  ;;  %6790 = vmatprep.subr.bf16.mxu1 %v7216_v0 }
 0x924   :  { %6763 = vmatmul.mubr.msk.bf16.vlgmr.msra.gmra.mxu0 %vm194_vm1, %v7744_v56  ;;  %6781 = vmatmul.mubr.msk.bf16.vlgmr.msra.gmra.mxu1 %vm194_vm1, %v7762_v23 }
 0x925   :  { %6773 = vmatpush3.bf16.xpose.msra.mxu0 %v4044_v48  ;;  %6791 = vmatpush3.bf16.xpose.msra.mxu1 %v4173_v51  ;;  %v6081_v48 = vld [vmem:[#allocation7 + $0x22] ss:$0 sm:$0xff] }
 0x926   :  { %6774 = vmatprep.mubr.msk.bf16.mxu0 %vm7217_vm0, %v7216_v0  ;;  %6792 = vmatprep.mubr.msk.bf16.mxu1 %vm7217_vm0, %v7216_v0 }
 0x927   :  { %6784 = vmatprep.subr.bf16.mxu0 %v7216_v0  ;;  %6802 = vmatprep.subr.bf16.mxu1 %v7216_v0 }
 0x92c   :  { %6775 = vmatmul.mubr.msk.bf16.vlgmr.msra.gmra.mxu0 %vm194_vm1, %v7744_v56  ;;  %6793 = vmatmul.mubr.msk.bf16.vlgmr.msra.gmra.mxu1 %vm194_vm1, %v7762_v23 }
 0x92d   :  { %6785 = vmatpush3.bf16.xpose.msra.mxu0 %v4130_v49  ;;  %6786 = vmatprep.mubr.msk.bf16.mxu0 %vm7217_vm0, %v7216_v0 }
 0x92e   :  { %6796 = vmatprep.subr.bf16.mxu0 %v7216_v0  ;;  %6804 = vmatprep.mubr.msk.bf16.mxu1 %vm7217_vm0, %v7216_v0 }
 0x934   :  { %6787 = vmatmul.mubr.msk.bf16.vlgmr.msra.gmra.mxu0 %vm194_vm1, %v7762_v23 }
 0x935   :  { %6797 = vmatpush3.bf16.xpose.msra.mxu0 %v4216_v59  ;;  %6798 = vmatprep.mubr.msk.bf16.mxu0 %vm7217_vm0, %v7216_v0 }
 0x936   :  { %6808 = vmatprep.subr.bf16.mxu0 %v7216_v0 }
 0x93c   :  { %6799 = vmatmul.mubr.msk.bf16.vlgmr.msra.gmra.mxu0 %vm194_vm1, %v7762_v23 }
 0x93d   :  { %6810 = vmatprep.mubr.msk.bf16.mxu0 %vm7217_vm0, %v7216_v0 }
 0x99c   :  { %v3146_v56 = vpop.f32.mrf.mxu0  ;;  %v3232_v60 = vpop.f32.mrf.mxu1 }
 0x99d   :  { %v3147_v51 = vadd.f32 %v6063_v42, %v3146_v56  ;;  %v6080_v56 = vld [vmem:[#allocation7 + $0x21] ss:$0 sm:$0xff] }
 0x99e   :  { %v6662_v63 = vpop.f32.mrf.mxu0  ;;  %v6674_v1 = vpop.f32.mrf.mxu1 }
 0x99f   :  { %v4258_v1 = vpack.c.bf16 %v3147_v51, %v3147_v51 }
 0x9a0   :  { %v3149_v2 = vpop.f32.mrf.mxu0  ;;  %v3235_v3 = vpop.f32.mrf.mxu1 }
 0x9a1   :  { %v6065_v3 = vld [vmem:[#allocation7 + $0x1a] ss:$0 sm:$0xff] }
 0x9a2   :  { %v6663_v4 = vpop.f32.mrf.mxu0  ;;  %v6675_v29 = vpop.f32.mrf.mxu1 }
 0x9a4   :  { %v7892_v5 = vpop.f32.mrf.mxu0  ;;  %v7894_v10 = vpop.f32.mrf.mxu1 }
 0x9a6   :  { %v6668_v11 = vpop.f32.mrf.mxu0  ;;  %v6686_v57 = vpop.f32.mrf.mxu1 }
 0x9a8   :  { %v3192_v12 = vpop.f32.mrf.mxu0  ;;  %v3324_v15 = vpop.f32.mrf.mxu1 }
 0x9a9   :  { %v6083_v15 = vld [vmem:[#allocation7 + $0x24] ss:$0 sm:$0xff] }
 0x9aa   :  { %v6669_v23 = vpop.f32.mrf.mxu0  ;;  %v6687_v13 = vpop.f32.mrf.mxu1 }
 0x9ab   :  { %v3233_v23 = vadd.f32 %v6065_v3, %v3232_v60 }
 0x9ac   :  { %v7896_v14 = vpop.f32.mrf.mxu0  ;;  %v7898_v16 = vpop.f32.mrf.mxu1 }
 0x9ae   :  { %v6680_v18 = vpop.f32.mrf.mxu0  ;;  %v6698_v62 = vpop.f32.mrf.mxu1 }
 0x9b0   :  { %v3278_v19 = vpop.f32.mrf.mxu0  ;;  %v3410_v20 = vpop.f32.mrf.mxu1 }
 0x9b2   :  { %v6681_v21 = vpop.f32.mrf.mxu0  ;;  %v6699_v22 = vpop.f32.mrf.mxu1 }
 0x9b3   :  { %v4260_v22 = vpack.c.bf16 %v3233_v23, %v3233_v23 }
 0x9b4   :  { %v7900_v24 = vpop.f32.mrf.mxu0  ;;  %v3550_v25 = vpop.f32.mrf.mxu1 }
 0x9b5   :  { %v3551_v39 = vadd.f32 %v6079_v55, %v3550_v25 }
 0x9b6   :  { %v6692_v40 = vpop.f32.mrf.mxu0  ;;  %v6710_v61 = vpop.f32.mrf.mxu1 }
 0x9b7   :  { %v4266_v41 = vpack.c.bf16 %v3551_v39, %v3551_v39  ;;  %v6064_v39 = vld [vmem:[#allocation7 + $0x19] ss:$0 sm:$0xff]  ;;  %v6067_v40 = vld [vmem:[#allocation7 + $0x1c] ss:$0 sm:$0xff] }
 0x9b8   :  { %v3367_v43 = vpop.f32.mrf.mxu0  ;;  %v3553_v44 = vpop.f32.mrf.mxu1 }
 0x9b9   :  { %v4278_v45 = vsel %vm1363_vm2, %v4266_v41, 0 }
 0x9ba   :  { %v6693_v47 = vpop.f32.mrf.mxu0  ;;  %v6711_v50 = vpop.f32.mrf.mxu1  ;;  %6803 = vmatpush3.bf16.xpose.msra.mxu1 %v4278_v45  ;;  %v6082_v45 = vld [vmem:[#allocation7 + $0x23] ss:$0 sm:$0xff] }
 0x9bb   :  { %6814 = vmatprep.subr.bf16.mxu1 %v7216_v0  ;;  %v6085_v47 = vld [vmem:[#allocation7 + $0x26] ss:$0 sm:$0xff]  ;;  %v3190_v50 = vadd.f32 %v6064_v39, %v7892_v5  ;;  %v6066_v5 = vld [vmem:[#allocation7 + $0x1b] ss:$0 sm:$0xff] }
 0x9bc   :  { %v7904_v52 = vpop.f32.mrf.mxu0  ;;  %v3636_v49 = vpop.f32.mrf.mxu1 }
 0x9bd   :  { %v3637_v58 = vadd.f32 %v6081_v48, %v3636_v49  ;;  %v3322_v48 = vadd.f32 %v6067_v40, %v7894_v10 }
 0x9be   :  { %v6704_v59 = vpop.f32.mrf.mxu0  ;;  %v6722_v63 = vpop.f32.mrf.mxu1 }
 0x9bf   :  { %v4268_v2 = vpack.c.bf16 %v3637_v58, %v3637_v58  ;;  %v4262_v3 = vpack.c.bf16 %v3322_v48, %v3322_v48 }
 0x9c0   :  { %v3453_v4 = vpop.f32.mrf.mxu0  ;;  %v3639_v29 = vpop.f32.mrf.mxu1 }
 0x9c1   :  { %v4370_v11 = vsel %vm1363_vm2, %v4268_v2, 0  ;;  %6805 = vmatmul.mubr.msk.bf16.vlgmr.msra.gmra.mxu1 %vm1363_vm2, %v4258_v1  ;;  %v4259_v2 = vpack.c.bf16 %v3190_v50, %v3190_v50  ;;  %v6086_v50 = vld [vmem:[#allocation7 + $0x27] ss:$0 sm:$0xff] }
 0x9c2   :  { %v6705_v57 = vpop.f32.mrf.mxu0  ;;  %v6723_v12 = vpop.f32.mrf.mxu1  ;;  %6815 = vmatpush3.bf16.xpose.msra.mxu1 %v4370_v11  ;;  %6816 = vmatprep.mubr.msk.bf16.mxu1 %vm7217_vm0, %v7216_v0  ;;  %v6069_v11 = vld [vmem:[#allocation7 + $0x1e] ss:$0 sm:$0xff] }
 0x9c3   :  { %6826 = vmatprep.subr.bf16.mxu1 %v7216_v0 }
 0x9c4   :  { %v3593_v13 = vpop.f32.mrf.mxu0  ;;  %v3722_v18 = vpop.f32.mrf.mxu1 }
 0x9c5   :  { %v3594_v62 = vadd.f32 %v6080_v56, %v3593_v13  ;;  %v3723_v19 = vadd.f32 %v6083_v15, %v3722_v18  ;;  %v6084_v13 = vld [vmem:[#allocation7 + $0x25] ss:$0 sm:$0xff]  ;;  %v6095_v18 = vld [vmem:[#allocation7 + $0x28] ss:$0 sm:$0xff] }
 0x9c6   :  { %v6716_v20 = vpop.f32.mrf.mxu0  ;;  %v6734_v21 = vpop.f32.mrf.mxu1 }
 0x9c7   :  { %v4267_v55 = vpack.c.bf16 %v3594_v62, %v3594_v62  ;;  %v4270_v25 = vpack.c.bf16 %v3723_v19, %v3723_v19  ;;  %v3276_v62 = vadd.f32 %v6066_v5, %v7896_v14  ;;  %v3408_v19 = vadd.f32 %v6069_v11, %v7898_v16 }
 0x9c8   :  { %v3596_v61 = vpop.f32.mrf.mxu0  ;;  %v3725_v41 = vpop.f32.mrf.mxu1 }
 0x9c9   :  { %v4324_v42 = vsel %vm1363_vm2, %v4267_v55, 0  ;;  %v4462_v43 = vsel %vm1363_vm2, %v4270_v25, 0  ;;  %6817 = vmatmul.mubr.msk.bf16.vlgmr.msra.gmra.mxu1 %vm1363_vm2, %v4260_v22  ;;  %v4261_v40 = vpack.c.bf16 %v3276_v62, %v3276_v62  ;;  %v4264_v14 = vpack.c.bf16 %v3408_v19, %v3408_v19  ;;  %v6068_v41 = vld [vmem:[#allocation7 + $0x1d] ss:$0 sm:$0xff] }
 0x9ca   :  { %v6717_v60 = vpop.f32.mrf.mxu0  ;;  %v6735_v44 = vpop.f32.mrf.mxu1  ;;  %6809 = vmatpush3.bf16.xpose.msra.mxu0 %v4324_v42  ;;  %6827 = vmatpush3.bf16.xpose.msra.mxu1 %v4462_v43  ;;  %v3365_v48 = vadd.f32 %v6068_v41, %v7900_v24 }
 0x9cb   :  { %6828 = vmatprep.mubr.msk.bf16.mxu1 %vm7217_vm0, %v7216_v0  ;;  %6820 = vmatprep.subr.bf16.mxu0 %v7216_v0 }
 0x9cc   :  { %v3679_v51 = vpop.f32.mrf.mxu0  ;;  %v3808_v49 = vpop.f32.mrf.mxu1  ;;  %6838 = vmatprep.subr.bf16.mxu1 %v7216_v0 }
 0x9cd   :  { %v3680_v58 = vadd.f32 %v6082_v45, %v3679_v51  ;;  %v3809_v59 = vadd.f32 %v6085_v47, %v3808_v49 }
 0x9ce   :  { %v6728_v63 = vpop.f32.mrf.mxu0  ;;  %v6746_v1 = vpop.f32.mrf.mxu1 }
 0x9cf   :  { %v4269_v4 = vpack.c.bf16 %v3680_v58, %v3680_v58  ;;  %v4272_v29 = vpack.c.bf16 %v3809_v59, %v3809_v59  ;;  %v4263_v1 = vpack.c.bf16 %v3365_v48, %v3365_v48 }
 0x9d0   :  { %v3682_v10 = vpop.f32.mrf.mxu0  ;;  %v3811_v57 = vpop.f32.mrf.mxu1 }
 0x9d1   :  { %v4416_v12 = vsel %vm1363_vm2, %v4269_v4, 0  ;;  %v4554_v56 = vsel %vm1363_vm2, %v4272_v29, 0  ;;  %6811 = vmatmul.mubr.msk.bf16.vlgmr.msra.gmra.mxu0 %vm1363_vm2, %v4259_v2  ;;  %6829 = vmatmul.mubr.msk.bf16.vlgmr.msra.gmra.mxu1 %vm1363_vm2, %v4262_v3  ;;  %v6070_v3 = vld [vmem:[#allocation7 + $0x1f] ss:$0 sm:$0xff]  ;;  %v6096_v10 = vld [vmem:[#allocation7 + $0x29] ss:$0 sm:$0xff] }
 0x9d2   :  { %v6729_v15 = vpop.f32.mrf.mxu0  ;;  %v6747_v23 = vpop.f32.mrf.mxu1  ;;  %6821 = vmatpush3.bf16.xpose.msra.mxu0 %v4416_v12  ;;  %6839 = vmatpush3.bf16.xpose.msra.mxu1 %v4554_v56  ;;  %v3451_v57 = vadd.f32 %v6070_v3, %v7904_v52 }
 0x9d3   :  { %6822 = vmatprep.mubr.msk.bf16.mxu0 %vm7217_vm0, %v7216_v0  ;;  %6840 = vmatprep.mubr.msk.bf16.mxu1 %vm7217_vm0, %v7216_v0 }
 0x9d4   :  { %v3765_v20 = vpop.f32.mrf.mxu0  ;;  %v3951_v21 = vpop.f32.mrf.mxu1  ;;  %6832 = vmatprep.subr.bf16.mxu0 %v7216_v0  ;;  %6850 = vmatprep.subr.bf16.mxu1 %v7216_v0 }
 0x9d5   :  { %v3766_v22 = vadd.f32 %v6084_v13, %v3765_v20  ;;  %v3952_v55 = vadd.f32 %v6095_v18, %v3951_v21  ;;  %v4265_v18 = vpack.c.bf16 %v3451_v57, %v3451_v57 }
 0x9d6   :  { %v6740_v25 = vpop.f32.mrf.mxu0  ;;  %v6758_v39 = vpop.f32.mrf.mxu1 }
 0x9d7   :  { %v4271_v61 = vpack.c.bf16 %v3766_v22, %v3766_v22  ;;  %v4917_v16 = vpack.c.bf16 %v3952_v55, %v3952_v55 }
 0x9d8   :  { %v3768_v42 = vpop.f32.mrf.mxu0  ;;  %v3954_v43 = vpop.f32.mrf.mxu1 }
 0x9d9   :  { %v4508_v60 = vsel %vm1363_vm2, %v4271_v61, 0  ;;  %v4929_v44 = vsel %vm2023_vm3, %v4917_v16, 0  ;;  %6823 = vmatmul.mubr.msk.bf16.vlgmr.msra.gmra.mxu0 %vm1363_vm2, %v4261_v40  ;;  %6841 = vmatmul.mubr.msk.bf16.vlgmr.msra.gmra.mxu1 %vm1363_vm2, %v4264_v14 }
 0x9da   :  { %v6741_v45 = vpop.f32.mrf.mxu0  ;;  %v6759_v47 = vpop.f32.mrf.mxu1  ;;  %6833 = vmatpush3.bf16.xpose.msra.mxu0 %v4508_v60  ;;  %6851 = vmatpush3.bf16.msra.mxu1 %v4929_v44 }
 0x9db   :  { %6834 = vmatprep.mubr.msk.bf16.mxu0 %vm7217_vm0, %v7216_v0  ;;  %6844 = vmatprep.subr.bf16.mxu0 %v7216_v0 }
 0x9dc   :  { %v3851_v51 = vpop.f32.mrf.mxu0  ;;  %v7940_v49 = vpop.f32.mrf.mxu1  ;;  %6852 = vmatprep.mubr.msk.bf16.mxu1 %vm7217_vm0, %v7216_v0  ;;  %6862 = vmatprep.subr.bf16.mxu1 %v7216_v0 }
 0x9dd   :  { %v3852_v58 = vadd.f32 %v6086_v50, %v3851_v51 }
 0x9de   :  { %v6752_v59 = vpop.f32.mrf.mxu0  ;;  %v6770_v63 = vpop.f32.mrf.mxu1 }
 0x9df   :  { %v4273_v2 = vpack.c.bf16 %v3852_v58, %v3852_v58 }
 0x9e0   :  { %v3854_v24 = vpop.f32.mrf.mxu0  ;;  %v4040_v4 = vpop.f32.mrf.mxu1 }
 0x9e1   :  { %v4600_v29 = vsel %vm1363_vm2, %v4273_v2, 0  ;;  %6835 = vmatmul.mubr.msk.bf16.vlgmr.msra.gmra.mxu0 %vm1363_vm2, %v4263_v1 }
 0x9e2   :  { %v6753_v5 = vpop.f32.mrf.mxu0  ;;  %v6771_v11 = vpop.f32.mrf.mxu1  ;;  %6845 = vmatpush3.bf16.xpose.msra.mxu0 %v4600_v29  ;;  %6846 = vmatprep.mubr.msk.bf16.mxu0 %vm7217_vm0, %v7216_v0 }
 0x9e3   :  { %6856 = vmatprep.subr.bf16.mxu0 %v7216_v0 }
 0x9e4   :  { %v3994_v12 = vpop.f32.mrf.mxu0  ;;  %v7951_v56 = vpop.f32.mrf.mxu1 }
 0x9e5   :  { %v3995_v15 = vadd.f32 %v6096_v10, %v3994_v12 }
 0x9e6   :  { %v6764_v23 = vpop.f32.mrf.mxu0  ;;  %v6782_v13 = vpop.f32.mrf.mxu1 }
 0x9e7   :  { %v4918_v62 = vpack.c.bf16 %v3995_v15, %v3995_v15 }
 0x9e8   :  { %v3997_v19 = vpop.f32.mrf.mxu0  ;;  %v4126_v20 = vpop.f32.mrf.mxu1 }
 0x9e9   :  { %v4975_v21 = vsel %vm2023_vm3, %v4918_v62, 0  ;;  %6847 = vmatmul.mubr.msk.bf16.vlgmr.msra.gmra.mxu0 %vm1363_vm2, %v4265_v18 }
 0x9ea   :  { %v6765_v22 = vpop.f32.mrf.mxu0  ;;  %v6783_v55 = vpop.f32.mrf.mxu1  ;;  %6857 = vmatpush3.bf16.msra.mxu0 %v4975_v21  ;;  %6858 = vmatprep.mubr.msk.bf16.mxu0 %vm7217_vm0, %v7216_v0 }
 0x9eb   :  { %6868 = vmatprep.subr.bf16.mxu0 %v7216_v0 }
 0x9ec   :  { %v7958_v52 = vpop.f32.mrf.mxu0  ;;  %v7960_v25 = vpop.f32.mrf.mxu1 }
 0x9ee   :  { %v6776_v39 = vpop.f32.mrf.mxu0  ;;  %v6794_v40 = vpop.f32.mrf.mxu1 }
 0x9f0   :  { %v4083_v14 = vpop.f32.mrf.mxu0  ;;  %v4212_v61 = vpop.f32.mrf.mxu1 }
 0x9f2   :  { %v6777_v16 = vpop.f32.mrf.mxu0  ;;  %v6795_v41 = vpop.f32.mrf.mxu1 }
 0x9f4   :  { %v7962_v42 = vpop.f32.mrf.mxu0 }
 0x9f6   :  { %v6788_v43 = vpop.f32.mrf.mxu0 }
 0x9f8   :  { %v4169_v60 = vpop.f32.mrf.mxu0 }
 0x9fa   :  { %v6789_v44 = vpop.f32.mrf.mxu0 }
 0x9fc   :  { %v7964_v45 = vpop.f32.mrf.mxu0 }
 0x9fe   :  { %v6800_v47 = vpop.f32.mrf.mxu0 }
 0xa00   :  { %v4255_v50 = vpop.f32.mrf.mxu0 }
 0xa02   :  { %v6801_v48 = vpop.f32.mrf.mxu0 }
 0xa81   :  { %v4314_v51 = vpop.f32.mrf.mxu1 }
 0xa82   :  { %v4642_v58 = vmul.f32 0.35355338, %v4314_v51 }
 0xa83   :  { %v6806_v59 = vpop.f32.mrf.mxu1 }
 0xa84   :  { %v4650_v63 = vsel %vm1363_vm2, %v4642_v58, -inf }
 0xa85   :  { %4651 = vmax.xlane.f32.xlu0 %v4650_v63  ;;  %v4317_v1 = vpop.f32.mrf.mxu1 }
 0xa87   :  { %v6807_v2 = vpop.f32.mrf.mxu1 }
 0xa89   :  { %v4406_v3 = vpop.f32.mrf.mxu1 }
 0xa8a   :  { %v4644_v24 = vmul.f32 0.35355338, %v4406_v3 }
 0xa8b   :  { %v6818_v4 = vpop.f32.mrf.mxu1 }
 0xa8c   :  { %v4656_v29 = vsel %vm1363_vm2, %v4644_v24, -inf }
 0xa8d   :  { %4657 = vmax.xlane.f32.xlu0 %v4656_v29  ;;  %v4409_v5 = vpop.f32.mrf.mxu1 }
 0xa8f   :  { %v6819_v11 = vpop.f32.mrf.mxu1 }
 0xa91   :  { %v4360_v10 = vpop.f32.mrf.mxu0  ;;  %v4498_v57 = vpop.f32.mrf.mxu1 }
 0xa92   :  { %v4643_v12 = vmul.f32 0.35355338, %v4360_v10  ;;  %v4646_v15 = vmul.f32 0.35355338, %v4498_v57 }
 0xa93   :  { %v6812_v23 = vpop.f32.mrf.mxu0  ;;  %v6830_v13 = vpop.f32.mrf.mxu1 }
 0xa94   :  { %v4653_v18 = vsel %vm1363_vm2, %v4643_v12, -inf  ;;  %v4662_v62 = vsel %vm1363_vm2, %v4646_v15, -inf }
 0xa95   :  { %4654 = vmax.xlane.f32.xlu1 %v4653_v18  ;;  %v4363_v19 = vpop.f32.mrf.mxu0  ;;  %4663 = vmax.xlane.f32.xlu0 %v4662_v62  ;;  %v4501_v20 = vpop.f32.mrf.mxu1 }
 0xa97   :  { %v6813_v21 = vpop.f32.mrf.mxu0  ;;  %v6831_v22 = vpop.f32.mrf.mxu1 }
 0xa99   :  { %v4452_v55 = vpop.f32.mrf.mxu0  ;;  %v4590_v39 = vpop.f32.mrf.mxu1 }
 0xa9a   :  { %v4645_v40 = vmul.f32 0.35355338, %v4452_v55  ;;  %v4648_v14 = vmul.f32 0.35355338, %v4590_v39 }
 0xa9b   :  { %v6824_v61 = vpop.f32.mrf.mxu0  ;;  %v6842_v16 = vpop.f32.mrf.mxu1 }
 0xa9c   :  { %v4659_v41 = vsel %vm1363_vm2, %v4645_v40, -inf  ;;  %v4668_v43 = vsel %vm1363_vm2, %v4648_v14, -inf }
 0xa9d   :  { %4660 = vmax.xlane.f32.xlu1 %v4659_v41  ;;  %v4455_v60 = vpop.f32.mrf.mxu0  ;;  %4669 = vmax.xlane.f32.xlu0 %v4668_v43  ;;  %v4593_v44 = vpop.f32.mrf.mxu1 }
 0xa9f   :  { %v6825_v47 = vpop.f32.mrf.mxu0  ;;  %v6843_v50 = vpop.f32.mrf.mxu1 }
 0xaa1   :  { %v4544_v48 = vpop.f32.mrf.mxu0 }
 0xaa2   :  { %v4647_v51 = vmul.f32 0.35355338, %v4544_v48 }
 0xaa3   :  { %v6836_v59 = vpop.f32.mrf.mxu0 }
 0xaa4   :  { %v4665_v63 = vsel %vm1363_vm2, %v4647_v51, -inf }
 0xaa5   :  { %4666 = vmax.xlane.f32.xlu1 %v4665_v63  ;;  %v4547_v1 = vpop.f32.mrf.mxu0 }
 0xaa7   :  { %v6837_v2 = vpop.f32.mrf.mxu0 }
 0xaa9   :  { %v4636_v3 = vpop.f32.mrf.mxu0 }
 0xaaa   :  { %v4649_v4 = vmul.f32 0.35355338, %v4636_v3 }
 0xaab   :  { %v6848_v29 = vpop.f32.mrf.mxu0 }
 0xaac   :  { %v4671_v5 = vsel %vm1363_vm2, %v4649_v4, -inf }
 0xaad   :  { %4672 = vmax.xlane.f32.xlu1 %v4671_v5  ;;  %v4639_v11 = vpop.f32.mrf.mxu0 }
 0xaaf   :  { %v6849_v10 = vpop.f32.mrf.mxu0 }
 0xb0e   :  { %v4652_v57 = vpop.xlane.xlu0 %4651 }
 0xb0f   :  { %v4674_v23 = vsub.f32 %v4642_v58, %v4652_v57 }
 0xb11   :  { %v4682_v13 = vmul.f32 1.442695, %v4674_v23 }
 0xb13   :  { %7031 = vpow2.f32 %v4682_v13 }
 0xb16   :  { %v4658_v18 = vpop.xlane.xlu0 %4657 }
 0xb17   :  { %v4676_v62 = vsub.f32 %v4644_v24, %v4658_v18 }
 0xb19   :  { %v4686_v19 = vmul.f32 1.442695, %v4676_v62  ;;  %v6097_v62 = vld [vmem:[#allocation7 + $0x2a] ss:$0 sm:$0xff] }
 0xb1b   :  { %7033 = vpow2.f32 %v4686_v19 }
 0xb1e   :  { %v4655_v20 = vpop.xlane.xlu1 %4654  ;;  %v4664_v21 = vpop.xlane.xlu0 %4663 }
 0xb1f   :  { %v4675_v22 = vsub.f32 %v4643_v12, %v4655_v20  ;;  %v4678_v55 = vsub.f32 %v4646_v15, %v4664_v21  ;;  %v4038_v20 = vadd.f32 %v6097_v62, %v7940_v49 }
 0xb20   :  { %v7032_v39 = vpop.eup %7031 }
 0xb21   :  { %v4684_v61 = vmul.f32 1.442695, %v4675_v22  ;;  %v4690_v16 = vmul.f32 1.442695, %v4678_v55  ;;  %v4698_v41 = vsel %vm1363_vm2, %v7032_v39, 0.0  ;;  %v4919_v22 = vpack.c.bf16 %v4038_v20, %v4038_v20 }
 0xb22   :  { %4699 = vadd.xlane.f32.xlu0 %v4698_v41 }
 0xb23   :  { %7035 = vpow2.f32 %v4684_v61  ;;  %v6099_v61 = vld [vmem:[#allocation7 + $0x2c] ss:$0 sm:$0xff] }
 0xb24   :  { %7037 = vpow2.f32 %v4690_v16 }
 0xb26   :  { %v4661_v43 = vpop.xlane.xlu1 %4660  ;;  %v4670_v58 = vpop.xlane.xlu0 %4669 }
 0xb27   :  { %v4677_v60 = vsub.f32 %v4645_v40, %v4661_v43  ;;  %v4680_v44 = vsub.f32 %v4648_v14, %v4670_v58  ;;  %v5021_v58 = vsel %vm2023_vm3, %v4919_v22, 0 }
 0xb28   :  { %v7034_v47 = vpop.eup %7033 }
 0xb29   :  { %v4688_v24 = vmul.f32 1.442695, %v4677_v60  ;;  %v4694_v50 = vmul.f32 1.442695, %v4680_v44  ;;  %v4704_v48 = vsel %vm1363_vm2, %v7034_v47, 0.0  ;;  %v4124_v60 = vadd.f32 %v6099_v61, %v7951_v56 }
 0xb2a   :  { %4705 = vadd.xlane.f32.xlu0 %v4704_v48  ;;  %v6101_v48 = vld [vmem:[#allocation7 + $0x2e] ss:$0 sm:$0xff] }
 0xb2b   :  { %7039 = vpow2.f32 %v4688_v24  ;;  %v6098_v24 = vld [vmem:[#allocation7 + $0x2b] ss:$0 sm:$0xff] }
 0xb2c   :  { %7041 = vpow2.f32 %v4694_v50 }
 0xb2e   :  { %v4667_v12 = vpop.xlane.xlu1 %4666 }
 0xb2f   :  { %v4679_v15 = vsub.f32 %v4647_v51, %v4667_v12 }
 0xb30   :  { %v7976_v59 = vpop.eup %7035 }
 0xb31   :  { %v7978_v63 = vpop.eup %7037  ;;  %v4692_v1 = vmul.f32 1.442695, %v4679_v15  ;;  %v4701_v2 = vsel %vm1363_vm2, %v7976_v59, 0.0 }
 0xb32   :  { %4702 = vadd.xlane.f32.xlu1 %v4701_v2  ;;  %v4710_v40 = vsel %vm1363_vm2, %v7978_v63, 0.0 }
 0xb33   :  { %7043 = vpow2.f32 %v4692_v1  ;;  %4711 = vadd.xlane.f32.xlu0 %v4710_v40  ;;  %v4081_v40 = vadd.f32 %v6098_v24, %v7958_v52 }
 0xb36   :  { %v4673_v14 = vpop.xlane.xlu1 %4672 }
 0xb37   :  { %v4681_v3 = vsub.f32 %v4649_v4, %v4673_v14  ;;  %v4210_v14 = vadd.f32 %v6101_v48, %v7960_v25 }
 0xb38   :  { %v7984_v29 = vpop.eup %7039 }
 0xb39   :  { %v7986_v5 = vpop.eup %7041  ;;  %v4696_v51 = vmul.f32 1.442695, %v4681_v3  ;;  %v4707_v11 = vsel %vm1363_vm2, %v7984_v29, 0.0 }
 0xb3a   :  { %4708 = vadd.xlane.f32.xlu1 %v4707_v11  ;;  %v4716_v10 = vsel %vm1363_vm2, %v7986_v5, 0.0  ;;  %v4920_v11 = vpack.c.bf16 %v4081_v40, %v4081_v40 }
 0xb3b   :  { %7045 = vpow2.f32 %v4696_v51  ;;  %4717 = vadd.xlane.f32.xlu0 %v4716_v10 }
 0xb40   :  { %v7992_v57 = vpop.eup %7043 }
 0xb41   :  { %v4713_v23 = vsel %vm1363_vm2, %v7992_v57, 0.0 }
 0xb42   :  { %4714 = vadd.xlane.f32.xlu1 %v4713_v23  ;;  %v4923_v23 = vpack.c.bf16 %v4210_v14, %v4210_v14 }
 0xb44   :  { %v5205_v20 = vsel %vm2023_vm3, %v4923_v23, 0 }
 0xb48   :  { %v7996_v4 = vpop.eup %7045 }
 0xb49   :  { %v4719_v13 = vsel %vm1363_vm2, %v7996_v4, 0.0 }
 0xb4a   :  { %4720 = vadd.xlane.f32.xlu1 %v4719_v13 }
 0xbab   :  { %v4700_v18 = vpop.xlane.xlu0 %4699 }
 0xbac   :  { %7047 = vrcp.f32 %v4700_v18 }
 0xbb3   :  { %v4706_v19 = vpop.xlane.xlu0 %4705 }
 0xbb4   :  { %7049 = vrcp.f32 %v4706_v19  ;;  %v5067_v19 = vsel %vm2023_vm3, %v4920_v11, 0 }
 0xbb9   :  { %v7048_v21 = vpop.eup %7047 }
 0xbba   :  { %v8001_v55 = vmul.f32 %v7048_v21, %v7032_v39  ;;  %v4921_v39 = vpack.c.bf16 %v4124_v60, %v4124_v60 }
 0xbbb   :  { %v4703_v16 = vpop.xlane.xlu1 %4702 }
 0xbbc   :  { %7051 = vrcp.f32 %v4703_v16  ;;  %v4712_v41 = vpop.xlane.xlu0 %4711  ;;  %v4909_v43 = vpack.c.bf16 %v8001_v55, %v8001_v55  ;;  %v5113_v2 = vsel %vm2023_vm3, %v4921_v39, 0 }
 0xbbd   :  { %7053 = vrcp.f32 %v4712_v41 }
 0xbbe   :  { %6853 = vmatmul.mubr.msk.bf16.vlgmr.msra.gmra.mxu1 %vm1363_vm2, %v4909_v43 }
 0xbbf   :  { %6863 = vmatpush3.bf16.msra.mxu1 %v5021_v58  ;;  %6864 = vmatprep.mubr.msk.bf16.mxu1 %vm7217_vm0, %v7216_v0 }
 0xbc0   :  { %6874 = vmatprep.subr.bf16.mxu1 %v7216_v0 }
 0xbc1   :  { %v7050_v49 = vpop.eup %7049 }
 0xbc2   :  { %v4732_v44 = vmul.f32 %v7050_v49, %v7034_v47  ;;  %v6100_v47 = vld [vmem:[#allocation7 + $0x2d] ss:$0 sm:$0xff] }
 0xbc3   :  { %v4709_v50 = vpop.xlane.xlu1 %4708  ;;  %v4167_v13 = vadd.f32 %v6100_v47, %v7962_v42 }
 0xbc4   :  { %7055 = vrcp.f32 %v4709_v50  ;;  %v4718_v12 = vpop.xlane.xlu0 %4717  ;;  %v4911_v15 = vpack.c.bf16 %v4732_v44, %v4732_v44  ;;  %v4738_v1 = vcombine.low %v8001_v55, %v4732_v44  ;;  %v4739_v56 = vcombine.high %v8001_v55, %v4732_v44 }
 0xbc5   :  { %7057 = vrcp.f32 %v4718_v12  ;;  %v4922_v21 = vpack.c.bf16 %v4167_v13, %v4167_v13 }
 0xbc6   :  { %6865 = vmatmul.mubr.msk.bf16.vlgmr.msra.gmra.mxu1 %vm1363_vm2, %v4911_v15 }
 0xbc7   :  { %6875 = vmatpush3.bf16.msra.mxu1 %v5113_v2  ;;  %6876 = vmatprep.mubr.msk.bf16.mxu1 %vm7217_vm0, %v7216_v0  ;;  %v5159_v55 = vsel %vm2023_vm3, %v4922_v21, 0 }
 0xbc8   :  { %6886 = vmatprep.subr.bf16.mxu1 %v7216_v0 }
 0xbc9   :  { %v7052_v3 = vpop.eup %7051 }
 0xbca   :  { %v7054_v51 = vpop.eup %7053  ;;  %v4731_v10 = vmul.f32 %v7052_v3, %v7976_v59 }
 0xbcb   :  { %v8023_v52 = vmul.f32 %v7054_v51, %v7978_v63  ;;  %v4715_v18 = vpop.xlane.xlu1 %4714  ;;  %v6102_v63 = vld [vmem:[#allocation7 + $0x2f] ss:$0 sm:$0xff] }
 0xbcc   :  { %7059 = vrcp.f32 %v4715_v18  ;;  %v4910_v25 = vpack.c.bf16 %v4731_v10, %v4731_v10  ;;  %v4253_v60 = vadd.f32 %v6102_v63, %v7964_v45 }
 0xbcd   :  { %v4913_v62 = vpack.c.bf16 %v8023_v52, %v8023_v52 }
 0xbce   :  { %6859 = vmatmul.mubr.msk.bf16.vlgmr.msra.gmra.mxu0 %vm1363_vm2, %v4910_v25  ;;  %v4924_v2 = vpack.c.bf16 %v4253_v60, %v4253_v60 }
 0xbcf   :  { %6869 = vmatpush3.bf16.msra.mxu0 %v5067_v19  ;;  %6877 = vmatmul.mubr.msk.bf16.vlgmr.msra.gmra.mxu1 %vm1363_vm2, %v4913_v62 }
 0xbd0   :  { %6887 = vmatpush3.bf16.msra.mxu1 %v5205_v20  ;;  %6870 = vmatprep.mubr.msk.bf16.mxu0 %vm7217_vm0, %v7216_v0  ;;  %v5251_v14 = vsel %vm2023_vm3, %v4924_v2, 0 }
 0xbd1   :  { %v7056_v42 = vpop.eup %7055  ;;  %6880 = vmatprep.subr.bf16.mxu0 %v7216_v0  ;;  %6888 = vmatprep.mubr.msk.bf16.mxu1 %vm7217_vm0, %v7216_v0 }
 0xbd2   :  { %v7058_v59 = vpop.eup %7057  ;;  %v4733_v22 = vmul.f32 %v7056_v42, %v7984_v29  ;;  %6898 = vmatprep.subr.bf16.mxu1 %v7216_v0  ;;  %v4746_v29 = vrot.slane %v4738_v1, %v7594_v46 }
 0xbd3   :  { %v4736_v61 = vmul.f32 %v7058_v59, %v7986_v5  ;;  %v4721_v16 = vpop.xlane.xlu1 %4720  ;;  %v4753_v5 = vrot.slane %v4739_v56, %v7594_v46 }
 0xbd4   :  { %7061 = vrcp.f32 %v4721_v16  ;;  %v4912_v41 = vpack.c.bf16 %v4733_v22, %v4733_v22  ;;  %v4754_v43 = vcombine.low %v4731_v10, %v4733_v22  ;;  %v4755_v58 = vcombine.high %v4731_v10, %v4733_v22 }
 0xbd5   :  { %v4915_v49 = vpack.c.bf16 %v4736_v61, %v4736_v61  ;;  %v4770_v39 = vcombine.low %v8023_v52, %v4736_v61  ;;  %v4771_v44 = vcombine.high %v8023_v52, %v4736_v61 }
 0xbd6   :  { %6871 = vmatmul.mubr.msk.bf16.vlgmr.msra.gmra.mxu0 %vm1363_vm2, %v4912_v41  ;;  %v4762_v24 = vrot.slane %v4754_v43, %v7594_v46  ;;  %v4769_v50 = vrot.slane %v4755_v58, %v7594_v46 }
 0xbd7   :  { %6881 = vmatpush3.bf16.msra.mxu0 %v5159_v55  ;;  %6889 = vmatmul.mubr.msk.bf16.vlgmr.msra.gmra.mxu1 %vm1363_vm2, %v4915_v49  ;;  %v4785_v13 = vrot.slane %v4771_v44, %v7594_v46  ;;  %v3041_v49 = vld [vmem:[#allocation5 + $0xe0] sm:$0xf]  ;;  %v3042_v44 = vld [vmem:[#allocation5 + $0xe4] sm:$0xf] }
 0xbd8   :  { %6882 = vmatprep.mubr.msk.bf16.mxu0 %vm7217_vm0, %v7216_v0  ;;  %6892 = vmatprep.subr.bf16.mxu0 %v7216_v0  ;;  %v4803_v45 = vcombine.high %v4746_v29, %v4762_v24  ;;  %v4802_v48 = vcombine.low %v4746_v29, %v4762_v24  ;;  %v4818_v12 = vcombine.low %v4753_v5, %v4769_v50  ;;  %v5351_v29 = vsel %vm2023_vm3, %v3042_v44, 0  ;;  %v3043_v24 = vld [vmem:[#allocation5 + $0xe8] sm:$0xf]  ;;  %v3046_v44 = vld [vmem:[#allocation5 + $0xf4] sm:$0xf] }
 0xbd9   :  { %v7060_v15 = vpop.eup %7059  ;;  %6900 = vmatprep.mubr.msk.bf16.mxu1 %vm7217_vm0, %v7216_v0  ;;  %v4819_v1 = vcombine.high %v4753_v5, %v4769_v50 }
 0xbda   :  { %v4735_v56 = vmul.f32 %v7060_v15, %v7992_v57  ;;  %v4778_v57 = vrot.slane %v4770_v39, %v7594_v46  ;;  %v8069_v19 = vrot.slane %v4803_v45, %v7619_v8  ;;  %v8072_v20 = vrot.slane %v4802_v48, %v7619_v8 }
 0xbdb   :  { %v8087_v63 = vrot.slane %v4818_v12, %v7619_v8  ;;  %v8090_v22 = vrot.slane %v4819_v1, %v7619_v8  ;;  %v5305_v39 = vsel %vm2023_vm3, %v3041_v49, 0  ;;  %v5397_v45 = vsel %vm2023_vm3, %v3043_v24, 0  ;;  %v3045_v1 = vld [vmem:[#allocation5 + $0xf0] sm:$0xf] }
 0xbdc   :  { %v4914_v40 = vpack.c.bf16 %v4735_v56, %v4735_v56  ;;  %6899 = vmatpush3.bf16.msra.mxu1 %v5305_v39 }
 0xbdd   :  { %6910 = vmatprep.subr.bf16.mxu1 %v7216_v0 }
 0xbde   :  { %6883 = vmatmul.mubr.msk.bf16.vlgmr.msra.gmra.mxu0 %vm1363_vm2, %v4914_v40  ;;  %v5489_v40 = vsel %vm2023_vm3, %v3045_v1, 0 }
 0xbdf   :  { %6893 = vmatpush3.bf16.msra.mxu0 %v5251_v14  ;;  %6894 = vmatprep.mubr.msk.bf16.mxu0 %vm7217_vm0, %v7216_v0 }
 0xbe0   :  { %6904 = vmatprep.subr.bf16.mxu0 %v7216_v0 }
 0xbe1   :  { %v7062_v47 = vpop.eup %7061 }
 0xbe2   :  { %v4737_v3 = vmul.f32 %v7062_v47, %v7996_v4 }
 0xbe4   :  { %v4916_v51 = vpack.c.bf16 %v4737_v3, %v4737_v3  ;;  %v4786_v11 = vcombine.low %v4735_v56, %v4737_v3  ;;  %v4787_v10 = vcombine.high %v4735_v56, %v4737_v3 }
 0xbe6   :  { %6895 = vmatmul.mubr.msk.bf16.vlgmr.msra.gmra.mxu0 %vm1363_vm2, %v4916_v51  ;;  %v4794_v23 = vrot.slane %v4786_v11, %v7594_v46  ;;  %v4801_v52 = vrot.slane %v4787_v10, %v7594_v46  ;;  %v3044_v51 = vld [vmem:[#allocation5 + $0xec] sm:$0xf]  ;;  %v3047_v11 = vld [vmem:[#allocation5 + $0xf8] sm:$0xf] }
 0xbe7   :  { %6906 = vmatprep.mubr.msk.bf16.mxu0 %vm7217_vm0, %v7216_v0  ;;  %6905 = vmatpush3.bf16.msra.mxu0 %v5351_v29 }
 0xbe8   :  { %v4835_v18 = vcombine.high %v4778_v57, %v4794_v23  ;;  %v4834_v25 = vcombine.low %v4778_v57, %v4794_v23  ;;  %v4850_v62 = vcombine.low %v4785_v13, %v4801_v52  ;;  %v4851_v4 = vcombine.high %v4785_v13, %v4801_v52  ;;  %6916 = vmatprep.subr.bf16.mxu0 %v7216_v0 }
 0xbe9   :  { %v5443_v13 = vsel %vm2023_vm3, %v3044_v51, 0 }
 0xbea   :  { %v8075_v21 = vrot.slane %v4835_v18, %v7619_v8  ;;  %v8078_v42 = vrot.slane %v4834_v25, %v7619_v8  ;;  %v8081_v46 = vrot.slane %v4850_v62, %v7619_v8  ;;  %v8084_v59 = vrot.slane %v4851_v4, %v7619_v8 }
 0xbeb   :  { %v5581_v25 = vsel %vm2023_vm3, %v3047_v11, 0 }
 0xbec   :  { %v4868_v55 = vcombine.low %v8069_v19, %v8075_v21  ;;  %v4866_v61 = vcombine.low %v8072_v20, %v8078_v42  ;;  %v4867_v16 = vcombine.high %v8072_v20, %v8078_v42  ;;  %v4869_v41 = vcombine.high %v8069_v19, %v8075_v21 }
 0xbed   :  { %v4871_v43 = vcombine.high %v8087_v63, %v8081_v46  ;;  %v4870_v58 = vcombine.low %v8087_v63, %v8081_v46  ;;  %v4873_v8 = vcombine.high %v8090_v22, %v8084_v59  ;;  %v4872_v60 = vcombine.low %v8090_v22, %v8084_v59 }
 0xc7e   :  { %v4965_v5 = vpop.f32.mrf.mxu1 }
 0xc7f   :  { %v5293_v50 = vpack.c.bf16 %v4965_v5, %v4965_v5 }
 0xc80   :  { %v6854_v48 = vpop.f32.mrf.mxu1 }
 0xc81   :  { %6901 = vmatmul.mubr.msk.bf16.vlgmr.msra.gmra.mxu1 %vm1363_vm2, %v5293_v50 }
 0xc82   :  { %v4968_v12 = vpop.f32.mrf.mxu1  ;;  %6911 = vmatpush3.bf16.msra.mxu1 %v5397_v45  ;;  %6912 = vmatprep.mubr.msk.bf16.mxu1 %vm7217_vm0, %v7216_v0  ;;  %v5535_v45 = vsel %vm2023_vm3, %v3046_v44, 0 }
 0xc83   :  { %6922 = vmatprep.subr.bf16.mxu1 %v7216_v0 }
 0xc84   :  { %v6855_v15 = vpop.f32.mrf.mxu1 }
 0xc86   :  { %v5057_v2 = vpop.f32.mrf.mxu1 }
 0xc87   :  { %v5295_v56 = vpack.c.bf16 %v5057_v2, %v5057_v2 }
 0xc88   :  { %v6866_v14 = vpop.f32.mrf.mxu1 }
 0xc89   :  { %6913 = vmatmul.mubr.msk.bf16.vlgmr.msra.gmra.mxu1 %vm1363_vm2, %v5295_v56 }
 0xc8a   :  { %v5060_v47 = vpop.f32.mrf.mxu1  ;;  %6923 = vmatpush3.bf16.msra.mxu1 %v5489_v40  ;;  %6924 = vmatprep.mubr.msk.bf16.mxu1 %vm7217_vm0, %v7216_v0  ;;  %v3048_v40 = vld [vmem:[#allocation5 + $0xfc] sm:$0xf] }
 0xc8b   :  { %6934 = vmatprep.subr.bf16.mxu1 %v7216_v0  ;;  %v5627_v51 = vsel %vm2023_vm3, %v3048_v40, 0 }
 0xc8c   :  { %v6867_v3 = vpop.f32.mrf.mxu1 }
 0xc8e   :  { %v5011_v10 = vpop.f32.mrf.mxu0 }
 0xc8f   :  { %v5294_v57 = vpack.c.bf16 %v5011_v10, %v5011_v10  ;;  %v5149_v23 = vpop.f32.mrf.mxu1 }
 0xc90   :  { %v5297_v52 = vpack.c.bf16 %v5149_v23, %v5149_v23  ;;  %v6860_v18 = vpop.f32.mrf.mxu0 }
 0xc91   :  { %v6878_v62 = vpop.f32.mrf.mxu1  ;;  %6907 = vmatmul.mubr.msk.bf16.vlgmr.msra.gmra.mxu0 %vm1363_vm2, %v5294_v57 }
 0xc92   :  { %6925 = vmatmul.mubr.msk.bf16.vlgmr.msra.gmra.mxu1 %vm1363_vm2, %v5297_v52  ;;  %v5014_v4 = vpop.f32.mrf.mxu0  ;;  %6917 = vmatpush3.bf16.msra.mxu0 %v5443_v13 }
 0xc93   :  { %v5152_v49 = vpop.f32.mrf.mxu1  ;;  %6935 = vmatpush3.bf16.msra.mxu1 %v5581_v25  ;;  %6918 = vmatprep.mubr.msk.bf16.mxu0 %vm7217_vm0, %v7216_v0 }
 0xc94   :  { %v6861_v39 = vpop.f32.mrf.mxu0  ;;  %6936 = vmatprep.mubr.msk.bf16.mxu1 %vm7217_vm0, %v7216_v0  ;;  %6928 = vmatprep.subr.bf16.mxu0 %v7216_v0 }
 0xc95   :  { %v6879_v29 = vpop.f32.mrf.mxu1  ;;  %6946 = vmatprep.subr.bf16.mxu1 %v7216_v0 }
 0xc96   :  { %v5103_v24 = vpop.f32.mrf.mxu0 }
 0xc97   :  { %v5296_v5 = vpack.c.bf16 %v5103_v24, %v5103_v24  ;;  %v5241_v50 = vpop.f32.mrf.mxu1 }
 0xc98   :  { %v5299_v48 = vpack.c.bf16 %v5241_v50, %v5241_v50  ;;  %v6872_v12 = vpop.f32.mrf.mxu0 }
 0xc99   :  { %v6890_v15 = vpop.f32.mrf.mxu1  ;;  %6919 = vmatmul.mubr.msk.bf16.vlgmr.msra.gmra.mxu0 %vm1363_vm2, %v5296_v5 }
 0xc9a   :  { %6937 = vmatmul.mubr.msk.bf16.vlgmr.msra.gmra.mxu1 %vm1363_vm2, %v5299_v48  ;;  %v5106_v1 = vpop.f32.mrf.mxu0  ;;  %6929 = vmatpush3.bf16.msra.mxu0 %v5535_v45 }
 0xc9b   :  { %v5244_v2 = vpop.f32.mrf.mxu1  ;;  %6930 = vmatprep.mubr.msk.bf16.mxu0 %vm7217_vm0, %v7216_v0  ;;  %6940 = vmatprep.subr.bf16.mxu0 %v7216_v0 }
 0xc9c   :  { %v6873_v56 = vpop.f32.mrf.mxu0  ;;  %6950 = vmatprep.mubr.msk.bf16.mxu1 %vm7217_vm0, %v7216_v0 }
 0xc9d   :  { %v6891_v14 = vpop.f32.mrf.mxu1 }
 0xc9e   :  { %v5195_v47 = vpop.f32.mrf.mxu0 }
 0xc9f   :  { %v5298_v3 = vpack.c.bf16 %v5195_v47, %v5195_v47 }
 0xca0   :  { %v6884_v11 = vpop.f32.mrf.mxu0 }
 0xca1   :  { %6931 = vmatmul.mubr.msk.bf16.vlgmr.msra.gmra.mxu0 %vm1363_vm2, %v5298_v3 }
 0xca2   :  { %v5198_v10 = vpop.f32.mrf.mxu0  ;;  %6941 = vmatpush3.bf16.msra.mxu0 %v5627_v51  ;;  %6942 = vmatprep.mubr.msk.bf16.mxu0 %vm7217_vm0, %v7216_v0 }
 0xca3   :  { %6954 = vmatprep.subr.bf16.mxu0 %v7216_v0  ;;  %v6135_v10 = vld [vmem:[#allocation10 + $0x7] ss:$0 sm:$0xff] }
 0xca4   :  { %v6885_v57 = vpop.f32.mrf.mxu0 }
 0xca6   :  { %v5287_v23 = vpop.f32.mrf.mxu0 }
 0xca7   :  { %v5300_v13 = vpack.c.bf16 %v5287_v23, %v5287_v23 }
 0xca8   :  { %v6896_v52 = vpop.f32.mrf.mxu0 }
 0xca9   :  { %6943 = vmatmul.mubr.msk.bf16.vlgmr.msra.gmra.mxu0 %vm1363_vm2, %v5300_v13 }
 0xcaa   :  { %v5290_v18 = vpop.f32.mrf.mxu0  ;;  %6958 = vmatprep.mubr.msk.bf16.mxu0 %vm7217_vm0, %v7216_v0 }
 0xcac   :  { %v6897_v25 = vpop.f32.mrf.mxu0 }
 0xd41   :  { %v5341_v62 = vpop.f32.mrf.mxu1 }
 0xd42   :  { %v5669_v15 = vsel %vm194_vm1, %v5341_v62, 0.0 }
 0xd43   :  { %v6902_v4 = vpop.f32.mrf.mxu1 }
 0xd45   :  { %v5344_v49 = vpop.f32.mrf.mxu1 }
 0xd47   :  { %v6903_v39 = vpop.f32.mrf.mxu1 }
 0xd49   :  { %v5433_v44 = vpop.f32.mrf.mxu1 }
 0xd4a   :  { %v5672_v47 = vsel %vm194_vm1, %v5433_v44, 0.0 }
 0xd4b   :  { %v6914_v29 = vpop.f32.mrf.mxu1 }
 0xd4d   :  { %v5436_v24 = vpop.f32.mrf.mxu1 }
 0xd4f   :  { %v6915_v5 = vpop.f32.mrf.mxu1 }
 0xd51   :  { %v5387_v50 = vpop.f32.mrf.mxu0 }
 0xd52   :  { %v5670_v45 = vsel %vm194_vm1, %v5387_v50, 0.0  ;;  %v5525_v48 = vpop.f32.mrf.mxu1 }
 0xd53   :  { %v6908_v12 = vpop.f32.mrf.mxu0  ;;  %v5671_v2 = vadd.f32 %v5670_v45, %v5669_v15  ;;  %v5676_v45 = vsel %vm194_vm1, %v5525_v48, 0.0 }
 0xd54   :  { %v6926_v1 = vpop.f32.mrf.mxu1 }
 0xd55   :  { %v5390_v56 = vpop.f32.mrf.mxu0  ;;  %v5673_v11 = vadd.f32 %v5672_v47, %v5671_v2 }
 0xd56   :  { %v5528_v40 = vpop.f32.mrf.mxu1 }
 0xd57   :  { %v6909_v14 = vpop.f32.mrf.mxu0 }
 0xd58   :  { %v6927_v3 = vpop.f32.mrf.mxu1 }
 0xd59   :  { %v5479_v51 = vpop.f32.mrf.mxu0 }
 0xd5a   :  { %v5674_v57 = vsel %vm194_vm1, %v5479_v51, 0.0  ;;  %v5617_v23 = vpop.f32.mrf.mxu1 }
 0xd5b   :  { %v5675_v13 = vadd.f32 %v5674_v57, %v5673_v11  ;;  %v6920_v52 = vpop.f32.mrf.mxu0  ;;  %v5679_v2 = vsel %vm194_vm1, %v5617_v23, 0.0 }
 0xd5c   :  { %v6938_v18 = vpop.f32.mrf.mxu1 }
 0xd5d   :  { %v5687_v25 = vadd.f32 %v6135_v10, %v5675_v13  ;;  %v5482_v4 = vpop.f32.mrf.mxu0 }
 0xd5e   :  { %v5620_v62 = vpop.f32.mrf.mxu1 }
 0xd5f   :  { %v6921_v49 = vpop.f32.mrf.mxu0  ;;  %v5689_v39 = vadd.f32 %v5687_v25, %v7740_v53 }
 0xd60   :  { %v6939_v29 = vpop.f32.mrf.mxu1 }
 0xd61   :  { %v5571_v24 = vpop.f32.mrf.mxu0  ;;  %v5691_v44 = vsel %vm194_vm1, %v5689_v39, 0.0 }
 0xd62   :  { %v5677_v5 = vsel %vm194_vm1, %v5571_v24, 0.0  ;;  %5692 = vadd.xlane.f32.xlu0 %v5691_v44  ;;  %v6987_v24 = vld [vmem:[#allocation8 + $0x28] sm:$0xff]   ;;  %v6989_v44 = vld [vmem:[#allocation8 + $0x38] sm:$0xff]  }
 0xd63   :  { %v6932_v50 = vpop.f32.mrf.mxu0  ;;  %v5678_v12 = vadd.f32 %v5677_v5, %v5676_v45  ;;  %6947 = vmatpush3.bf16.msra.mxu1 %v6987_v24 }
 0xd64   :  { %6948 = vmatprep.subr.bf16.mxu1 %v7216_v0 }
 0xd65   :  { %v5574_v15 = vpop.f32.mrf.mxu0  ;;  %v5680_v40 = vadd.f32 %v5679_v2, %v5678_v12 }
 0xd67   :  { %v6933_v1 = vpop.f32.mrf.mxu0 }
 0xd69   :  { %v5663_v56 = vpop.f32.mrf.mxu0 }
 0xd6a   :  { %v5681_v14 = vsel %vm194_vm1, %v5663_v56, 0.0 }
 0xd6b   :  { %v5682_v53 = vadd.f32 %v5681_v14, %v5680_v40  ;;  %v6944_v47 = vpop.f32.mrf.mxu0  ;;  %v6136_v40 = vld [vmem:[#allocation10 + $0x8] ss:$0 sm:$0xff] }
 0xd6d   :  { %v5688_v3 = vadd.f32 %v6135_v10, %v5682_v53  ;;  %v5666_v51 = vpop.f32.mrf.mxu0 }
 0xd6f   :  { %v6945_v11 = vpop.f32.mrf.mxu0  ;;  %v5690_v57 = vadd.f32 %v5688_v3, %v7752_v54  ;;  %v6988_v54 = vld [vmem:[#allocation8 + $0x20] sm:$0xff]   ;;  %v6137_v3 = vld [vmem:[#allocation10 + $0x9] ss:$0 sm:$0xff] }
 0xd70   :  { %6949 = vmatpush3.bf16.msra.mxu1 %v6988_v54  ;;  %v6142_v54 = vld [vmem:[#allocation10 + $0xb] ss:$0 sm:$0xff] }
 0xd71   :  { %v5694_v13 = vsel %vm194_vm1, %v5690_v57, 0.0 }
 0xd72   :  { %5695 = vadd.xlane.f32.xlu1 %v5694_v13 }
 0xdeb   :  { %v5693_v48 = vpop.xlane.xlu0 %5692 }
 0xdec   :  { %v5697_v52 = vmul.f32 0.03125, %v5693_v48 }
 0xdee   :  { %v5699_v18 = vsub.f32 %v5689_v39, %v5697_v52  ;;  %v5824_v39 = vsel %vm2913_vm4, %v6989_v44, 0  ;;  %v6138_v52 = vld [vmem:[#allocation10 + $0xa] ss:$0 sm:$0xff] }
 0xdef   :  { %6955 = vmatpush3.bf16.xpose.msra.mxu0 %v5824_v39 }
 0xdf0   :  { %v5701_v25 = vmul.f32 %v5699_v18, %v5699_v18  ;;  %6956 = vmatprep.subr.bf16.mxu0 %v7216_v0  ;;  %v6990_v0 = vld [vmem:[#allocation8 + $0x30] sm:$0xff]  }
 0xdf1   :  { %v5821_v48 = vsel %vm2913_vm4, %v6990_v0, 0 }
 0xdf2   :  { %v5703_v23 = vsel %vm194_vm1, %v5701_v25, 0.0 }
 0xdf3   :  { %5704 = vadd.xlane.f32.xlu0 %v5703_v23 }
 0xdf7   :  { %6957 = vmatpush3.bf16.xpose.msra.mxu0 %v5821_v48 }
 0xdfb   :  { %v5696_v4 = vpop.xlane.xlu1 %5695 }
 0xdfc   :  { %v5698_v62 = vmul.f32 0.03125, %v5696_v4 }
 0xdfe   :  { %v5700_v49 = vsub.f32 %v5690_v57, %v5698_v62 }
 0xe00   :  { %v5702_v29 = vmul.f32 %v5700_v49, %v5700_v49 }
 0xe02   :  { %v5706_v10 = vsel %vm194_vm1, %v5702_v29, 0.0 }
 0xe03   :  { %5707 = vadd.xlane.f32.xlu1 %v5706_v10 }
 0xe7c   :  { %v5705_v5 = vpop.xlane.xlu0 %5704 }
 0xe7d   :  { %v5709_v50 = vmul.f32 0.03125, %v5705_v5 }
 0xe7f   :  { %v5711_v45 = vadd.f32 1e-05, %v5709_v50 }
 0xe81   :  { %7063 = vrsqrt.f32 %v5711_v45 }
 0xe8c   :  { %v5708_v12 = vpop.xlane.xlu1 %5707 }
 0xe8d   :  { %v5710_v15 = vmul.f32 0.03125, %v5708_v12 }
 0xe8e   :  { %v7064_v2 = vpop.eup %7063 }
 0xe8f   :  { %v5712_v1 = vadd.f32 1e-05, %v5710_v15  ;;  %v5715_v56 = vmul.f32 %v7064_v2, %v5699_v18 }
 0xe91   :  { %7065 = vrsqrt.f32 %v5712_v1  ;;  %v5721_v53 = vmul.f32 %v6136_v40, %v5715_v56 }
 0xe93   :  { %v5727_v11 = vadd.f32 %v6137_v3, %v5721_v53 }
 0xe9e   :  { %v7066_v14 = vpop.eup %7065 }
 0xe9f   :  { %v5716_v47 = vmul.f32 %v7066_v14, %v5700_v49 }
 0xea1   :  { %v5722_v51 = vmul.f32 %v6136_v40, %v5716_v47 }
 0xea3   :  { %v5728_v57 = vadd.f32 %v6137_v3, %v5722_v51 }
 0xea5   :  { %v5739_v13 = vpack.c.bf16 %v5728_v57, %v5727_v11 }
 0xea7   :  { %6951 = vmatmul.mubr.msk.bf16.vlgmr.msra.gmra.mxu1 %vm194_vm1, %v5739_v13 }
 0xf67   :  { %v5793_v25 = vpop.f32.mrf.mxu1 }
 0xf68   :  { %v5794_v4 = vadd.f32 %v6138_v52, %v5793_v25 }
 0xf69   :  { %v6952_v23 = vpop.f32.mrf.mxu1 }
 0xf6a   :  { %v5800_v10 = vmax.f32 %v5794_v4, 0.0 }
 0xf6b   :  { %v5796_v18 = vpop.f32.mrf.mxu1 }
 0xf6c   :  { %v5797_v62 = vadd.f32 %v6138_v52, %v5796_v18 }
 0xf6d   :  { %v6953_v29 = vpop.f32.mrf.mxu1 }
 0xf6e   :  { %v5801_v49 = vmax.f32 %v5797_v62, 0.0  ;;  %v6146_v29 = vld [vmem:[#allocation10 + $0xc] ss:$0 sm:$0xff] }
 0xf70   :  { %v5802_v24 = vpack.c.bf16 %v5801_v49, %v5800_v10  ;;  %v6147_v49 = vld [vmem:[#allocation10 + $0xd] ss:$0 sm:$0xff] }
 0xf72   :  { %6959 = vmatmul.mubr.msk.bf16.vlgmr.msra.gmra.mxu0 %vm2913_vm4, %v5802_v24 }
0x1032   :  { %v5860_v44 = vpop.f32.mrf.mxu0 }
0x1033   :  { %v5861_v39 = vadd.f32 %v6142_v54, %v5860_v44 }
0x1034   :  { %v6960_v5 = vpop.f32.mrf.mxu0 }
0x1035   :  { %v5867_v50 = vadd.f32 %v5861_v39, %v5727_v11 }
0x1036   :  { %v5863_v45 = vpop.f32.mrf.mxu0 }
0x1037   :  { %v5864_v12 = vadd.f32 %v6142_v54, %v5863_v45  ;;  %v5869_v15 = vsel %vm194_vm1, %v5867_v50, 0.0 }
0x1038   :  { %5870 = vadd.xlane.f32.xlu0 %v5869_v15  ;;  %v6961_v1 = vpop.f32.mrf.mxu0 }
0x1039   :  { %v5868_v2 = vadd.f32 %v5864_v12, %v5728_v57 }
0x103b   :  { %v5872_v56 = vsel %vm194_vm1, %v5868_v2, 0.0 }
0x103c   :  { %5873 = vadd.xlane.f32.xlu1 %v5872_v56 }
0x10c1   :  { %v5871_v40 = vpop.xlane.xlu0 %5870 }
0x10c2   :  { %v5875_v14 = vmul.f32 0.03125, %v5871_v40 }
0x10c4   :  { %v5877_v53 = vsub.f32 %v5867_v50, %v5875_v14 }
0x10c5   :  { %v5874_v47 = vpop.xlane.xlu1 %5873 }
0x10c6   :  { %v5876_v3 = vmul.f32 0.03125, %v5874_v47  ;;  %v5879_v51 = vmul.f32 %v5877_v53, %v5877_v53 }
0x10c8   :  { %v5878_v13 = vsub.f32 %v5868_v2, %v5876_v3  ;;  %v5881_v0 = vsel %vm194_vm1, %v5879_v51, 0.0 }
0x10c9   :  { %5882 = vadd.xlane.f32.xlu0 %v5881_v0 }
0x10ca   :  { %v5880_v11 = vmul.f32 %v5878_v13, %v5878_v13 }
0x10cc   :  { %v5884_v48 = vsel %vm194_vm1, %v5880_v11, 0.0 }
0x10cd   :  { %5885 = vadd.xlane.f32.xlu1 %v5884_v48 }
0x1152   :  { %v5883_v52 = vpop.xlane.xlu0 %5882 }
0x1153   :  { %v5887_v25 = vmul.f32 0.03125, %v5883_v52 }
0x1155   :  { %v5889_v57 = vadd.f32 1e-05, %v5887_v25  ;;  %v6148_v25 = vld [vmem:[#allocation10 + $0xe] ss:$0 sm:$0xff] }
0x1156   :  { %v5886_v23 = vpop.xlane.xlu1 %5885 }
0x1157   :  { %7067 = vrsqrt.f32 %v5889_v57  ;;  %v5888_v4 = vmul.f32 0.03125, %v5886_v23  ;;  %v6149_v23 = vld [vmem:[#allocation10 + $0xf] ss:$0 sm:$0xff] }
0x1159   :  { %v5890_v18 = vadd.f32 1e-05, %v5888_v4 }
0x115b   :  { %7069 = vrsqrt.f32 %v5890_v18 }
0x1164   :  { %v7068_v62 = vpop.eup %7067 }
0x1165   :  { %v5893_v10 = vmul.f32 %v7068_v62, %v5877_v53 }
0x1167   :  { %v5899_v24 = vmul.f32 %v6146_v29, %v5893_v10 }
0x1168   :  { %v7070_v54 = vpop.eup %7069 }
0x1169   :  { %v5905_v44 = vadd.f32 %v6147_v49, %v5899_v24  ;;  %v5894_v39 = vmul.f32 %v7070_v54, %v5878_v13 }
0x116b   :  { %v5909_v5 = vsel %vm194_vm1, %v5905_v44, 0.0  ;;  %v5900_v50 = vmul.f32 %v6146_v29, %v5894_v39 }
0x116c   :  { %5910 = vadd.xlane.f32.xlu0 %v5909_v5 }
0x116d   :  { %v5906_v45 = vadd.f32 %v6147_v49, %v5900_v50 }
0x116f   :  { %v5912_v12 = vsel %vm194_vm1, %v5906_v45, 0.0 }
0x1170   :  { %5913 = vadd.xlane.f32.xlu1 %v5912_v12 }
0x1181   :  { %4879 = vrot.lane.b32.xlu1 %v4868_v55, %s7213_s17 }
0x1182   :  { %4875 = vrot.lane.b32.xlu0 %v4867_v16, %s7211_s12 }
0x1185   :  { %4883 = vrot.lane.b32.xlu1 %v4869_v41, %s7220_s2 }
0x1186   :  { %4891 = vrot.lane.b32.xlu0 %v4871_v43, %s7221_s4 }
0x1189   :  { %4887 = vrot.lane.b32.xlu1 %v4870_v58, %s7222_s26 }
0x118a   :  { %4899 = vrot.lane.b32.xlu0 %v4873_v8, %s7223_s27 }
0x118d   :  { %4895 = vrot.lane.b32.xlu1 %v4872_v60, %s7224_s28 }
0x118e   :  { %1965 = vrot.lane.b32.xlu0 %v1957_v28, %s7211_s12 }
0x1191   :  { %1969 = vrot.lane.b32.xlu1 %v1958_v7, %s7213_s17 }
0x1195   :  { %1973 = vrot.lane.b32.xlu1 %v1959_v36, %s7220_s2 }
0x11f5   :  { %v5911_v19 = vpop.xlane.xlu0 %5910 }
0x11f6   :  { %v5915_v21 = vmul.f32 0.03125, %v5911_v19 }
0x11f8   :  { %v5917_v46 = vsub.f32 %v5905_v44, %v5915_v21 }
0x11f9   :  { %v4876_v63 = vpop.permute.xlu0 %4875  ;;  %v5914_v59 = vpop.xlane.xlu1 %5913 }
0x11fa   :  { %v5916_v22 = vmul.f32 0.03125, %v5914_v59  ;;  %v5919_v55 = vmul.f32 %v5917_v46, %v5917_v46  ;;  %v4902_v26 = vsel %vm1363_vm2, %v4866_v61, %v4876_v63 }
0x11fc   :  { %v5918_v16 = vsub.f32 %v5906_v45, %v5916_v22  ;;  %v5921_v41 = vsel %vm194_vm1, %v5919_v55, 0.0 }
0x11fd   :  { %5922 = vadd.xlane.f32.xlu1 %v5921_v41  ;;  %v4880_v28 = vpop.permute.xlu1 %4879  ;;  %v4892_v43 = vpop.permute.xlu0 %4891 }
0x11fe   :  { %v5920_v58 = vmul.f32 %v5918_v16, %v5918_v16  ;;  %v4903_v30 = vsel %vm1993_vm5, %v4902_v26, %v4880_v28 }
0x1200   :  { %v5924_v7 = vsel %vm194_vm1, %v5920_v58, 0.0 }
0x1201   :  { %5925 = vadd.xlane.f32.xlu0 %v5924_v7  ;;  %v4884_v8 = vpop.permute.xlu1 %4883  ;;  %v4900_v27 = vpop.permute.xlu0 %4899 }
0x1205   :  { %v4888_v31 = vpop.permute.xlu1 %4887  ;;  %v1966_v60 = vpop.permute.xlu0 %1965 }
0x1206   :  { %v1992_v15 = vsel %vm1363_vm2, %v1956_v35, %v1966_v60  ;;  %v4904_v35 = vsel %vm1995_vm6, %v4903_v30, %v4884_v8 }
0x1207   :  { %v4905_v14 = vsel %vm194_vm1, %v4904_v35, %v4888_v31 }
0x1209   :  { %v4896_v36 = vpop.permute.xlu1 %4895 }
0x120d   :  { %v1970_v1 = vpop.permute.xlu1 %1969 }
0x120e   :  { %v1994_v2 = vsel %vm1993_vm5, %v1992_v15, %v1970_v1  ;;  %1981 = vrot.lane.b32.xlu1 %v1961_v6, %s7221_s4  ;;  %v4906_v6 = vsel %vm1998_vm7, %v4905_v14, %v4892_v43 }
0x1211   :  { %v1974_v56 = vpop.permute.xlu1 %1973 }
0x1212   :  { %v1996_v40 = vsel %vm1995_vm6, %v1994_v2, %v1974_v56  ;;  %1989 = vrot.lane.b32.xlu1 %v1963_v17, %s7223_s27  ;;  %v4907_v17 = vsel %vm2000_vm8, %v4906_v6, %v4896_v36 }
0x1213   :  { %v4908_v20 = vsel %vm2002_vm9, %v4907_v17, %v4900_v27 }
0x1217   :  { %1977 = vrot.lane.b32.xlu0 %v1960_v37, %s7222_s26 }
0x121b   :  { %1985 = vrot.lane.b32.xlu0 %v1962_v38, %s7224_s28 }
0x121f   :  { %5950 = vrot.lane.b32.xlu0 %v4908_v20, %s7206_s24 }
0x1286   :  { %v5923_v42 = vpop.xlane.xlu1 %5922 }
0x1287   :  { %v5927_v61 = vmul.f32 0.03125, %v5923_v42 }
0x1289   :  { %v5929_v53 = vadd.f32 1e-05, %v5927_v61 }
0x128a   :  { %v5926_v32 = vpop.xlane.xlu0 %5925  ;;  %v1982_v3 = vpop.permute.xlu1 %1981 }
0x128b   :  { %7071 = vrsqrt.f32 %v5929_v53  ;;  %v5928_v9 = vmul.f32 0.03125, %v5926_v32 }
0x128d   :  { %v5930_v37 = vadd.f32 1e-05, %v5928_v9 }
0x128e   :  { %v1978_v47 = vpop.permute.xlu0 %1977  ;;  %v1990_v38 = vpop.permute.xlu1 %1989 }
0x128f   :  { %7073 = vrsqrt.f32 %v5930_v37  ;;  %v1997_v51 = vsel %vm194_vm1, %v1996_v40, %v1978_v47 }
0x1290   :  { %v1999_v33 = vsel %vm1998_vm7, %v1997_v51, %v1982_v3 }
0x1292   :  { %v1986_v13 = vpop.permute.xlu0 %1985 }
0x1293   :  { %v2001_v34 = vsel %vm2000_vm8, %v1999_v33, %v1986_v13 }
0x1294   :  { %v2003_v11 = vsel %vm2002_vm9, %v2001_v34, %v1990_v38 }
0x1296   :  { %v5951_v0 = vpop.permute.xlu0 %5950 }
0x1297   :  { %v5953_v48 = vsel %vm2913_vm4, %v2003_v11, %v5951_v0 }
0x1298   :  { %v7072_v52 = vpop.eup %7071  ;;  %5954 = vst [vmem:[%s8265_s6] sm:$0xff] %v5953_v48 }
0x1299   :  { %v5933_v57 = vmul.f32 %v7072_v52, %v5917_v46 }
0x129b   :  { %v5939_v4 = vmul.f32 %v6148_v25, %v5933_v57 }
0x129c   :  { %v7074_v18 = vpop.eup %7073 }
0x129d   :  { %v5934_v62 = vmul.f32 %v7074_v18, %v5918_v16  ;;  %v5945_v29 = vadd.f32 %v6149_v23, %v5939_v4 }
0x129f   :  { %v5940_v10 = vmul.f32 %v6148_v25, %v5934_v62  ;;  %5947 = vst.msk [vmem:[#allocation11] sm:$0xff] %vm194_vm1, %v5945_v29 }
0x12a1   :  { %v5946_v49 = vadd.f32 %v6149_v23, %v5940_v10 }
0x12a3   :  { %5948 = vst.msk [vmem:[#allocation11 + $0x8] sm:$0xff] %vm194_vm1, %v5946_v49 }
0x12a4   :  { %7188 = shalt.err (!%p7185_p1)
}
0x12a5   :  { %5966 = dma.vmem_to_hbm [thread:$0]  %s5961_s7, 256, %s8264_s5, [#allocation4], %s7210_s11, %s7210_s11, %s7211_s12  }
0x12a6   :  { %7203 = dma.done.wait [#allocation4], 256  }
0x12a7   :  { %7204 = vsyncadd [#allocation4], 4294967040 }
0x12a8   :  { %5974 = vsyncpa [#allocation3], 1 }
0x12a9   :  { %5975 = vsyncpa [#allocation6], 1 }
0x12aa   :  { %5976 = vsyncpa [#allocation9], 1 }
0x12ab   :  { %5977 = vsyncpa [#allocation4], 1 }

</bundles_post_ra>
